<compile_context>
chip_gen: v7x
topology: tpu7x:2x2x1
jax: 0.10.0
libtpu: 0.0.40
codegen_flags: <defaults>
</compile_context>

<pallas_src>
import math
import functools

import jax
import jax.numpy as jnp
from jax.experimental import pallas as pl
from jax.experimental.pallas import tpu as pltpu

NEG_INF = -1e9          # finite stand-in for the -inf additive masks PyTorch uses
W_DTYPE = jnp.bfloat16  # MXU input dtype for weight matrices (f32 accumulation)

ENC_KEYS = ('wqkv', 'bqkv', 'wo', 'bo', 'ln1_g', 'ln1_b',
            'w1', 'b1', 'w2', 'b2', 'ln2_g', 'ln2_b')
DEC_KEYS = ('wqkv', 'bqkv', 'wo', 'bo', 'ln1_g', 'ln1_b',
            'cwq', 'cbq', 'cwkv', 'cbkv', 'cwo', 'cbo', 'ln2_g', 'ln2_b',
            'w1', 'b1', 'w2', 'b2', 'ln3_g', 'ln3_b')


# --------------------- fully-fused transformer kernel ----------------------

def fused_transformer(pad_bias, src_emb, trg_emb, params, *, nhead):
    """pad_bias: (B,1,S) f32 additive; src_emb: (B,S,D); trg_emb: (B,T,D).
    Returns padded logits (B, T, VOCAB_PAD) f32."""
    B, S, D = src_emb.shape
    T = trg_emb.shape[1]
    enc, dec = params['enc'], params['dec']
    n_enc = enc['wqkv'].shape[0]
    n_dec = dec['wqkv'].shape[0]
    VP = params['wout'].shape[1]
    H = nhead
    Dh = D // H
    scale = 1.0 / math.sqrt(Dh)

    flat_params = ([enc[k] for k in ENC_KEYS]
                   + [dec[k] for k in DEC_KEYS]
                   + [params['enc_norm_g'], params['enc_norm_b'],
                      params['dec_norm_g'], params['dec_norm_b'],
                      params['wout'], params['bout']])

    def kernel(pad_ref, src_ref, trg_ref, *rest):
        out_ref = rest[-1]
        (e_wqkv, e_bqkv, e_wo, e_bo, e_ln1g, e_ln1b,
         e_w1, e_b1, e_w2, e_b2, e_ln2g, e_ln2b,
         d_wqkv, d_bqkv, d_wo, d_bo, d_ln1g, d_ln1b,
         d_cwq, d_cbq, d_cwkv, d_cbkv, d_cwo, d_cbo, d_ln2g, d_ln2b,
         d_w1, d_b1, d_w2, d_b2, d_ln3g, d_ln3b,
         enc_ng, enc_nb, dec_ng, dec_nb, wout, bout) = rest[:-1]

        key_bias = pad_ref[0]          # (1, S) additive src key-padding bias
        x = src_ref[0]                 # (S, D) encoder input (one batch element)
        y = trg_ref[0]                 # (T, D) decoder input

        # Reference passes generate_square_subsequent_mask(T).T, i.e. -inf
        # where i > j; reproduced faithfully, built in-kernel from iota.
        rows = jax.lax.broadcasted_iota(jnp.int32, (T, T), 0)
        cols = jax.lax.broadcasted_iota(jnp.int32, (T, T), 1)
        causal_bias = jnp.where(rows > cols, NEG_INF, 0.0).astype(jnp.float32)

        def mm(a, w):                  # bf16 MXU inputs, f32 accumulation
            return jnp.dot(a.astype(w.dtype), w,
                           preferred_element_type=jnp.float32)

        def layer_norm(v, g, b):       # v (M, D); g, b (1, D)
            mu = jnp.mean(v, axis=-1, keepdims=True)
            var = jnp.mean((v - mu) ** 2, axis=-1, keepdims=True)
            return (v - mu) * jax.lax.rsqrt(var + 1e-5) * g + b

        def sdpa(q, k, v, bias):       # one head, f32
            s = jnp.dot(q, k.T, preferred_element_type=jnp.float32) * scale
            if bias is not None:
                s = s + bias
            s = s - jnp.max(s, axis=-1, keepdims=True)
            p = jnp.exp(s)
            p = p * pl.reciprocal(jnp.sum(p, axis=-1, keepdims=True), approx=True)
            return jnp.dot(p, v, preferred_element_type=jnp.float32)

        def heads_merge(per_head, wo, bo, lq):
            # merge heads by summing per-head partial output projections
            acc = jnp.zeros((lq, D), jnp.float32)
            for h, oh in enumerate(per_head):
                acc = acc + mm(oh, wo[h * Dh:(h + 1) * Dh, :])
            return acc + bo

        def mha_self(xin, wqkv, bqkv, wo, bo, bias):
            lq = xin.shape[0]
            qkv = mm(xin, wqkv) + bqkv                       # fused QKV: (lq, 3D)
            per_head = []
            for h in range(H):
                q = qkv[:, h * Dh:(h + 1) * Dh]
                k = qkv[:, D + h * Dh:D + (h + 1) * Dh]
                v = qkv[:, 2 * D + h * Dh:2 * D + (h + 1) * Dh]
                per_head.append(sdpa(q, k, v, bias))
            return heads_merge(per_head, wo, bo, lq)

        def mha_cross(yin, mem, wq, bq, wkv, bkv, wo, bo):
            lq = yin.shape[0]
            qa = mm(yin, wq) + bq                            # (lq, D)
            kv = mm(mem, wkv) + bkv                          # fused KV: (S, 2D)
            per_head = []
            for h in range(H):
                q = qa[:, h * Dh:(h + 1) * Dh]
                k = kv[:, h * Dh:(h + 1) * Dh]
                v = kv[:, D + h * Dh:D + (h + 1) * Dh]
                per_head.append(sdpa(q, k, v, None))         # no memory mask
            return heads_merge(per_head, wo, bo, lq)

        def ffn(v, w1, b1, w2, b2):
            return mm(jnp.maximum(mm(v, w1) + b1, 0.0), w2) + b2

        # -------- encoder stack (+ final encoder norm) --------
        mem = x
        for l in range(n_enc):
            sa = mha_self(mem, e_wqkv[l], e_bqkv[l], e_wo[l], e_bo[l], key_bias)
            h1 = layer_norm(mem + sa, e_ln1g[l], e_ln1b[l])
            mem = layer_norm(h1 + ffn(h1, e_w1[l], e_b1[l], e_w2[l], e_b2[l]),
                             e_ln2g[l], e_ln2b[l])
        mem = layer_norm(mem, enc_ng[...], enc_nb[...])

        # -------- decoder stack (+ final decoder norm) --------
        out = y
        for l in range(n_dec):
            sa = mha_self(out, d_wqkv[l], d_bqkv[l], d_wo[l], d_bo[l], causal_bias)
            h1 = layer_norm(out + sa, d_ln1g[l], d_ln1b[l])
            ca = mha_cross(h1, mem, d_cwq[l], d_cbq[l], d_cwkv[l], d_cbkv[l],
                           d_cwo[l], d_cbo[l])
            h2 = layer_norm(h1 + ca, d_ln2g[l], d_ln2b[l])
            out = layer_norm(h2 + ffn(h2, d_w1[l], d_b1[l], d_w2[l], d_b2[l]),
                             d_ln3g[l], d_ln3b[l])
        out = layer_norm(out, dec_ng[...], dec_nb[...])

        # -------- lane-dense (128-padded vocab) output projection --------
        out_ref[0] = mm(out, wout[...]) + bout[...]

    def _zero_map(nd):
        return lambda b: (0,) * nd

    in_specs = ([pl.BlockSpec((1, 1, S), lambda b: (b, 0, 0)),
                 pl.BlockSpec((1, S, D), lambda b: (b, 0, 0)),
                 pl.BlockSpec((1, T, D), lambda b: (b, 0, 0))]
                + [pl.BlockSpec(p.shape, _zero_map(p.ndim)) for p in flat_params])

    return pl.pallas_call(
        kernel,
        grid=(B,),
        in_specs=in_specs,
        out_specs=pl.BlockSpec((1, T, VP), lambda b: (b, 0, 0)),
        out_shape=jax.ShapeDtypeStruct((B, T, VP), jnp.float32),
        compiler_params=pltpu.CompilerParams(
            dimension_semantics=("parallel",)),
    )(pad_bias, src_emb, trg_emb, *flat_params)


# ----------------------------- JAX-side glue -------------------------------

def positional_encoding(seq_len, d_model):
    idx = jnp.arange(seq_len, dtype=jnp.float32)[:, None]
    div = jnp.exp(jnp.arange(0, d_model, 2, dtype=jnp.float32)
                  * (-math.log(10000.0) / d_model))
    pe = jnp.zeros((seq_len, d_model), jnp.float32)
    pe = pe.at[:, 0::2].set(jnp.sin(idx * div))
    pe = pe.at[:, 1::2].set(jnp.cos(idx * div))
    return pe[None, :, :]  # (1, seq, d) -- matches pe.transpose(0, 1)


def model_forward(params, src, trg, *, nhead, src_pad_idx, vocab_out):
    # src: (B, S) int32, trg: (B, T) int32
    B, S = src.shape
    T = trg.shape[1]
    D = params['emb_src'].shape[1]

    # Embeddings + positional encoding (PE added only to src, per reference).
    embed_src = jnp.take(params['emb_src'], src, axis=0) + positional_encoding(S, D)
    embed_trg = jnp.take(params['emb_trg'], trg, axis=0)
    # TODO(synk): dropout(p=0.1) treated as identity (eval-mode / inference).

    # src key-padding mask as a tiny additive (B,1,S) row; expanded in-kernel.
    # Cross-attention carries no mask (nn.Transformer gets no memory_key_padding_mask).
    pad_bias = jnp.where(src == src_pad_idx, NEG_INF, 0.0).astype(jnp.float32)[:, None, :]

    logits_p = fused_transformer(pad_bias, embed_src, embed_trg, params,
                                 nhead=nhead)                 # (B, T, VOCAB_PAD)
    logits = logits_p[:, :, :vocab_out]                       # drop lane padding
    return logits.transpose(1, 0, 2)                          # (T, B, V), batch_first=False


# ------------------------------- init / main -------------------------------

def init_params(key, d_model, nhead, nenc, ndec, dff, vocab_in, vocab_out, vocab_pad):
    keys = iter(jax.random.split(key, 256))
    D, F = d_model, dff

    def w(shape):
        return (0.02 * jax.random.normal(next(keys), shape, jnp.float32)).astype(W_DTYPE)

    zeros = lambda shape: jnp.zeros(shape, jnp.float32)
    ones = lambda shape: jnp.ones(shape, jnp.float32)

    enc = dict(
        wqkv=w((nenc, D, 3 * D)), bqkv=zeros((nenc, 1, 3 * D)),
        wo=w((nenc, D, D)), bo=zeros((nenc, 1, D)),
        ln1_g=ones((nenc, 1, D)), ln1_b=zeros((nenc, 1, D)),
        w1=w((nenc, D, F)), b1=zeros((nenc, 1, F)),
        w2=w((nenc, F, D)), b2=zeros((nenc, 1, D)),
        ln2_g=ones((nenc, 1, D)), ln2_b=zeros((nenc, 1, D)),
    )
    dec = dict(
        wqkv=w((ndec, D, 3 * D)), bqkv=zeros((ndec, 1, 3 * D)),
        wo=w((ndec, D, D)), bo=zeros((ndec, 1, D)),
        ln1_g=ones((ndec, 1, D)), ln1_b=zeros((ndec, 1, D)),
        cwq=w((ndec, D, D)), cbq=zeros((ndec, 1, D)),
        cwkv=w((ndec, D, 2 * D)), cbkv=zeros((ndec, 1, 2 * D)),
        cwo=w((ndec, D, D)), cbo=zeros((ndec, 1, D)),
        ln2_g=ones((ndec, 1, D)), ln2_b=zeros((ndec, 1, D)),
        w1=w((ndec, D, F)), b1=zeros((ndec, 1, F)),
        w2=w((ndec, F, D)), b2=zeros((ndec, 1, D)),
        ln3_g=ones((ndec, 1, D)), ln3_b=zeros((ndec, 1, D)),
    )
    emb_src = 0.02 * jax.random.normal(next(keys), (vocab_in, D), jnp.float32)
    emb_trg = 0.02 * jax.random.normal(next(keys), (vocab_out, D), jnp.float32)
    # Output projection padded to a lane-dense width; padded columns are zero.
    wout = jnp.zeros((D, vocab_pad), jnp.float32)
    wout = wout.at[:, :vocab_out].set(
        0.02 * jax.random.normal(next(keys), (D, vocab_out), jnp.float32))
    bout = jnp.zeros((1, vocab_pad), jnp.float32)
    return dict(emb_src=emb_src, emb_trg=emb_trg, enc=enc, dec=dec,
                enc_norm_g=ones((1, D)), enc_norm_b=zeros((1, D)),
                dec_norm_g=ones((1, D)), dec_norm_b=zeros((1, D)),
                wout=wout.astype(W_DTYPE), bout=bout)


if __name__ == "__main__":
    D_MODEL = 32
    NHEAD = 4
    N_ENC = 2
    N_DEC = 2
    D_FF = 64
    VOCAB_IN = 50
    VOCAB_OUT = 48
    VOCAB_PAD = 128          # lane-dense padded output-projection width
    PAD_IDX = 1
    B, S, T = 2, 8, 6

    key = jax.random.PRNGKey(0)
    kp, ks, kt = jax.random.split(key, 3)
    params = init_params(kp, D_MODEL, NHEAD, N_ENC, N_DEC, D_FF,
                         VOCAB_IN, VOCAB_OUT, VOCAB_PAD)

    src = jax.random.randint(ks, (B, S), 2, VOCAB_IN, dtype=jnp.int32)
    src = src.at[:, -2:].set(PAD_IDX)        # exercise the key-padding mask
    trg = jax.random.randint(kt, (B, T), 2, VOCAB_OUT, dtype=jnp.int32)

    fwd = jax.jit(functools.partial(model_forward, nhead=NHEAD,
                                    src_pad_idx=PAD_IDX, vocab_out=VOCAB_OUT))
    out = fwd(params, src, trg)
    jax.block_until_ready(out)
    assert out.shape == (T, B, VOCAB_OUT), out.shape
    assert bool(jnp.all(jnp.isfinite(out)))
    print("KERNEL_OK")
</pallas_src>

<mosaic_0001>
module attributes {stable_mosaic.version = 11 : i64} {
  func.func @kernel(%arg0: i32, %arg1: memref<1x1x8xf32, #tpu.memory_space<vmem>>, %arg2: memref<1x8x32xf32, #tpu.memory_space<vmem>>, %arg3: memref<1x6x32xf32, #tpu.memory_space<vmem>>, %arg4: memref<2x32x96xbf16, #tpu.memory_space<vmem>>, %arg5: memref<2x1x96xf32, #tpu.memory_space<vmem>>, %arg6: memref<2x32x32xbf16, #tpu.memory_space<vmem>>, %arg7: memref<2x1x32xf32, #tpu.memory_space<vmem>>, %arg8: memref<2x1x32xf32, #tpu.memory_space<vmem>>, %arg9: memref<2x1x32xf32, #tpu.memory_space<vmem>>, %arg10: memref<2x32x64xbf16, #tpu.memory_space<vmem>>, %arg11: memref<2x1x64xf32, #tpu.memory_space<vmem>>, %arg12: memref<2x64x32xbf16, #tpu.memory_space<vmem>>, %arg13: memref<2x1x32xf32, #tpu.memory_space<vmem>>, %arg14: memref<2x1x32xf32, #tpu.memory_space<vmem>>, %arg15: memref<2x1x32xf32, #tpu.memory_space<vmem>>, %arg16: memref<2x32x96xbf16, #tpu.memory_space<vmem>>, %arg17: memref<2x1x96xf32, #tpu.memory_space<vmem>>, %arg18: memref<2x32x32xbf16, #tpu.memory_space<vmem>>, %arg19: memref<2x1x32xf32, #tpu.memory_space<vmem>>, %arg20: memref<2x1x32xf32, #tpu.memory_space<vmem>>, %arg21: memref<2x1x32xf32, #tpu.memory_space<vmem>>, %arg22: memref<2x32x32xbf16, #tpu.memory_space<vmem>>, %arg23: memref<2x1x32xf32, #tpu.memory_space<vmem>>, %arg24: memref<2x32x64xbf16, #tpu.memory_space<vmem>>, %arg25: memref<2x1x64xf32, #tpu.memory_space<vmem>>, %arg26: memref<2x32x32xbf16, #tpu.memory_space<vmem>>, %arg27: memref<2x1x32xf32, #tpu.memory_space<vmem>>, %arg28: memref<2x1x32xf32, #tpu.memory_space<vmem>>, %arg29: memref<2x1x32xf32, #tpu.memory_space<vmem>>, %arg30: memref<2x32x64xbf16, #tpu.memory_space<vmem>>, %arg31: memref<2x1x64xf32, #tpu.memory_space<vmem>>, %arg32: memref<2x64x32xbf16, #tpu.memory_space<vmem>>, %arg33: memref<2x1x32xf32, #tpu.memory_space<vmem>>, %arg34: memref<2x1x32xf32, #tpu.memory_space<vmem>>, %arg35: memref<2x1x32xf32, #tpu.memory_space<vmem>>, %arg36: memref<1x32xf32, #tpu.memory_space<vmem>>, %arg37: memref<1x32xf32, #tpu.memory_space<vmem>>, %arg38: memref<1x32xf32, #tpu.memory_space<vmem>>, %arg39: memref<1x32xf32, #tpu.memory_space<vmem>>, %arg40: memref<32x128xbf16, #tpu.memory_space<vmem>>, %arg41: memref<1x128xf32, #tpu.memory_space<vmem>>, %arg42: memref<1x6x128xf32, #tpu.memory_space<vmem>>) attributes {dimension_semantics = [#tpu.dimension_semantics<parallel>], iteration_bounds = array<i64: 2>, scalar_prefetch = 0 : i64, scratch_operands = 0 : i64, tpu.core_type = #tpu.core_type<tc>, window_params = [{transform_indices = @transform_0, window_bounds = array<i64: 1, 1, 8>}, {transform_indices = @transform_1, window_bounds = array<i64: 1, 8, 32>}, {transform_indices = @transform_2, window_bounds = array<i64: 1, 6, 32>}, {pipeline_mode = #tpu.pipeline_mode<synchronous>, transform_indices = @transform_3, window_bounds = array<i64: 2, 32, 96>}, {pipeline_mode = #tpu.pipeline_mode<synchronous>, transform_indices = @transform_4, window_bounds = array<i64: 2, 1, 96>}, {pipeline_mode = #tpu.pipeline_mode<synchronous>, transform_indices = @transform_5, window_bounds = array<i64: 2, 32, 32>}, {pipeline_mode = #tpu.pipeline_mode<synchronous>, transform_indices = @transform_6, window_bounds = array<i64: 2, 1, 32>}, {pipeline_mode = #tpu.pipeline_mode<synchronous>, transform_indices = @transform_7, window_bounds = array<i64: 2, 1, 32>}, {pipeline_mode = #tpu.pipeline_mode<synchronous>, transform_indices = @transform_8, window_bounds = array<i64: 2, 1, 32>}, {pipeline_mode = #tpu.pipeline_mode<synchronous>, transform_indices = @transform_9, window_bounds = array<i64: 2, 32, 64>}, {pipeline_mode = #tpu.pipeline_mode<synchronous>, transform_indices = @transform_10, window_bounds = array<i64: 2, 1, 64>}, {pipeline_mode = #tpu.pipeline_mode<synchronous>, transform_indices = @transform_11, window_bounds = array<i64: 2, 64, 32>}, {pipeline_mode = #tpu.pipeline_mode<synchronous>, transform_indices = @transform_12, window_bounds = array<i64: 2, 1, 32>}, {pipeline_mode = #tpu.pipeline_mode<synchronous>, transform_indices = @transform_13, window_bounds = array<i64: 2, 1, 32>}, {pipeline_mode = #tpu.pipeline_mode<synchronous>, transform_indices = @transform_14, window_bounds = array<i64: 2, 1, 32>}, {pipeline_mode = #tpu.pipeline_mode<synchronous>, transform_indices = @transform_15, window_bounds = array<i64: 2, 32, 96>}, {pipeline_mode = #tpu.pipeline_mode<synchronous>, transform_indices = @transform_16, window_bounds = array<i64: 2, 1, 96>}, {pipeline_mode = #tpu.pipeline_mode<synchronous>, transform_indices = @transform_17, window_bounds = array<i64: 2, 32, 32>}, {pipeline_mode = #tpu.pipeline_mode<synchronous>, transform_indices = @transform_18, window_bounds = array<i64: 2, 1, 32>}, {pipeline_mode = #tpu.pipeline_mode<synchronous>, transform_indices = @transform_19, window_bounds = array<i64: 2, 1, 32>}, {pipeline_mode = #tpu.pipeline_mode<synchronous>, transform_indices = @transform_20, window_bounds = array<i64: 2, 1, 32>}, {pipeline_mode = #tpu.pipeline_mode<synchronous>, transform_indices = @transform_21, window_bounds = array<i64: 2, 32, 32>}, {pipeline_mode = #tpu.pipeline_mode<synchronous>, transform_indices = @transform_22, window_bounds = array<i64: 2, 1, 32>}, {pipeline_mode = #tpu.pipeline_mode<synchronous>, transform_indices = @transform_23, window_bounds = array<i64: 2, 32, 64>}, {pipeline_mode = #tpu.pipeline_mode<synchronous>, transform_indices = @transform_24, window_bounds = array<i64: 2, 1, 64>}, {pipeline_mode = #tpu.pipeline_mode<synchronous>, transform_indices = @transform_25, window_bounds = array<i64: 2, 32, 32>}, {pipeline_mode = #tpu.pipeline_mode<synchronous>, transform_indices = @transform_26, window_bounds = array<i64: 2, 1, 32>}, {pipeline_mode = #tpu.pipeline_mode<synchronous>, transform_indices = @transform_27, window_bounds = array<i64: 2, 1, 32>}, {pipeline_mode = #tpu.pipeline_mode<synchronous>, transform_indices = @transform_28, window_bounds = array<i64: 2, 1, 32>}, {pipeline_mode = #tpu.pipeline_mode<synchronous>, transform_indices = @transform_29, window_bounds = array<i64: 2, 32, 64>}, {pipeline_mode = #tpu.pipeline_mode<synchronous>, transform_indices = @transform_30, window_bounds = array<i64: 2, 1, 64>}, {pipeline_mode = #tpu.pipeline_mode<synchronous>, transform_indices = @transform_31, window_bounds = array<i64: 2, 64, 32>}, {pipeline_mode = #tpu.pipeline_mode<synchronous>, transform_indices = @transform_32, window_bounds = array<i64: 2, 1, 32>}, {pipeline_mode = #tpu.pipeline_mode<synchronous>, transform_indices = @transform_33, window_bounds = array<i64: 2, 1, 32>}, {pipeline_mode = #tpu.pipeline_mode<synchronous>, transform_indices = @transform_34, window_bounds = array<i64: 2, 1, 32>}, {pipeline_mode = #tpu.pipeline_mode<synchronous>, transform_indices = @transform_35, window_bounds = array<i64: 1, 32>}, {pipeline_mode = #tpu.pipeline_mode<synchronous>, transform_indices = @transform_36, window_bounds = array<i64: 1, 32>}, {pipeline_mode = #tpu.pipeline_mode<synchronous>, transform_indices = @transform_37, window_bounds = array<i64: 1, 32>}, {pipeline_mode = #tpu.pipeline_mode<synchronous>, transform_indices = @transform_38, window_bounds = array<i64: 1, 32>}, {pipeline_mode = #tpu.pipeline_mode<synchronous>, transform_indices = @transform_39, window_bounds = array<i64: 32, 128>}, {pipeline_mode = #tpu.pipeline_mode<synchronous>, transform_indices = @transform_40, window_bounds = array<i64: 1, 128>}, {transform_indices = @transform_41, window_bounds = array<i64: 1, 6, 128>}]} {
    %c0 = arith.constant 0 : index
    %c0_0 = arith.constant 0 : index
    %c0_1 = arith.constant 0 : index
    %0 = vector.load %arg1[%c0, %c0_0, %c0_1] : memref<1x1x8xf32, #tpu.memory_space<vmem>>, vector<1x1x8xf32>
    %1 = vector.shape_cast %0 : vector<1x1x8xf32> to vector<1x8xf32>
    %c0_2 = arith.constant 0 : index
    %c0_3 = arith.constant 0 : index
    %c0_4 = arith.constant 0 : index
    %2 = vector.load %arg2[%c0_2, %c0_3, %c0_4] : memref<1x8x32xf32, #tpu.memory_space<vmem>>, vector<1x8x32xf32>
    %3 = vector.shape_cast %2 : vector<1x8x32xf32> to vector<8x32xf32>
    %c0_5 = arith.constant 0 : index
    %c0_6 = arith.constant 0 : index
    %c0_7 = arith.constant 0 : index
    %4 = vector.load %arg3[%c0_5, %c0_6, %c0_7] : memref<1x6x32xf32, #tpu.memory_space<vmem>>, vector<1x6x32xf32>
    %5 = vector.shape_cast %4 : vector<1x6x32xf32> to vector<6x32xf32>
    %6 = tpu.iota {dimensions = array<i32: 0>} : vector<6x6xi32>
    %7 = tpu.iota {dimensions = array<i32: 1>} : vector<6x6xi32>
    %8 = arith.cmpi sgt, %6, %7 : vector<6x6xi32>
    %cst = arith.constant -1.000000e+09 : f32
    %cst_8 = arith.constant 0.000000e+00 : f32
    %9 = vector.broadcast %cst : f32 to vector<6x6xf32>
    %10 = vector.broadcast %cst_8 : f32 to vector<6x6xf32>
    %11 = arith.select %8, %9, %10 : vector<6x6xi1>, vector<6x6xf32>
    %c0_9 = arith.constant 0 : index
    %c0_10 = arith.constant 0 : index
    %c0_11 = arith.constant 0 : index
    %12 = vector.load %arg4[%c0_9, %c0_10, %c0_11] : memref<2x32x96xbf16, #tpu.memory_space<vmem>>, vector<1x32x96xbf16>
    %13 = vector.shape_cast %12 : vector<1x32x96xbf16> to vector<32x96xbf16>
    %c0_12 = arith.constant 0 : index
    %c0_13 = arith.constant 0 : index
    %c0_14 = arith.constant 0 : index
    %14 = vector.load %arg5[%c0_12, %c0_13, %c0_14] : memref<2x1x96xf32, #tpu.memory_space<vmem>>, vector<1x1x96xf32>
    %15 = vector.shape_cast %14 : vector<1x1x96xf32> to vector<1x96xf32>
    %c0_15 = arith.constant 0 : index
    %c0_16 = arith.constant 0 : index
    %c0_17 = arith.constant 0 : index
    %16 = vector.load %arg6[%c0_15, %c0_16, %c0_17] : memref<2x32x32xbf16, #tpu.memory_space<vmem>>, vector<1x32x32xbf16>
    %17 = vector.shape_cast %16 : vector<1x32x32xbf16> to vector<32x32xbf16>
    %c0_18 = arith.constant 0 : index
    %c0_19 = arith.constant 0 : index
    %c0_20 = arith.constant 0 : index
    %18 = vector.load %arg7[%c0_18, %c0_19, %c0_20] : memref<2x1x32xf32, #tpu.memory_space<vmem>>, vector<1x1x32xf32>
    %19 = vector.shape_cast %18 : vector<1x1x32xf32> to vector<1x32xf32>
    %20 = arith.truncf %3 : vector<8x32xf32> to vector<8x32xbf16>
    %cst_21 = arith.constant dense<0.000000e+00> : vector<8x96xf32>
    %21 = tpu.matmul %20, %13, %cst_21 {dimension_numbers = #tpu.dot_dimension_numbers<[1], [0], [0], [1], [0, 0, 1, 1], [], []>} : vector<8x32xbf16>, vector<32x96xbf16>, vector<8x96xf32> -> vector<8x96xf32>
    %22 = vector.broadcast %15 : vector<1x96xf32> to vector<8x96xf32>
    %23 = arith.addf %21, %22 : vector<8x96xf32>
    %24 = vector.extract_strided_slice %23 {offsets = [0, 0], sizes = [8, 8], strides = [1, 1]} : vector<8x96xf32> to vector<8x8xf32>
    %25 = vector.extract_strided_slice %23 {offsets = [0, 32], sizes = [8, 8], strides = [1, 1]} : vector<8x96xf32> to vector<8x8xf32>
    %26 = vector.extract_strided_slice %23 {offsets = [0, 64], sizes = [8, 8], strides = [1, 1]} : vector<8x96xf32> to vector<8x8xf32>
    %27 = tpu.transpose %25, [1, 0] : vector<8x8xf32> -> vector<8x8xf32>
    %cst_22 = arith.constant dense<0.000000e+00> : vector<8x8xf32>
    %28 = tpu.matmul %24, %27, %cst_22 {dimension_numbers = #tpu.dot_dimension_numbers<[1], [0], [0], [1], [0, 0, 1, 1], [], []>} : vector<8x8xf32>, vector<8x8xf32>, vector<8x8xf32> -> vector<8x8xf32>
    %cst_23 = arith.constant 0.353553385 : f32
    %29 = vector.broadcast %cst_23 : f32 to vector<8x8xf32>
    %30 = arith.mulf %28, %29 : vector<8x8xf32>
    %31 = vector.broadcast %1 : vector<1x8xf32> to vector<8x8xf32>
    %32 = arith.addf %30, %31 : vector<8x8xf32>
    %cst_24 = arith.constant dense<0xFF800000> : vector<8xf32>
    %33 = vector.multi_reduction <maximumf>, %32, %cst_24 [1] : vector<8x8xf32> to vector<8xf32>
    %34 = vector.shape_cast %33 : vector<8xf32> to vector<8x1xf32>
    %35 = vector.broadcast %34 : vector<8x1xf32> to vector<8x8xf32>
    %36 = arith.subf %32, %35 : vector<8x8xf32>
    %37 = math.exp %36 : vector<8x8xf32>
    %cst_25 = arith.constant dense<0.000000e+00> : vector<8xf32>
    %38 = vector.multi_reduction <add>, %37, %cst_25 [1] : vector<8x8xf32> to vector<8xf32>
    %39 = vector.shape_cast %38 : vector<8xf32> to vector<8x1xf32>
    %40 = tpu.reciprocal %39 {approx = true} : vector<8x1xf32> -> vector<8x1xf32>
    %41 = vector.broadcast %40 : vector<8x1xf32> to vector<8x8xf32>
    %42 = arith.mulf %37, %41 : vector<8x8xf32>
    %cst_26 = arith.constant dense<0.000000e+00> : vector<8x8xf32>
    %43 = tpu.matmul %42, %26, %cst_26 {dimension_numbers = #tpu.dot_dimension_numbers<[1], [0], [0], [1], [0, 0, 1, 1], [], []>} : vector<8x8xf32>, vector<8x8xf32>, vector<8x8xf32> -> vector<8x8xf32>
    %44 = vector.extract_strided_slice %23 {offsets = [0, 8], sizes = [8, 8], strides = [1, 1]} : vector<8x96xf32> to vector<8x8xf32>
    %45 = vector.extract_strided_slice %23 {offsets = [0, 40], sizes = [8, 8], strides = [1, 1]} : vector<8x96xf32> to vector<8x8xf32>
    %46 = vector.extract_strided_slice %23 {offsets = [0, 72], sizes = [8, 8], strides = [1, 1]} : vector<8x96xf32> to vector<8x8xf32>
    %47 = tpu.transpose %45, [1, 0] : vector<8x8xf32> -> vector<8x8xf32>
    %cst_27 = arith.constant dense<0.000000e+00> : vector<8x8xf32>
    %48 = tpu.matmul %44, %47, %cst_27 {dimension_numbers = #tpu.dot_dimension_numbers<[1], [0], [0], [1], [0, 0, 1, 1], [], []>} : vector<8x8xf32>, vector<8x8xf32>, vector<8x8xf32> -> vector<8x8xf32>
    %cst_28 = arith.constant 0.353553385 : f32
    %49 = vector.broadcast %cst_28 : f32 to vector<8x8xf32>
    %50 = arith.mulf %48, %49 : vector<8x8xf32>
    %51 = vector.broadcast %1 : vector<1x8xf32> to vector<8x8xf32>
    %52 = arith.addf %50, %51 : vector<8x8xf32>
    %cst_29 = arith.constant dense<0xFF800000> : vector<8xf32>
    %53 = vector.multi_reduction <maximumf>, %52, %cst_29 [1] : vector<8x8xf32> to vector<8xf32>
    %54 = vector.shape_cast %53 : vector<8xf32> to vector<8x1xf32>
    %55 = vector.broadcast %54 : vector<8x1xf32> to vector<8x8xf32>
    %56 = arith.subf %52, %55 : vector<8x8xf32>
    %57 = math.exp %56 : vector<8x8xf32>
    %cst_30 = arith.constant dense<0.000000e+00> : vector<8xf32>
    %58 = vector.multi_reduction <add>, %57, %cst_30 [1] : vector<8x8xf32> to vector<8xf32>
    %59 = vector.shape_cast %58 : vector<8xf32> to vector<8x1xf32>
    %60 = tpu.reciprocal %59 {approx = true} : vector<8x1xf32> -> vector<8x1xf32>
    %61 = vector.broadcast %60 : vector<8x1xf32> to vector<8x8xf32>
    %62 = arith.mulf %57, %61 : vector<8x8xf32>
    %cst_31 = arith.constant dense<0.000000e+00> : vector<8x8xf32>
    %63 = tpu.matmul %62, %46, %cst_31 {dimension_numbers = #tpu.dot_dimension_numbers<[1], [0], [0], [1], [0, 0, 1, 1], [], []>} : vector<8x8xf32>, vector<8x8xf32>, vector<8x8xf32> -> vector<8x8xf32>
    %64 = vector.extract_strided_slice %23 {offsets = [0, 16], sizes = [8, 8], strides = [1, 1]} : vector<8x96xf32> to vector<8x8xf32>
    %65 = vector.extract_strided_slice %23 {offsets = [0, 48], sizes = [8, 8], strides = [1, 1]} : vector<8x96xf32> to vector<8x8xf32>
    %66 = vector.extract_strided_slice %23 {offsets = [0, 80], sizes = [8, 8], strides = [1, 1]} : vector<8x96xf32> to vector<8x8xf32>
    %67 = tpu.transpose %65, [1, 0] : vector<8x8xf32> -> vector<8x8xf32>
    %cst_32 = arith.constant dense<0.000000e+00> : vector<8x8xf32>
    %68 = tpu.matmul %64, %67, %cst_32 {dimension_numbers = #tpu.dot_dimension_numbers<[1], [0], [0], [1], [0, 0, 1, 1], [], []>} : vector<8x8xf32>, vector<8x8xf32>, vector<8x8xf32> -> vector<8x8xf32>
    %cst_33 = arith.constant 0.353553385 : f32
    %69 = vector.broadcast %cst_33 : f32 to vector<8x8xf32>
    %70 = arith.mulf %68, %69 : vector<8x8xf32>
    %71 = vector.broadcast %1 : vector<1x8xf32> to vector<8x8xf32>
    %72 = arith.addf %70, %71 : vector<8x8xf32>
    %cst_34 = arith.constant dense<0xFF800000> : vector<8xf32>
    %73 = vector.multi_reduction <maximumf>, %72, %cst_34 [1] : vector<8x8xf32> to vector<8xf32>
    %74 = vector.shape_cast %73 : vector<8xf32> to vector<8x1xf32>
    %75 = vector.broadcast %74 : vector<8x1xf32> to vector<8x8xf32>
    %76 = arith.subf %72, %75 : vector<8x8xf32>
    %77 = math.exp %76 : vector<8x8xf32>
    %cst_35 = arith.constant dense<0.000000e+00> : vector<8xf32>
    %78 = vector.multi_reduction <add>, %77, %cst_35 [1] : vector<8x8xf32> to vector<8xf32>
    %79 = vector.shape_cast %78 : vector<8xf32> to vector<8x1xf32>
    %80 = tpu.reciprocal %79 {approx = true} : vector<8x1xf32> -> vector<8x1xf32>
    %81 = vector.broadcast %80 : vector<8x1xf32> to vector<8x8xf32>
    %82 = arith.mulf %77, %81 : vector<8x8xf32>
    %cst_36 = arith.constant dense<0.000000e+00> : vector<8x8xf32>
    %83 = tpu.matmul %82, %66, %cst_36 {dimension_numbers = #tpu.dot_dimension_numbers<[1], [0], [0], [1], [0, 0, 1, 1], [], []>} : vector<8x8xf32>, vector<8x8xf32>, vector<8x8xf32> -> vector<8x8xf32>
    %84 = vector.extract_strided_slice %23 {offsets = [0, 24], sizes = [8, 8], strides = [1, 1]} : vector<8x96xf32> to vector<8x8xf32>
    %85 = vector.extract_strided_slice %23 {offsets = [0, 56], sizes = [8, 8], strides = [1, 1]} : vector<8x96xf32> to vector<8x8xf32>
    %86 = vector.extract_strided_slice %23 {offsets = [0, 88], sizes = [8, 8], strides = [1, 1]} : vector<8x96xf32> to vector<8x8xf32>
    %87 = tpu.transpose %85, [1, 0] : vector<8x8xf32> -> vector<8x8xf32>
    %cst_37 = arith.constant dense<0.000000e+00> : vector<8x8xf32>
    %88 = tpu.matmul %84, %87, %cst_37 {dimension_numbers = #tpu.dot_dimension_numbers<[1], [0], [0], [1], [0, 0, 1, 1], [], []>} : vector<8x8xf32>, vector<8x8xf32>, vector<8x8xf32> -> vector<8x8xf32>
    %cst_38 = arith.constant 0.353553385 : f32
    %89 = vector.broadcast %cst_38 : f32 to vector<8x8xf32>
    %90 = arith.mulf %88, %89 : vector<8x8xf32>
    %91 = vector.broadcast %1 : vector<1x8xf32> to vector<8x8xf32>
    %92 = arith.addf %90, %91 : vector<8x8xf32>
    %cst_39 = arith.constant dense<0xFF800000> : vector<8xf32>
    %93 = vector.multi_reduction <maximumf>, %92, %cst_39 [1] : vector<8x8xf32> to vector<8xf32>
    %94 = vector.shape_cast %93 : vector<8xf32> to vector<8x1xf32>
    %95 = vector.broadcast %94 : vector<8x1xf32> to vector<8x8xf32>
    %96 = arith.subf %92, %95 : vector<8x8xf32>
    %97 = math.exp %96 : vector<8x8xf32>
    %cst_40 = arith.constant dense<0.000000e+00> : vector<8xf32>
    %98 = vector.multi_reduction <add>, %97, %cst_40 [1] : vector<8x8xf32> to vector<8xf32>
    %99 = vector.shape_cast %98 : vector<8xf32> to vector<8x1xf32>
    %100 = tpu.reciprocal %99 {approx = true} : vector<8x1xf32> -> vector<8x1xf32>
    %101 = vector.broadcast %100 : vector<8x1xf32> to vector<8x8xf32>
    %102 = arith.mulf %97, %101 : vector<8x8xf32>
    %cst_41 = arith.constant dense<0.000000e+00> : vector<8x8xf32>
    %103 = tpu.matmul %102, %86, %cst_41 {dimension_numbers = #tpu.dot_dimension_numbers<[1], [0], [0], [1], [0, 0, 1, 1], [], []>} : vector<8x8xf32>, vector<8x8xf32>, vector<8x8xf32> -> vector<8x8xf32>
    %cst_42 = arith.constant 0.000000e+00 : f32
    %104 = vector.broadcast %cst_42 : f32 to vector<8x32xf32>
    %105 = vector.extract_strided_slice %17 {offsets = [0, 0], sizes = [8, 32], strides = [1, 1]} : vector<32x32xbf16> to vector<8x32xbf16>
    %106 = arith.truncf %43 : vector<8x8xf32> to vector<8x8xbf16>
    %cst_43 = arith.constant dense<0.000000e+00> : vector<8x32xf32>
    %107 = tpu.matmul %106, %105, %cst_43 {dimension_numbers = #tpu.dot_dimension_numbers<[1], [0], [0], [1], [0, 0, 1, 1], [], []>} : vector<8x8xbf16>, vector<8x32xbf16>, vector<8x32xf32> -> vector<8x32xf32>
    %108 = arith.addf %104, %107 : vector<8x32xf32>
    %109 = vector.extract_strided_slice %17 {offsets = [8, 0], sizes = [8, 32], strides = [1, 1]} : vector<32x32xbf16> to vector<8x32xbf16>
    %110 = arith.truncf %63 : vector<8x8xf32> to vector<8x8xbf16>
    %cst_44 = arith.constant dense<0.000000e+00> : vector<8x32xf32>
    %111 = tpu.matmul %110, %109, %cst_44 {dimension_numbers = #tpu.dot_dimension_numbers<[1], [0], [0], [1], [0, 0, 1, 1], [], []>} : vector<8x8xbf16>, vector<8x32xbf16>, vector<8x32xf32> -> vector<8x32xf32>
    %112 = arith.addf %108, %111 : vector<8x32xf32>
    %113 = vector.extract_strided_slice %17 {offsets = [16, 0], sizes = [8, 32], strides = [1, 1]} : vector<32x32xbf16> to vector<8x32xbf16>
    %114 = arith.truncf %83 : vector<8x8xf32> to vector<8x8xbf16>
    %cst_45 = arith.constant dense<0.000000e+00> : vector<8x32xf32>
    %115 = tpu.matmul %114, %113, %cst_45 {dimension_numbers = #tpu.dot_dimension_numbers<[1], [0], [0], [1], [0, 0, 1, 1], [], []>} : vector<8x8xbf16>, vector<8x32xbf16>, vector<8x32xf32> -> vector<8x32xf32>
    %116 = arith.addf %112, %115 : vector<8x32xf32>
    %117 = vector.extract_strided_slice %17 {offsets = [24, 0], sizes = [8, 32], strides = [1, 1]} : vector<32x32xbf16> to vector<8x32xbf16>
    %118 = arith.truncf %103 : vector<8x8xf32> to vector<8x8xbf16>
    %cst_46 = arith.constant dense<0.000000e+00> : vector<8x32xf32>
    %119 = tpu.matmul %118, %117, %cst_46 {dimension_numbers = #tpu.dot_dimension_numbers<[1], [0], [0], [1], [0, 0, 1, 1], [], []>} : vector<8x8xbf16>, vector<8x32xbf16>, vector<8x32xf32> -> vector<8x32xf32>
    %120 = arith.addf %116, %119 : vector<8x32xf32>
    %121 = vector.broadcast %19 : vector<1x32xf32> to vector<8x32xf32>
    %122 = arith.addf %120, %121 : vector<8x32xf32>
    %123 = arith.addf %3, %122 : vector<8x32xf32>
    %c0_47 = arith.constant 0 : index
    %c0_48 = arith.constant 0 : index
    %c0_49 = arith.constant 0 : index
    %124 = vector.load %arg8[%c0_47, %c0_48, %c0_49] : memref<2x1x32xf32, #tpu.memory_space<vmem>>, vector<1x1x32xf32>
    %125 = vector.shape_cast %124 : vector<1x1x32xf32> to vector<1x32xf32>
    %c0_50 = arith.constant 0 : index
    %c0_51 = arith.constant 0 : index
    %c0_52 = arith.constant 0 : index
    %126 = vector.load %arg9[%c0_50, %c0_51, %c0_52] : memref<2x1x32xf32, #tpu.memory_space<vmem>>, vector<1x1x32xf32>
    %127 = vector.shape_cast %126 : vector<1x1x32xf32> to vector<1x32xf32>
    %cst_53 = arith.constant dense<0.000000e+00> : vector<8xf32>
    %128 = vector.multi_reduction <add>, %123, %cst_53 [1] : vector<8x32xf32> to vector<8xf32>
    %129 = vector.shape_cast %128 : vector<8xf32> to vector<8x1xf32>
    %cst_54 = arith.constant 3.200000e+01 : f32
    %130 = vector.broadcast %cst_54 : f32 to vector<8x1xf32>
    %131 = arith.divf %129, %130 : vector<8x1xf32>
    %132 = vector.broadcast %131 : vector<8x1xf32> to vector<8x32xf32>
    %133 = arith.subf %123, %132 : vector<8x32xf32>
    %134 = arith.mulf %133, %133 : vector<8x32xf32>
    %cst_55 = arith.constant dense<0.000000e+00> : vector<8xf32>
    %135 = vector.multi_reduction <add>, %134, %cst_55 [1] : vector<8x32xf32> to vector<8xf32>
    %136 = vector.shape_cast %135 : vector<8xf32> to vector<8x1xf32>
    %cst_56 = arith.constant 3.200000e+01 : f32
    %137 = vector.broadcast %cst_56 : f32 to vector<8x1xf32>
    %138 = arith.divf %136, %137 : vector<8x1xf32>
    %139 = vector.broadcast %131 : vector<8x1xf32> to vector<8x32xf32>
    %140 = arith.subf %123, %139 : vector<8x32xf32>
    %cst_57 = arith.constant 9.99999974E-6 : f32
    %141 = vector.broadcast %cst_57 : f32 to vector<8x1xf32>
    %142 = arith.addf %138, %141 : vector<8x1xf32>
    %143 = math.rsqrt %142 : vector<8x1xf32>
    %144 = vector.broadcast %143 : vector<8x1xf32> to vector<8x32xf32>
    %145 = arith.mulf %140, %144 : vector<8x32xf32>
    %146 = vector.broadcast %125 : vector<1x32xf32> to vector<8x32xf32>
    %147 = arith.mulf %145, %146 : vector<8x32xf32>
    %148 = vector.broadcast %127 : vector<1x32xf32> to vector<8x32xf32>
    %149 = arith.addf %147, %148 : vector<8x32xf32>
    %c0_58 = arith.constant 0 : index
    %c0_59 = arith.constant 0 : index
    %c0_60 = arith.constant 0 : index
    %150 = vector.load %arg10[%c0_58, %c0_59, %c0_60] : memref<2x32x64xbf16, #tpu.memory_space<vmem>>, vector<1x32x64xbf16>
    %151 = vector.shape_cast %150 : vector<1x32x64xbf16> to vector<32x64xbf16>
    %c0_61 = arith.constant 0 : index
    %c0_62 = arith.constant 0 : index
    %c0_63 = arith.constant 0 : index
    %152 = vector.load %arg11[%c0_61, %c0_62, %c0_63] : memref<2x1x64xf32, #tpu.memory_space<vmem>>, vector<1x1x64xf32>
    %153 = vector.shape_cast %152 : vector<1x1x64xf32> to vector<1x64xf32>
    %c0_64 = arith.constant 0 : index
    %c0_65 = arith.constant 0 : index
    %c0_66 = arith.constant 0 : index
    %154 = vector.load %arg12[%c0_64, %c0_65, %c0_66] : memref<2x64x32xbf16, #tpu.memory_space<vmem>>, vector<1x64x32xbf16>
    %155 = vector.shape_cast %154 : vector<1x64x32xbf16> to vector<64x32xbf16>
    %c0_67 = arith.constant 0 : index
    %c0_68 = arith.constant 0 : index
    %c0_69 = arith.constant 0 : index
    %156 = vector.load %arg13[%c0_67, %c0_68, %c0_69] : memref<2x1x32xf32, #tpu.memory_space<vmem>>, vector<1x1x32xf32>
    %157 = vector.shape_cast %156 : vector<1x1x32xf32> to vector<1x32xf32>
    %158 = arith.truncf %149 : vector<8x32xf32> to vector<8x32xbf16>
    %cst_70 = arith.constant dense<0.000000e+00> : vector<8x64xf32>
    %159 = tpu.matmul %158, %151, %cst_70 {dimension_numbers = #tpu.dot_dimension_numbers<[1], [0], [0], [1], [0, 0, 1, 1], [], []>} : vector<8x32xbf16>, vector<32x64xbf16>, vector<8x64xf32> -> vector<8x64xf32>
    %160 = vector.broadcast %153 : vector<1x64xf32> to vector<8x64xf32>
    %161 = arith.addf %159, %160 : vector<8x64xf32>
    %cst_71 = arith.constant 0.000000e+00 : f32
    %162 = vector.broadcast %cst_71 : f32 to vector<8x64xf32>
    %163 = arith.maximumf %161, %162 : vector<8x64xf32>
    %164 = arith.truncf %163 : vector<8x64xf32> to vector<8x64xbf16>
    %cst_72 = arith.constant dense<0.000000e+00> : vector<8x32xf32>
    %165 = tpu.matmul %164, %155, %cst_72 {dimension_numbers = #tpu.dot_dimension_numbers<[1], [0], [0], [1], [0, 0, 1, 1], [], []>} : vector<8x64xbf16>, vector<64x32xbf16>, vector<8x32xf32> -> vector<8x32xf32>
    %166 = vector.broadcast %157 : vector<1x32xf32> to vector<8x32xf32>
    %167 = arith.addf %165, %166 : vector<8x32xf32>
    %168 = arith.addf %149, %167 : vector<8x32xf32>
    %c0_73 = arith.constant 0 : index
    %c0_74 = arith.constant 0 : index
    %c0_75 = arith.constant 0 : index
    %169 = vector.load %arg14[%c0_73, %c0_74, %c0_75] : memref<2x1x32xf32, #tpu.memory_space<vmem>>, vector<1x1x32xf32>
    %170 = vector.shape_cast %169 : vector<1x1x32xf32> to vector<1x32xf32>
    %c0_76 = arith.constant 0 : index
    %c0_77 = arith.constant 0 : index
    %c0_78 = arith.constant 0 : index
    %171 = vector.load %arg15[%c0_76, %c0_77, %c0_78] : memref<2x1x32xf32, #tpu.memory_space<vmem>>, vector<1x1x32xf32>
    %172 = vector.shape_cast %171 : vector<1x1x32xf32> to vector<1x32xf32>
    %cst_79 = arith.constant dense<0.000000e+00> : vector<8xf32>
    %173 = vector.multi_reduction <add>, %168, %cst_79 [1] : vector<8x32xf32> to vector<8xf32>
    %174 = vector.shape_cast %173 : vector<8xf32> to vector<8x1xf32>
    %cst_80 = arith.constant 3.200000e+01 : f32
    %175 = vector.broadcast %cst_80 : f32 to vector<8x1xf32>
    %176 = arith.divf %174, %175 : vector<8x1xf32>
    %177 = vector.broadcast %176 : vector<8x1xf32> to vector<8x32xf32>
    %178 = arith.subf %168, %177 : vector<8x32xf32>
    %179 = arith.mulf %178, %178 : vector<8x32xf32>
    %cst_81 = arith.constant dense<0.000000e+00> : vector<8xf32>
    %180 = vector.multi_reduction <add>, %179, %cst_81 [1] : vector<8x32xf32> to vector<8xf32>
    %181 = vector.shape_cast %180 : vector<8xf32> to vector<8x1xf32>
    %cst_82 = arith.constant 3.200000e+01 : f32
    %182 = vector.broadcast %cst_82 : f32 to vector<8x1xf32>
    %183 = arith.divf %181, %182 : vector<8x1xf32>
    %184 = vector.broadcast %176 : vector<8x1xf32> to vector<8x32xf32>
    %185 = arith.subf %168, %184 : vector<8x32xf32>
    %cst_83 = arith.constant 9.99999974E-6 : f32
    %186 = vector.broadcast %cst_83 : f32 to vector<8x1xf32>
    %187 = arith.addf %183, %186 : vector<8x1xf32>
    %188 = math.rsqrt %187 : vector<8x1xf32>
    %189 = vector.broadcast %188 : vector<8x1xf32> to vector<8x32xf32>
    %190 = arith.mulf %185, %189 : vector<8x32xf32>
    %191 = vector.broadcast %170 : vector<1x32xf32> to vector<8x32xf32>
    %192 = arith.mulf %190, %191 : vector<8x32xf32>
    %193 = vector.broadcast %172 : vector<1x32xf32> to vector<8x32xf32>
    %194 = arith.addf %192, %193 : vector<8x32xf32>
    %c1 = arith.constant 1 : index
    %c0_84 = arith.constant 0 : index
    %c0_85 = arith.constant 0 : index
    %195 = vector.load %arg4[%c1, %c0_84, %c0_85] : memref<2x32x96xbf16, #tpu.memory_space<vmem>>, vector<1x32x96xbf16>
    %196 = vector.shape_cast %195 : vector<1x32x96xbf16> to vector<32x96xbf16>
    %c1_86 = arith.constant 1 : index
    %c0_87 = arith.constant 0 : index
    %c0_88 = arith.constant 0 : index
    %197 = vector.load %arg5[%c1_86, %c0_87, %c0_88] : memref<2x1x96xf32, #tpu.memory_space<vmem>>, vector<1x1x96xf32>
    %198 = vector.shape_cast %197 : vector<1x1x96xf32> to vector<1x96xf32>
    %c1_89 = arith.constant 1 : index
    %c0_90 = arith.constant 0 : index
    %c0_91 = arith.constant 0 : index
    %199 = vector.load %arg6[%c1_89, %c0_90, %c0_91] : memref<2x32x32xbf16, #tpu.memory_space<vmem>>, vector<1x32x32xbf16>
    %200 = vector.shape_cast %199 : vector<1x32x32xbf16> to vector<32x32xbf16>
    %c1_92 = arith.constant 1 : index
    %c0_93 = arith.constant 0 : index
    %c0_94 = arith.constant 0 : index
    %201 = vector.load %arg7[%c1_92, %c0_93, %c0_94] : memref<2x1x32xf32, #tpu.memory_space<vmem>>, vector<1x1x32xf32>
    %202 = vector.shape_cast %201 : vector<1x1x32xf32> to vector<1x32xf32>
    %203 = arith.truncf %194 : vector<8x32xf32> to vector<8x32xbf16>
    %cst_95 = arith.constant dense<0.000000e+00> : vector<8x96xf32>
    %204 = tpu.matmul %203, %196, %cst_95 {dimension_numbers = #tpu.dot_dimension_numbers<[1], [0], [0], [1], [0, 0, 1, 1], [], []>} : vector<8x32xbf16>, vector<32x96xbf16>, vector<8x96xf32> -> vector<8x96xf32>
    %205 = vector.broadcast %198 : vector<1x96xf32> to vector<8x96xf32>
    %206 = arith.addf %204, %205 : vector<8x96xf32>
    %207 = vector.extract_strided_slice %206 {offsets = [0, 0], sizes = [8, 8], strides = [1, 1]} : vector<8x96xf32> to vector<8x8xf32>
    %208 = vector.extract_strided_slice %206 {offsets = [0, 32], sizes = [8, 8], strides = [1, 1]} : vector<8x96xf32> to vector<8x8xf32>
    %209 = vector.extract_strided_slice %206 {offsets = [0, 64], sizes = [8, 8], strides = [1, 1]} : vector<8x96xf32> to vector<8x8xf32>
    %210 = tpu.transpose %208, [1, 0] : vector<8x8xf32> -> vector<8x8xf32>
    %cst_96 = arith.constant dense<0.000000e+00> : vector<8x8xf32>
    %211 = tpu.matmul %207, %210, %cst_96 {dimension_numbers = #tpu.dot_dimension_numbers<[1], [0], [0], [1], [0, 0, 1, 1], [], []>} : vector<8x8xf32>, vector<8x8xf32>, vector<8x8xf32> -> vector<8x8xf32>
    %cst_97 = arith.constant 0.353553385 : f32
    %212 = vector.broadcast %cst_97 : f32 to vector<8x8xf32>
    %213 = arith.mulf %211, %212 : vector<8x8xf32>
    %214 = vector.broadcast %1 : vector<1x8xf32> to vector<8x8xf32>
    %215 = arith.addf %213, %214 : vector<8x8xf32>
    %cst_98 = arith.constant dense<0xFF800000> : vector<8xf32>
    %216 = vector.multi_reduction <maximumf>, %215, %cst_98 [1] : vector<8x8xf32> to vector<8xf32>
    %217 = vector.shape_cast %216 : vector<8xf32> to vector<8x1xf32>
    %218 = vector.broadcast %217 : vector<8x1xf32> to vector<8x8xf32>
    %219 = arith.subf %215, %218 : vector<8x8xf32>
    %220 = math.exp %219 : vector<8x8xf32>
    %cst_99 = arith.constant dense<0.000000e+00> : vector<8xf32>
    %221 = vector.multi_reduction <add>, %220, %cst_99 [1] : vector<8x8xf32> to vector<8xf32>
    %222 = vector.shape_cast %221 : vector<8xf32> to vector<8x1xf32>
    %223 = tpu.reciprocal %222 {approx = true} : vector<8x1xf32> -> vector<8x1xf32>
    %224 = vector.broadcast %223 : vector<8x1xf32> to vector<8x8xf32>
    %225 = arith.mulf %220, %224 : vector<8x8xf32>
    %cst_100 = arith.constant dense<0.000000e+00> : vector<8x8xf32>
    %226 = tpu.matmul %225, %209, %cst_100 {dimension_numbers = #tpu.dot_dimension_numbers<[1], [0], [0], [1], [0, 0, 1, 1], [], []>} : vector<8x8xf32>, vector<8x8xf32>, vector<8x8xf32> -> vector<8x8xf32>
    %227 = vector.extract_strided_slice %206 {offsets = [0, 8], sizes = [8, 8], strides = [1, 1]} : vector<8x96xf32> to vector<8x8xf32>
    %228 = vector.extract_strided_slice %206 {offsets = [0, 40], sizes = [8, 8], strides = [1, 1]} : vector<8x96xf32> to vector<8x8xf32>
    %229 = vector.extract_strided_slice %206 {offsets = [0, 72], sizes = [8, 8], strides = [1, 1]} : vector<8x96xf32> to vector<8x8xf32>
    %230 = tpu.transpose %228, [1, 0] : vector<8x8xf32> -> vector<8x8xf32>
    %cst_101 = arith.constant dense<0.000000e+00> : vector<8x8xf32>
    %231 = tpu.matmul %227, %230, %cst_101 {dimension_numbers = #tpu.dot_dimension_numbers<[1], [0], [0], [1], [0, 0, 1, 1], [], []>} : vector<8x8xf32>, vector<8x8xf32>, vector<8x8xf32> -> vector<8x8xf32>
    %cst_102 = arith.constant 0.353553385 : f32
    %232 = vector.broadcast %cst_102 : f32 to vector<8x8xf32>
    %233 = arith.mulf %231, %232 : vector<8x8xf32>
    %234 = vector.broadcast %1 : vector<1x8xf32> to vector<8x8xf32>
    %235 = arith.addf %233, %234 : vector<8x8xf32>
    %cst_103 = arith.constant dense<0xFF800000> : vector<8xf32>
    %236 = vector.multi_reduction <maximumf>, %235, %cst_103 [1] : vector<8x8xf32> to vector<8xf32>
    %237 = vector.shape_cast %236 : vector<8xf32> to vector<8x1xf32>
    %238 = vector.broadcast %237 : vector<8x1xf32> to vector<8x8xf32>
    %239 = arith.subf %235, %238 : vector<8x8xf32>
    %240 = math.exp %239 : vector<8x8xf32>
    %cst_104 = arith.constant dense<0.000000e+00> : vector<8xf32>
    %241 = vector.multi_reduction <add>, %240, %cst_104 [1] : vector<8x8xf32> to vector<8xf32>
    %242 = vector.shape_cast %241 : vector<8xf32> to vector<8x1xf32>
    %243 = tpu.reciprocal %242 {approx = true} : vector<8x1xf32> -> vector<8x1xf32>
    %244 = vector.broadcast %243 : vector<8x1xf32> to vector<8x8xf32>
    %245 = arith.mulf %240, %244 : vector<8x8xf32>
    %cst_105 = arith.constant dense<0.000000e+00> : vector<8x8xf32>
    %246 = tpu.matmul %245, %229, %cst_105 {dimension_numbers = #tpu.dot_dimension_numbers<[1], [0], [0], [1], [0, 0, 1, 1], [], []>} : vector<8x8xf32>, vector<8x8xf32>, vector<8x8xf32> -> vector<8x8xf32>
    %247 = vector.extract_strided_slice %206 {offsets = [0, 16], sizes = [8, 8], strides = [1, 1]} : vector<8x96xf32> to vector<8x8xf32>
    %248 = vector.extract_strided_slice %206 {offsets = [0, 48], sizes = [8, 8], strides = [1, 1]} : vector<8x96xf32> to vector<8x8xf32>
    %249 = vector.extract_strided_slice %206 {offsets = [0, 80], sizes = [8, 8], strides = [1, 1]} : vector<8x96xf32> to vector<8x8xf32>
    %250 = tpu.transpose %248, [1, 0] : vector<8x8xf32> -> vector<8x8xf32>
    %cst_106 = arith.constant dense<0.000000e+00> : vector<8x8xf32>
    %251 = tpu.matmul %247, %250, %cst_106 {dimension_numbers = #tpu.dot_dimension_numbers<[1], [0], [0], [1], [0, 0, 1, 1], [], []>} : vector<8x8xf32>, vector<8x8xf32>, vector<8x8xf32> -> vector<8x8xf32>
    %cst_107 = arith.constant 0.353553385 : f32
    %252 = vector.broadcast %cst_107 : f32 to vector<8x8xf32>
    %253 = arith.mulf %251, %252 : vector<8x8xf32>
    %254 = vector.broadcast %1 : vector<1x8xf32> to vector<8x8xf32>
    %255 = arith.addf %253, %254 : vector<8x8xf32>
    %cst_108 = arith.constant dense<0xFF800000> : vector<8xf32>
    %256 = vector.multi_reduction <maximumf>, %255, %cst_108 [1] : vector<8x8xf32> to vector<8xf32>
    %257 = vector.shape_cast %256 : vector<8xf32> to vector<8x1xf32>
    %258 = vector.broadcast %257 : vector<8x1xf32> to vector<8x8xf32>
    %259 = arith.subf %255, %258 : vector<8x8xf32>
    %260 = math.exp %259 : vector<8x8xf32>
    %cst_109 = arith.constant dense<0.000000e+00> : vector<8xf32>
    %261 = vector.multi_reduction <add>, %260, %cst_109 [1] : vector<8x8xf32> to vector<8xf32>
    %262 = vector.shape_cast %261 : vector<8xf32> to vector<8x1xf32>
    %263 = tpu.reciprocal %262 {approx = true} : vector<8x1xf32> -> vector<8x1xf32>
    %264 = vector.broadcast %263 : vector<8x1xf32> to vector<8x8xf32>
    %265 = arith.mulf %260, %264 : vector<8x8xf32>
    %cst_110 = arith.constant dense<0.000000e+00> : vector<8x8xf32>
    %266 = tpu.matmul %265, %249, %cst_110 {dimension_numbers = #tpu.dot_dimension_numbers<[1], [0], [0], [1], [0, 0, 1, 1], [], []>} : vector<8x8xf32>, vector<8x8xf32>, vector<8x8xf32> -> vector<8x8xf32>
    %267 = vector.extract_strided_slice %206 {offsets = [0, 24], sizes = [8, 8], strides = [1, 1]} : vector<8x96xf32> to vector<8x8xf32>
    %268 = vector.extract_strided_slice %206 {offsets = [0, 56], sizes = [8, 8], strides = [1, 1]} : vector<8x96xf32> to vector<8x8xf32>
    %269 = vector.extract_strided_slice %206 {offsets = [0, 88], sizes = [8, 8], strides = [1, 1]} : vector<8x96xf32> to vector<8x8xf32>
    %270 = tpu.transpose %268, [1, 0] : vector<8x8xf32> -> vector<8x8xf32>
    %cst_111 = arith.constant dense<0.000000e+00> : vector<8x8xf32>
    %271 = tpu.matmul %267, %270, %cst_111 {dimension_numbers = #tpu.dot_dimension_numbers<[1], [0], [0], [1], [0, 0, 1, 1], [], []>} : vector<8x8xf32>, vector<8x8xf32>, vector<8x8xf32> -> vector<8x8xf32>
    %cst_112 = arith.constant 0.353553385 : f32
    %272 = vector.broadcast %cst_112 : f32 to vector<8x8xf32>
    %273 = arith.mulf %271, %272 : vector<8x8xf32>
    %274 = vector.broadcast %1 : vector<1x8xf32> to vector<8x8xf32>
    %275 = arith.addf %273, %274 : vector<8x8xf32>
    %cst_113 = arith.constant dense<0xFF800000> : vector<8xf32>
    %276 = vector.multi_reduction <maximumf>, %275, %cst_113 [1] : vector<8x8xf32> to vector<8xf32>
    %277 = vector.shape_cast %276 : vector<8xf32> to vector<8x1xf32>
    %278 = vector.broadcast %277 : vector<8x1xf32> to vector<8x8xf32>
    %279 = arith.subf %275, %278 : vector<8x8xf32>
    %280 = math.exp %279 : vector<8x8xf32>
    %cst_114 = arith.constant dense<0.000000e+00> : vector<8xf32>
    %281 = vector.multi_reduction <add>, %280, %cst_114 [1] : vector<8x8xf32> to vector<8xf32>
    %282 = vector.shape_cast %281 : vector<8xf32> to vector<8x1xf32>
    %283 = tpu.reciprocal %282 {approx = true} : vector<8x1xf32> -> vector<8x1xf32>
    %284 = vector.broadcast %283 : vector<8x1xf32> to vector<8x8xf32>
    %285 = arith.mulf %280, %284 : vector<8x8xf32>
    %cst_115 = arith.constant dense<0.000000e+00> : vector<8x8xf32>
    %286 = tpu.matmul %285, %269, %cst_115 {dimension_numbers = #tpu.dot_dimension_numbers<[1], [0], [0], [1], [0, 0, 1, 1], [], []>} : vector<8x8xf32>, vector<8x8xf32>, vector<8x8xf32> -> vector<8x8xf32>
    %cst_116 = arith.constant 0.000000e+00 : f32
    %287 = vector.broadcast %cst_116 : f32 to vector<8x32xf32>
    %288 = vector.extract_strided_slice %200 {offsets = [0, 0], sizes = [8, 32], strides = [1, 1]} : vector<32x32xbf16> to vector<8x32xbf16>
    %289 = arith.truncf %226 : vector<8x8xf32> to vector<8x8xbf16>
    %cst_117 = arith.constant dense<0.000000e+00> : vector<8x32xf32>
    %290 = tpu.matmul %289, %288, %cst_117 {dimension_numbers = #tpu.dot_dimension_numbers<[1], [0], [0], [1], [0, 0, 1, 1], [], []>} : vector<8x8xbf16>, vector<8x32xbf16>, vector<8x32xf32> -> vector<8x32xf32>
    %291 = arith.addf %287, %290 : vector<8x32xf32>
    %292 = vector.extract_strided_slice %200 {offsets = [8, 0], sizes = [8, 32], strides = [1, 1]} : vector<32x32xbf16> to vector<8x32xbf16>
    %293 = arith.truncf %246 : vector<8x8xf32> to vector<8x8xbf16>
    %cst_118 = arith.constant dense<0.000000e+00> : vector<8x32xf32>
    %294 = tpu.matmul %293, %292, %cst_118 {dimension_numbers = #tpu.dot_dimension_numbers<[1], [0], [0], [1], [0, 0, 1, 1], [], []>} : vector<8x8xbf16>, vector<8x32xbf16>, vector<8x32xf32> -> vector<8x32xf32>
    %295 = arith.addf %291, %294 : vector<8x32xf32>
    %296 = vector.extract_strided_slice %200 {offsets = [16, 0], sizes = [8, 32], strides = [1, 1]} : vector<32x32xbf16> to vector<8x32xbf16>
    %297 = arith.truncf %266 : vector<8x8xf32> to vector<8x8xbf16>
    %cst_119 = arith.constant dense<0.000000e+00> : vector<8x32xf32>
    %298 = tpu.matmul %297, %296, %cst_119 {dimension_numbers = #tpu.dot_dimension_numbers<[1], [0], [0], [1], [0, 0, 1, 1], [], []>} : vector<8x8xbf16>, vector<8x32xbf16>, vector<8x32xf32> -> vector<8x32xf32>
    %299 = arith.addf %295, %298 : vector<8x32xf32>
    %300 = vector.extract_strided_slice %200 {offsets = [24, 0], sizes = [8, 32], strides = [1, 1]} : vector<32x32xbf16> to vector<8x32xbf16>
    %301 = arith.truncf %286 : vector<8x8xf32> to vector<8x8xbf16>
    %cst_120 = arith.constant dense<0.000000e+00> : vector<8x32xf32>
    %302 = tpu.matmul %301, %300, %cst_120 {dimension_numbers = #tpu.dot_dimension_numbers<[1], [0], [0], [1], [0, 0, 1, 1], [], []>} : vector<8x8xbf16>, vector<8x32xbf16>, vector<8x32xf32> -> vector<8x32xf32>
    %303 = arith.addf %299, %302 : vector<8x32xf32>
    %304 = vector.broadcast %202 : vector<1x32xf32> to vector<8x32xf32>
    %305 = arith.addf %303, %304 : vector<8x32xf32>
    %306 = arith.addf %194, %305 : vector<8x32xf32>
    %c1_121 = arith.constant 1 : index
    %c0_122 = arith.constant 0 : index
    %c0_123 = arith.constant 0 : index
    %307 = vector.load %arg8[%c1_121, %c0_122, %c0_123] : memref<2x1x32xf32, #tpu.memory_space<vmem>>, vector<1x1x32xf32>
    %308 = vector.shape_cast %307 : vector<1x1x32xf32> to vector<1x32xf32>
    %c1_124 = arith.constant 1 : index
    %c0_125 = arith.constant 0 : index
    %c0_126 = arith.constant 0 : index
    %309 = vector.load %arg9[%c1_124, %c0_125, %c0_126] : memref<2x1x32xf32, #tpu.memory_space<vmem>>, vector<1x1x32xf32>
    %310 = vector.shape_cast %309 : vector<1x1x32xf32> to vector<1x32xf32>
    %cst_127 = arith.constant dense<0.000000e+00> : vector<8xf32>
    %311 = vector.multi_reduction <add>, %306, %cst_127 [1] : vector<8x32xf32> to vector<8xf32>
    %312 = vector.shape_cast %311 : vector<8xf32> to vector<8x1xf32>
    %cst_128 = arith.constant 3.200000e+01 : f32
    %313 = vector.broadcast %cst_128 : f32 to vector<8x1xf32>
    %314 = arith.divf %312, %313 : vector<8x1xf32>
    %315 = vector.broadcast %314 : vector<8x1xf32> to vector<8x32xf32>
    %316 = arith.subf %306, %315 : vector<8x32xf32>
    %317 = arith.mulf %316, %316 : vector<8x32xf32>
    %cst_129 = arith.constant dense<0.000000e+00> : vector<8xf32>
    %318 = vector.multi_reduction <add>, %317, %cst_129 [1] : vector<8x32xf32> to vector<8xf32>
    %319 = vector.shape_cast %318 : vector<8xf32> to vector<8x1xf32>
    %cst_130 = arith.constant 3.200000e+01 : f32
    %320 = vector.broadcast %cst_130 : f32 to vector<8x1xf32>
    %321 = arith.divf %319, %320 : vector<8x1xf32>
    %322 = vector.broadcast %314 : vector<8x1xf32> to vector<8x32xf32>
    %323 = arith.subf %306, %322 : vector<8x32xf32>
    %cst_131 = arith.constant 9.99999974E-6 : f32
    %324 = vector.broadcast %cst_131 : f32 to vector<8x1xf32>
    %325 = arith.addf %321, %324 : vector<8x1xf32>
    %326 = math.rsqrt %325 : vector<8x1xf32>
    %327 = vector.broadcast %326 : vector<8x1xf32> to vector<8x32xf32>
    %328 = arith.mulf %323, %327 : vector<8x32xf32>
    %329 = vector.broadcast %308 : vector<1x32xf32> to vector<8x32xf32>
    %330 = arith.mulf %328, %329 : vector<8x32xf32>
    %331 = vector.broadcast %310 : vector<1x32xf32> to vector<8x32xf32>
    %332 = arith.addf %330, %331 : vector<8x32xf32>
    %c1_132 = arith.constant 1 : index
    %c0_133 = arith.constant 0 : index
    %c0_134 = arith.constant 0 : index
    %333 = vector.load %arg10[%c1_132, %c0_133, %c0_134] : memref<2x32x64xbf16, #tpu.memory_space<vmem>>, vector<1x32x64xbf16>
    %334 = vector.shape_cast %333 : vector<1x32x64xbf16> to vector<32x64xbf16>
    %c1_135 = arith.constant 1 : index
    %c0_136 = arith.constant 0 : index
    %c0_137 = arith.constant 0 : index
    %335 = vector.load %arg11[%c1_135, %c0_136, %c0_137] : memref<2x1x64xf32, #tpu.memory_space<vmem>>, vector<1x1x64xf32>
    %336 = vector.shape_cast %335 : vector<1x1x64xf32> to vector<1x64xf32>
    %c1_138 = arith.constant 1 : index
    %c0_139 = arith.constant 0 : index
    %c0_140 = arith.constant 0 : index
    %337 = vector.load %arg12[%c1_138, %c0_139, %c0_140] : memref<2x64x32xbf16, #tpu.memory_space<vmem>>, vector<1x64x32xbf16>
    %338 = vector.shape_cast %337 : vector<1x64x32xbf16> to vector<64x32xbf16>
    %c1_141 = arith.constant 1 : index
    %c0_142 = arith.constant 0 : index
    %c0_143 = arith.constant 0 : index
    %339 = vector.load %arg13[%c1_141, %c0_142, %c0_143] : memref<2x1x32xf32, #tpu.memory_space<vmem>>, vector<1x1x32xf32>
    %340 = vector.shape_cast %339 : vector<1x1x32xf32> to vector<1x32xf32>
    %341 = arith.truncf %332 : vector<8x32xf32> to vector<8x32xbf16>
    %cst_144 = arith.constant dense<0.000000e+00> : vector<8x64xf32>
    %342 = tpu.matmul %341, %334, %cst_144 {dimension_numbers = #tpu.dot_dimension_numbers<[1], [0], [0], [1], [0, 0, 1, 1], [], []>} : vector<8x32xbf16>, vector<32x64xbf16>, vector<8x64xf32> -> vector<8x64xf32>
    %343 = vector.broadcast %336 : vector<1x64xf32> to vector<8x64xf32>
    %344 = arith.addf %342, %343 : vector<8x64xf32>
    %cst_145 = arith.constant 0.000000e+00 : f32
    %345 = vector.broadcast %cst_145 : f32 to vector<8x64xf32>
    %346 = arith.maximumf %344, %345 : vector<8x64xf32>
    %347 = arith.truncf %346 : vector<8x64xf32> to vector<8x64xbf16>
    %cst_146 = arith.constant dense<0.000000e+00> : vector<8x32xf32>
    %348 = tpu.matmul %347, %338, %cst_146 {dimension_numbers = #tpu.dot_dimension_numbers<[1], [0], [0], [1], [0, 0, 1, 1], [], []>} : vector<8x64xbf16>, vector<64x32xbf16>, vector<8x32xf32> -> vector<8x32xf32>
    %349 = vector.broadcast %340 : vector<1x32xf32> to vector<8x32xf32>
    %350 = arith.addf %348, %349 : vector<8x32xf32>
    %351 = arith.addf %332, %350 : vector<8x32xf32>
    %c1_147 = arith.constant 1 : index
    %c0_148 = arith.constant 0 : index
    %c0_149 = arith.constant 0 : index
    %352 = vector.load %arg14[%c1_147, %c0_148, %c0_149] : memref<2x1x32xf32, #tpu.memory_space<vmem>>, vector<1x1x32xf32>
    %353 = vector.shape_cast %352 : vector<1x1x32xf32> to vector<1x32xf32>
    %c1_150 = arith.constant 1 : index
    %c0_151 = arith.constant 0 : index
    %c0_152 = arith.constant 0 : index
    %354 = vector.load %arg15[%c1_150, %c0_151, %c0_152] : memref<2x1x32xf32, #tpu.memory_space<vmem>>, vector<1x1x32xf32>
    %355 = vector.shape_cast %354 : vector<1x1x32xf32> to vector<1x32xf32>
    %cst_153 = arith.constant dense<0.000000e+00> : vector<8xf32>
    %356 = vector.multi_reduction <add>, %351, %cst_153 [1] : vector<8x32xf32> to vector<8xf32>
    %357 = vector.shape_cast %356 : vector<8xf32> to vector<8x1xf32>
    %cst_154 = arith.constant 3.200000e+01 : f32
    %358 = vector.broadcast %cst_154 : f32 to vector<8x1xf32>
    %359 = arith.divf %357, %358 : vector<8x1xf32>
    %360 = vector.broadcast %359 : vector<8x1xf32> to vector<8x32xf32>
    %361 = arith.subf %351, %360 : vector<8x32xf32>
    %362 = arith.mulf %361, %361 : vector<8x32xf32>
    %cst_155 = arith.constant dense<0.000000e+00> : vector<8xf32>
    %363 = vector.multi_reduction <add>, %362, %cst_155 [1] : vector<8x32xf32> to vector<8xf32>
    %364 = vector.shape_cast %363 : vector<8xf32> to vector<8x1xf32>
    %cst_156 = arith.constant 3.200000e+01 : f32
    %365 = vector.broadcast %cst_156 : f32 to vector<8x1xf32>
    %366 = arith.divf %364, %365 : vector<8x1xf32>
    %367 = vector.broadcast %359 : vector<8x1xf32> to vector<8x32xf32>
    %368 = arith.subf %351, %367 : vector<8x32xf32>
    %cst_157 = arith.constant 9.99999974E-6 : f32
    %369 = vector.broadcast %cst_157 : f32 to vector<8x1xf32>
    %370 = arith.addf %366, %369 : vector<8x1xf32>
    %371 = math.rsqrt %370 : vector<8x1xf32>
    %372 = vector.broadcast %371 : vector<8x1xf32> to vector<8x32xf32>
    %373 = arith.mulf %368, %372 : vector<8x32xf32>
    %374 = vector.broadcast %353 : vector<1x32xf32> to vector<8x32xf32>
    %375 = arith.mulf %373, %374 : vector<8x32xf32>
    %376 = vector.broadcast %355 : vector<1x32xf32> to vector<8x32xf32>
    %377 = arith.addf %375, %376 : vector<8x32xf32>
    %c0_158 = arith.constant 0 : index
    %c0_159 = arith.constant 0 : index
    %378 = vector.load %arg36[%c0_158, %c0_159] : memref<1x32xf32, #tpu.memory_space<vmem>>, vector<1x32xf32>
    %c0_160 = arith.constant 0 : index
    %c0_161 = arith.constant 0 : index
    %379 = vector.load %arg37[%c0_160, %c0_161] : memref<1x32xf32, #tpu.memory_space<vmem>>, vector<1x32xf32>
    %cst_162 = arith.constant dense<0.000000e+00> : vector<8xf32>
    %380 = vector.multi_reduction <add>, %377, %cst_162 [1] : vector<8x32xf32> to vector<8xf32>
    %381 = vector.shape_cast %380 : vector<8xf32> to vector<8x1xf32>
    %cst_163 = arith.constant 3.200000e+01 : f32
    %382 = vector.broadcast %cst_163 : f32 to vector<8x1xf32>
    %383 = arith.divf %381, %382 : vector<8x1xf32>
    %384 = vector.broadcast %383 : vector<8x1xf32> to vector<8x32xf32>
    %385 = arith.subf %377, %384 : vector<8x32xf32>
    %386 = arith.mulf %385, %385 : vector<8x32xf32>
    %cst_164 = arith.constant dense<0.000000e+00> : vector<8xf32>
    %387 = vector.multi_reduction <add>, %386, %cst_164 [1] : vector<8x32xf32> to vector<8xf32>
    %388 = vector.shape_cast %387 : vector<8xf32> to vector<8x1xf32>
    %cst_165 = arith.constant 3.200000e+01 : f32
    %389 = vector.broadcast %cst_165 : f32 to vector<8x1xf32>
    %390 = arith.divf %388, %389 : vector<8x1xf32>
    %391 = vector.broadcast %383 : vector<8x1xf32> to vector<8x32xf32>
    %392 = arith.subf %377, %391 : vector<8x32xf32>
    %cst_166 = arith.constant 9.99999974E-6 : f32
    %393 = vector.broadcast %cst_166 : f32 to vector<8x1xf32>
    %394 = arith.addf %390, %393 : vector<8x1xf32>
    %395 = math.rsqrt %394 : vector<8x1xf32>
    %396 = vector.broadcast %395 : vector<8x1xf32> to vector<8x32xf32>
    %397 = arith.mulf %392, %396 : vector<8x32xf32>
    %398 = vector.broadcast %378 : vector<1x32xf32> to vector<8x32xf32>
    %399 = arith.mulf %397, %398 : vector<8x32xf32>
    %400 = vector.broadcast %379 : vector<1x32xf32> to vector<8x32xf32>
    %401 = arith.addf %399, %400 : vector<8x32xf32>
    %c0_167 = arith.constant 0 : index
    %c0_168 = arith.constant 0 : index
    %c0_169 = arith.constant 0 : index
    %402 = vector.load %arg16[%c0_167, %c0_168, %c0_169] : memref<2x32x96xbf16, #tpu.memory_space<vmem>>, vector<1x32x96xbf16>
    %403 = vector.shape_cast %402 : vector<1x32x96xbf16> to vector<32x96xbf16>
    %c0_170 = arith.constant 0 : index
    %c0_171 = arith.constant 0 : index
    %c0_172 = arith.constant 0 : index
    %404 = vector.load %arg17[%c0_170, %c0_171, %c0_172] : memref<2x1x96xf32, #tpu.memory_space<vmem>>, vector<1x1x96xf32>
    %405 = vector.shape_cast %404 : vector<1x1x96xf32> to vector<1x96xf32>
    %c0_173 = arith.constant 0 : index
    %c0_174 = arith.constant 0 : index
    %c0_175 = arith.constant 0 : index
    %406 = vector.load %arg18[%c0_173, %c0_174, %c0_175] : memref<2x32x32xbf16, #tpu.memory_space<vmem>>, vector<1x32x32xbf16>
    %407 = vector.shape_cast %406 : vector<1x32x32xbf16> to vector<32x32xbf16>
    %c0_176 = arith.constant 0 : index
    %c0_177 = arith.constant 0 : index
    %c0_178 = arith.constant 0 : index
    %408 = vector.load %arg19[%c0_176, %c0_177, %c0_178] : memref<2x1x32xf32, #tpu.memory_space<vmem>>, vector<1x1x32xf32>
    %409 = vector.shape_cast %408 : vector<1x1x32xf32> to vector<1x32xf32>
    %410 = arith.truncf %5 : vector<6x32xf32> to vector<6x32xbf16>
    %cst_179 = arith.constant dense<0.000000e+00> : vector<6x96xf32>
    %411 = tpu.matmul %410, %403, %cst_179 {dimension_numbers = #tpu.dot_dimension_numbers<[1], [0], [0], [1], [0, 0, 1, 1], [], []>} : vector<6x32xbf16>, vector<32x96xbf16>, vector<6x96xf32> -> vector<6x96xf32>
    %412 = vector.broadcast %405 : vector<1x96xf32> to vector<6x96xf32>
    %413 = arith.addf %411, %412 : vector<6x96xf32>
    %414 = vector.extract_strided_slice %413 {offsets = [0, 0], sizes = [6, 8], strides = [1, 1]} : vector<6x96xf32> to vector<6x8xf32>
    %415 = vector.extract_strided_slice %413 {offsets = [0, 32], sizes = [6, 8], strides = [1, 1]} : vector<6x96xf32> to vector<6x8xf32>
    %416 = vector.extract_strided_slice %413 {offsets = [0, 64], sizes = [6, 8], strides = [1, 1]} : vector<6x96xf32> to vector<6x8xf32>
    %417 = tpu.transpose %415, [1, 0] : vector<6x8xf32> -> vector<8x6xf32>
    %cst_180 = arith.constant dense<0.000000e+00> : vector<6x6xf32>
    %418 = tpu.matmul %414, %417, %cst_180 {dimension_numbers = #tpu.dot_dimension_numbers<[1], [0], [0], [1], [0, 0, 1, 1], [], []>} : vector<6x8xf32>, vector<8x6xf32>, vector<6x6xf32> -> vector<6x6xf32>
    %cst_181 = arith.constant 0.353553385 : f32
    %419 = vector.broadcast %cst_181 : f32 to vector<6x6xf32>
    %420 = arith.mulf %418, %419 : vector<6x6xf32>
    %421 = arith.addf %420, %11 : vector<6x6xf32>
    %cst_182 = arith.constant dense<0xFF800000> : vector<6xf32>
    %422 = vector.multi_reduction <maximumf>, %421, %cst_182 [1] : vector<6x6xf32> to vector<6xf32>
    %423 = vector.shape_cast %422 : vector<6xf32> to vector<6x1xf32>
    %424 = vector.broadcast %423 : vector<6x1xf32> to vector<6x6xf32>
    %425 = arith.subf %421, %424 : vector<6x6xf32>
    %426 = math.exp %425 : vector<6x6xf32>
    %cst_183 = arith.constant dense<0.000000e+00> : vector<6xf32>
    %427 = vector.multi_reduction <add>, %426, %cst_183 [1] : vector<6x6xf32> to vector<6xf32>
    %428 = vector.shape_cast %427 : vector<6xf32> to vector<6x1xf32>
    %429 = tpu.reciprocal %428 {approx = true} : vector<6x1xf32> -> vector<6x1xf32>
    %430 = vector.broadcast %429 : vector<6x1xf32> to vector<6x6xf32>
    %431 = arith.mulf %426, %430 : vector<6x6xf32>
    %cst_184 = arith.constant dense<0.000000e+00> : vector<6x8xf32>
    %432 = tpu.matmul %431, %416, %cst_184 {dimension_numbers = #tpu.dot_dimension_numbers<[1], [0], [0], [1], [0, 0, 1, 1], [], []>} : vector<6x6xf32>, vector<6x8xf32>, vector<6x8xf32> -> vector<6x8xf32>
    %433 = vector.extract_strided_slice %413 {offsets = [0, 8], sizes = [6, 8], strides = [1, 1]} : vector<6x96xf32> to vector<6x8xf32>
    %434 = vector.extract_strided_slice %413 {offsets = [0, 40], sizes = [6, 8], strides = [1, 1]} : vector<6x96xf32> to vector<6x8xf32>
    %435 = vector.extract_strided_slice %413 {offsets = [0, 72], sizes = [6, 8], strides = [1, 1]} : vector<6x96xf32> to vector<6x8xf32>
    %436 = tpu.transpose %434, [1, 0] : vector<6x8xf32> -> vector<8x6xf32>
    %cst_185 = arith.constant dense<0.000000e+00> : vector<6x6xf32>
    %437 = tpu.matmul %433, %436, %cst_185 {dimension_numbers = #tpu.dot_dimension_numbers<[1], [0], [0], [1], [0, 0, 1, 1], [], []>} : vector<6x8xf32>, vector<8x6xf32>, vector<6x6xf32> -> vector<6x6xf32>
    %cst_186 = arith.constant 0.353553385 : f32
    %438 = vector.broadcast %cst_186 : f32 to vector<6x6xf32>
    %439 = arith.mulf %437, %438 : vector<6x6xf32>
    %440 = arith.addf %439, %11 : vector<6x6xf32>
    %cst_187 = arith.constant dense<0xFF800000> : vector<6xf32>
    %441 = vector.multi_reduction <maximumf>, %440, %cst_187 [1] : vector<6x6xf32> to vector<6xf32>
    %442 = vector.shape_cast %441 : vector<6xf32> to vector<6x1xf32>
    %443 = vector.broadcast %442 : vector<6x1xf32> to vector<6x6xf32>
    %444 = arith.subf %440, %443 : vector<6x6xf32>
    %445 = math.exp %444 : vector<6x6xf32>
    %cst_188 = arith.constant dense<0.000000e+00> : vector<6xf32>
    %446 = vector.multi_reduction <add>, %445, %cst_188 [1] : vector<6x6xf32> to vector<6xf32>
    %447 = vector.shape_cast %446 : vector<6xf32> to vector<6x1xf32>
    %448 = tpu.reciprocal %447 {approx = true} : vector<6x1xf32> -> vector<6x1xf32>
    %449 = vector.broadcast %448 : vector<6x1xf32> to vector<6x6xf32>
    %450 = arith.mulf %445, %449 : vector<6x6xf32>
    %cst_189 = arith.constant dense<0.000000e+00> : vector<6x8xf32>
    %451 = tpu.matmul %450, %435, %cst_189 {dimension_numbers = #tpu.dot_dimension_numbers<[1], [0], [0], [1], [0, 0, 1, 1], [], []>} : vector<6x6xf32>, vector<6x8xf32>, vector<6x8xf32> -> vector<6x8xf32>
    %452 = vector.extract_strided_slice %413 {offsets = [0, 16], sizes = [6, 8], strides = [1, 1]} : vector<6x96xf32> to vector<6x8xf32>
    %453 = vector.extract_strided_slice %413 {offsets = [0, 48], sizes = [6, 8], strides = [1, 1]} : vector<6x96xf32> to vector<6x8xf32>
    %454 = vector.extract_strided_slice %413 {offsets = [0, 80], sizes = [6, 8], strides = [1, 1]} : vector<6x96xf32> to vector<6x8xf32>
    %455 = tpu.transpose %453, [1, 0] : vector<6x8xf32> -> vector<8x6xf32>
    %cst_190 = arith.constant dense<0.000000e+00> : vector<6x6xf32>
    %456 = tpu.matmul %452, %455, %cst_190 {dimension_numbers = #tpu.dot_dimension_numbers<[1], [0], [0], [1], [0, 0, 1, 1], [], []>} : vector<6x8xf32>, vector<8x6xf32>, vector<6x6xf32> -> vector<6x6xf32>
    %cst_191 = arith.constant 0.353553385 : f32
    %457 = vector.broadcast %cst_191 : f32 to vector<6x6xf32>
    %458 = arith.mulf %456, %457 : vector<6x6xf32>
    %459 = arith.addf %458, %11 : vector<6x6xf32>
    %cst_192 = arith.constant dense<0xFF800000> : vector<6xf32>
    %460 = vector.multi_reduction <maximumf>, %459, %cst_192 [1] : vector<6x6xf32> to vector<6xf32>
    %461 = vector.shape_cast %460 : vector<6xf32> to vector<6x1xf32>
    %462 = vector.broadcast %461 : vector<6x1xf32> to vector<6x6xf32>
    %463 = arith.subf %459, %462 : vector<6x6xf32>
    %464 = math.exp %463 : vector<6x6xf32>
    %cst_193 = arith.constant dense<0.000000e+00> : vector<6xf32>
    %465 = vector.multi_reduction <add>, %464, %cst_193 [1] : vector<6x6xf32> to vector<6xf32>
    %466 = vector.shape_cast %465 : vector<6xf32> to vector<6x1xf32>
    %467 = tpu.reciprocal %466 {approx = true} : vector<6x1xf32> -> vector<6x1xf32>
    %468 = vector.broadcast %467 : vector<6x1xf32> to vector<6x6xf32>
    %469 = arith.mulf %464, %468 : vector<6x6xf32>
    %cst_194 = arith.constant dense<0.000000e+00> : vector<6x8xf32>
    %470 = tpu.matmul %469, %454, %cst_194 {dimension_numbers = #tpu.dot_dimension_numbers<[1], [0], [0], [1], [0, 0, 1, 1], [], []>} : vector<6x6xf32>, vector<6x8xf32>, vector<6x8xf32> -> vector<6x8xf32>
    %471 = vector.extract_strided_slice %413 {offsets = [0, 24], sizes = [6, 8], strides = [1, 1]} : vector<6x96xf32> to vector<6x8xf32>
    %472 = vector.extract_strided_slice %413 {offsets = [0, 56], sizes = [6, 8], strides = [1, 1]} : vector<6x96xf32> to vector<6x8xf32>
    %473 = vector.extract_strided_slice %413 {offsets = [0, 88], sizes = [6, 8], strides = [1, 1]} : vector<6x96xf32> to vector<6x8xf32>
    %474 = tpu.transpose %472, [1, 0] : vector<6x8xf32> -> vector<8x6xf32>
    %cst_195 = arith.constant dense<0.000000e+00> : vector<6x6xf32>
    %475 = tpu.matmul %471, %474, %cst_195 {dimension_numbers = #tpu.dot_dimension_numbers<[1], [0], [0], [1], [0, 0, 1, 1], [], []>} : vector<6x8xf32>, vector<8x6xf32>, vector<6x6xf32> -> vector<6x6xf32>
    %cst_196 = arith.constant 0.353553385 : f32
    %476 = vector.broadcast %cst_196 : f32 to vector<6x6xf32>
    %477 = arith.mulf %475, %476 : vector<6x6xf32>
    %478 = arith.addf %477, %11 : vector<6x6xf32>
    %cst_197 = arith.constant dense<0xFF800000> : vector<6xf32>
    %479 = vector.multi_reduction <maximumf>, %478, %cst_197 [1] : vector<6x6xf32> to vector<6xf32>
    %480 = vector.shape_cast %479 : vector<6xf32> to vector<6x1xf32>
    %481 = vector.broadcast %480 : vector<6x1xf32> to vector<6x6xf32>
    %482 = arith.subf %478, %481 : vector<6x6xf32>
    %483 = math.exp %482 : vector<6x6xf32>
    %cst_198 = arith.constant dense<0.000000e+00> : vector<6xf32>
    %484 = vector.multi_reduction <add>, %483, %cst_198 [1] : vector<6x6xf32> to vector<6xf32>
    %485 = vector.shape_cast %484 : vector<6xf32> to vector<6x1xf32>
    %486 = tpu.reciprocal %485 {approx = true} : vector<6x1xf32> -> vector<6x1xf32>
    %487 = vector.broadcast %486 : vector<6x1xf32> to vector<6x6xf32>
    %488 = arith.mulf %483, %487 : vector<6x6xf32>
    %cst_199 = arith.constant dense<0.000000e+00> : vector<6x8xf32>
    %489 = tpu.matmul %488, %473, %cst_199 {dimension_numbers = #tpu.dot_dimension_numbers<[1], [0], [0], [1], [0, 0, 1, 1], [], []>} : vector<6x6xf32>, vector<6x8xf32>, vector<6x8xf32> -> vector<6x8xf32>
    %cst_200 = arith.constant 0.000000e+00 : f32
    %490 = vector.broadcast %cst_200 : f32 to vector<6x32xf32>
    %491 = vector.extract_strided_slice %407 {offsets = [0, 0], sizes = [8, 32], strides = [1, 1]} : vector<32x32xbf16> to vector<8x32xbf16>
    %492 = arith.truncf %432 : vector<6x8xf32> to vector<6x8xbf16>
    %cst_201 = arith.constant dense<0.000000e+00> : vector<6x32xf32>
    %493 = tpu.matmul %492, %491, %cst_201 {dimension_numbers = #tpu.dot_dimension_numbers<[1], [0], [0], [1], [0, 0, 1, 1], [], []>} : vector<6x8xbf16>, vector<8x32xbf16>, vector<6x32xf32> -> vector<6x32xf32>
    %494 = arith.addf %490, %493 : vector<6x32xf32>
    %495 = vector.extract_strided_slice %407 {offsets = [8, 0], sizes = [8, 32], strides = [1, 1]} : vector<32x32xbf16> to vector<8x32xbf16>
    %496 = arith.truncf %451 : vector<6x8xf32> to vector<6x8xbf16>
    %cst_202 = arith.constant dense<0.000000e+00> : vector<6x32xf32>
    %497 = tpu.matmul %496, %495, %cst_202 {dimension_numbers = #tpu.dot_dimension_numbers<[1], [0], [0], [1], [0, 0, 1, 1], [], []>} : vector<6x8xbf16>, vector<8x32xbf16>, vector<6x32xf32> -> vector<6x32xf32>
    %498 = arith.addf %494, %497 : vector<6x32xf32>
    %499 = vector.extract_strided_slice %407 {offsets = [16, 0], sizes = [8, 32], strides = [1, 1]} : vector<32x32xbf16> to vector<8x32xbf16>
    %500 = arith.truncf %470 : vector<6x8xf32> to vector<6x8xbf16>
    %cst_203 = arith.constant dense<0.000000e+00> : vector<6x32xf32>
    %501 = tpu.matmul %500, %499, %cst_203 {dimension_numbers = #tpu.dot_dimension_numbers<[1], [0], [0], [1], [0, 0, 1, 1], [], []>} : vector<6x8xbf16>, vector<8x32xbf16>, vector<6x32xf32> -> vector<6x32xf32>
    %502 = arith.addf %498, %501 : vector<6x32xf32>
    %503 = vector.extract_strided_slice %407 {offsets = [24, 0], sizes = [8, 32], strides = [1, 1]} : vector<32x32xbf16> to vector<8x32xbf16>
    %504 = arith.truncf %489 : vector<6x8xf32> to vector<6x8xbf16>
    %cst_204 = arith.constant dense<0.000000e+00> : vector<6x32xf32>
    %505 = tpu.matmul %504, %503, %cst_204 {dimension_numbers = #tpu.dot_dimension_numbers<[1], [0], [0], [1], [0, 0, 1, 1], [], []>} : vector<6x8xbf16>, vector<8x32xbf16>, vector<6x32xf32> -> vector<6x32xf32>
    %506 = arith.addf %502, %505 : vector<6x32xf32>
    %507 = vector.broadcast %409 : vector<1x32xf32> to vector<6x32xf32>
    %508 = arith.addf %506, %507 : vector<6x32xf32>
    %509 = arith.addf %5, %508 : vector<6x32xf32>
    %c0_205 = arith.constant 0 : index
    %c0_206 = arith.constant 0 : index
    %c0_207 = arith.constant 0 : index
    %510 = vector.load %arg20[%c0_205, %c0_206, %c0_207] : memref<2x1x32xf32, #tpu.memory_space<vmem>>, vector<1x1x32xf32>
    %511 = vector.shape_cast %510 : vector<1x1x32xf32> to vector<1x32xf32>
    %c0_208 = arith.constant 0 : index
    %c0_209 = arith.constant 0 : index
    %c0_210 = arith.constant 0 : index
    %512 = vector.load %arg21[%c0_208, %c0_209, %c0_210] : memref<2x1x32xf32, #tpu.memory_space<vmem>>, vector<1x1x32xf32>
    %513 = vector.shape_cast %512 : vector<1x1x32xf32> to vector<1x32xf32>
    %cst_211 = arith.constant dense<0.000000e+00> : vector<6xf32>
    %514 = vector.multi_reduction <add>, %509, %cst_211 [1] : vector<6x32xf32> to vector<6xf32>
    %515 = vector.shape_cast %514 : vector<6xf32> to vector<6x1xf32>
    %cst_212 = arith.constant 3.200000e+01 : f32
    %516 = vector.broadcast %cst_212 : f32 to vector<6x1xf32>
    %517 = arith.divf %515, %516 : vector<6x1xf32>
    %518 = vector.broadcast %517 : vector<6x1xf32> to vector<6x32xf32>
    %519 = arith.subf %509, %518 : vector<6x32xf32>
    %520 = arith.mulf %519, %519 : vector<6x32xf32>
    %cst_213 = arith.constant dense<0.000000e+00> : vector<6xf32>
    %521 = vector.multi_reduction <add>, %520, %cst_213 [1] : vector<6x32xf32> to vector<6xf32>
    %522 = vector.shape_cast %521 : vector<6xf32> to vector<6x1xf32>
    %cst_214 = arith.constant 3.200000e+01 : f32
    %523 = vector.broadcast %cst_214 : f32 to vector<6x1xf32>
    %524 = arith.divf %522, %523 : vector<6x1xf32>
    %525 = vector.broadcast %517 : vector<6x1xf32> to vector<6x32xf32>
    %526 = arith.subf %509, %525 : vector<6x32xf32>
    %cst_215 = arith.constant 9.99999974E-6 : f32
    %527 = vector.broadcast %cst_215 : f32 to vector<6x1xf32>
    %528 = arith.addf %524, %527 : vector<6x1xf32>
    %529 = math.rsqrt %528 : vector<6x1xf32>
    %530 = vector.broadcast %529 : vector<6x1xf32> to vector<6x32xf32>
    %531 = arith.mulf %526, %530 : vector<6x32xf32>
    %532 = vector.broadcast %511 : vector<1x32xf32> to vector<6x32xf32>
    %533 = arith.mulf %531, %532 : vector<6x32xf32>
    %534 = vector.broadcast %513 : vector<1x32xf32> to vector<6x32xf32>
    %535 = arith.addf %533, %534 : vector<6x32xf32>
    %c0_216 = arith.constant 0 : index
    %c0_217 = arith.constant 0 : index
    %c0_218 = arith.constant 0 : index
    %536 = vector.load %arg22[%c0_216, %c0_217, %c0_218] : memref<2x32x32xbf16, #tpu.memory_space<vmem>>, vector<1x32x32xbf16>
    %537 = vector.shape_cast %536 : vector<1x32x32xbf16> to vector<32x32xbf16>
    %c0_219 = arith.constant 0 : index
    %c0_220 = arith.constant 0 : index
    %c0_221 = arith.constant 0 : index
    %538 = vector.load %arg23[%c0_219, %c0_220, %c0_221] : memref<2x1x32xf32, #tpu.memory_space<vmem>>, vector<1x1x32xf32>
    %539 = vector.shape_cast %538 : vector<1x1x32xf32> to vector<1x32xf32>
    %c0_222 = arith.constant 0 : index
    %c0_223 = arith.constant 0 : index
    %c0_224 = arith.constant 0 : index
    %540 = vector.load %arg24[%c0_222, %c0_223, %c0_224] : memref<2x32x64xbf16, #tpu.memory_space<vmem>>, vector<1x32x64xbf16>
    %541 = vector.shape_cast %540 : vector<1x32x64xbf16> to vector<32x64xbf16>
    %c0_225 = arith.constant 0 : index
    %c0_226 = arith.constant 0 : index
    %c0_227 = arith.constant 0 : index
    %542 = vector.load %arg25[%c0_225, %c0_226, %c0_227] : memref<2x1x64xf32, #tpu.memory_space<vmem>>, vector<1x1x64xf32>
    %543 = vector.shape_cast %542 : vector<1x1x64xf32> to vector<1x64xf32>
    %c0_228 = arith.constant 0 : index
    %c0_229 = arith.constant 0 : index
    %c0_230 = arith.constant 0 : index
    %544 = vector.load %arg26[%c0_228, %c0_229, %c0_230] : memref<2x32x32xbf16, #tpu.memory_space<vmem>>, vector<1x32x32xbf16>
    %545 = vector.shape_cast %544 : vector<1x32x32xbf16> to vector<32x32xbf16>
    %c0_231 = arith.constant 0 : index
    %c0_232 = arith.constant 0 : index
    %c0_233 = arith.constant 0 : index
    %546 = vector.load %arg27[%c0_231, %c0_232, %c0_233] : memref<2x1x32xf32, #tpu.memory_space<vmem>>, vector<1x1x32xf32>
    %547 = vector.shape_cast %546 : vector<1x1x32xf32> to vector<1x32xf32>
    %548 = arith.truncf %535 : vector<6x32xf32> to vector<6x32xbf16>
    %cst_234 = arith.constant dense<0.000000e+00> : vector<6x32xf32>
    %549 = tpu.matmul %548, %537, %cst_234 {dimension_numbers = #tpu.dot_dimension_numbers<[1], [0], [0], [1], [0, 0, 1, 1], [], []>} : vector<6x32xbf16>, vector<32x32xbf16>, vector<6x32xf32> -> vector<6x32xf32>
    %550 = vector.broadcast %539 : vector<1x32xf32> to vector<6x32xf32>
    %551 = arith.addf %549, %550 : vector<6x32xf32>
    %552 = arith.truncf %401 : vector<8x32xf32> to vector<8x32xbf16>
    %cst_235 = arith.constant dense<0.000000e+00> : vector<8x64xf32>
    %553 = tpu.matmul %552, %541, %cst_235 {dimension_numbers = #tpu.dot_dimension_numbers<[1], [0], [0], [1], [0, 0, 1, 1], [], []>} : vector<8x32xbf16>, vector<32x64xbf16>, vector<8x64xf32> -> vector<8x64xf32>
    %554 = vector.broadcast %543 : vector<1x64xf32> to vector<8x64xf32>
    %555 = arith.addf %553, %554 : vector<8x64xf32>
    %556 = vector.extract_strided_slice %551 {offsets = [0, 0], sizes = [6, 8], strides = [1, 1]} : vector<6x32xf32> to vector<6x8xf32>
    %557 = vector.extract_strided_slice %555 {offsets = [0, 0], sizes = [8, 8], strides = [1, 1]} : vector<8x64xf32> to vector<8x8xf32>
    %558 = vector.extract_strided_slice %555 {offsets = [0, 32], sizes = [8, 8], strides = [1, 1]} : vector<8x64xf32> to vector<8x8xf32>
    %559 = tpu.transpose %557, [1, 0] : vector<8x8xf32> -> vector<8x8xf32>
    %cst_236 = arith.constant dense<0.000000e+00> : vector<6x8xf32>
    %560 = tpu.matmul %556, %559, %cst_236 {dimension_numbers = #tpu.dot_dimension_numbers<[1], [0], [0], [1], [0, 0, 1, 1], [], []>} : vector<6x8xf32>, vector<8x8xf32>, vector<6x8xf32> -> vector<6x8xf32>
    %cst_237 = arith.constant 0.353553385 : f32
    %561 = vector.broadcast %cst_237 : f32 to vector<6x8xf32>
    %562 = arith.mulf %560, %561 : vector<6x8xf32>
    %cst_238 = arith.constant dense<0xFF800000> : vector<6xf32>
    %563 = vector.multi_reduction <maximumf>, %562, %cst_238 [1] : vector<6x8xf32> to vector<6xf32>
    %564 = vector.shape_cast %563 : vector<6xf32> to vector<6x1xf32>
    %565 = vector.broadcast %564 : vector<6x1xf32> to vector<6x8xf32>
    %566 = arith.subf %562, %565 : vector<6x8xf32>
    %567 = math.exp %566 : vector<6x8xf32>
    %cst_239 = arith.constant dense<0.000000e+00> : vector<6xf32>
    %568 = vector.multi_reduction <add>, %567, %cst_239 [1] : vector<6x8xf32> to vector<6xf32>
    %569 = vector.shape_cast %568 : vector<6xf32> to vector<6x1xf32>
    %570 = tpu.reciprocal %569 {approx = true} : vector<6x1xf32> -> vector<6x1xf32>
    %571 = vector.broadcast %570 : vector<6x1xf32> to vector<6x8xf32>
    %572 = arith.mulf %567, %571 : vector<6x8xf32>
    %cst_240 = arith.constant dense<0.000000e+00> : vector<6x8xf32>
    %573 = tpu.matmul %572, %558, %cst_240 {dimension_numbers = #tpu.dot_dimension_numbers<[1], [0], [0], [1], [0, 0, 1, 1], [], []>} : vector<6x8xf32>, vector<8x8xf32>, vector<6x8xf32> -> vector<6x8xf32>
    %574 = vector.extract_strided_slice %551 {offsets = [0, 8], sizes = [6, 8], strides = [1, 1]} : vector<6x32xf32> to vector<6x8xf32>
    %575 = vector.extract_strided_slice %555 {offsets = [0, 8], sizes = [8, 8], strides = [1, 1]} : vector<8x64xf32> to vector<8x8xf32>
    %576 = vector.extract_strided_slice %555 {offsets = [0, 40], sizes = [8, 8], strides = [1, 1]} : vector<8x64xf32> to vector<8x8xf32>
    %577 = tpu.transpose %575, [1, 0] : vector<8x8xf32> -> vector<8x8xf32>
    %cst_241 = arith.constant dense<0.000000e+00> : vector<6x8xf32>
    %578 = tpu.matmul %574, %577, %cst_241 {dimension_numbers = #tpu.dot_dimension_numbers<[1], [0], [0], [1], [0, 0, 1, 1], [], []>} : vector<6x8xf32>, vector<8x8xf32>, vector<6x8xf32> -> vector<6x8xf32>
    %cst_242 = arith.constant 0.353553385 : f32
    %579 = vector.broadcast %cst_242 : f32 to vector<6x8xf32>
    %580 = arith.mulf %578, %579 : vector<6x8xf32>
    %cst_243 = arith.constant dense<0xFF800000> : vector<6xf32>
    %581 = vector.multi_reduction <maximumf>, %580, %cst_243 [1] : vector<6x8xf32> to vector<6xf32>
    %582 = vector.shape_cast %581 : vector<6xf32> to vector<6x1xf32>
    %583 = vector.broadcast %582 : vector<6x1xf32> to vector<6x8xf32>
    %584 = arith.subf %580, %583 : vector<6x8xf32>
    %585 = math.exp %584 : vector<6x8xf32>
    %cst_244 = arith.constant dense<0.000000e+00> : vector<6xf32>
    %586 = vector.multi_reduction <add>, %585, %cst_244 [1] : vector<6x8xf32> to vector<6xf32>
    %587 = vector.shape_cast %586 : vector<6xf32> to vector<6x1xf32>
    %588 = tpu.reciprocal %587 {approx = true} : vector<6x1xf32> -> vector<6x1xf32>
    %589 = vector.broadcast %588 : vector<6x1xf32> to vector<6x8xf32>
    %590 = arith.mulf %585, %589 : vector<6x8xf32>
    %cst_245 = arith.constant dense<0.000000e+00> : vector<6x8xf32>
    %591 = tpu.matmul %590, %576, %cst_245 {dimension_numbers = #tpu.dot_dimension_numbers<[1], [0], [0], [1], [0, 0, 1, 1], [], []>} : vector<6x8xf32>, vector<8x8xf32>, vector<6x8xf32> -> vector<6x8xf32>
    %592 = vector.extract_strided_slice %551 {offsets = [0, 16], sizes = [6, 8], strides = [1, 1]} : vector<6x32xf32> to vector<6x8xf32>
    %593 = vector.extract_strided_slice %555 {offsets = [0, 16], sizes = [8, 8], strides = [1, 1]} : vector<8x64xf32> to vector<8x8xf32>
    %594 = vector.extract_strided_slice %555 {offsets = [0, 48], sizes = [8, 8], strides = [1, 1]} : vector<8x64xf32> to vector<8x8xf32>
    %595 = tpu.transpose %593, [1, 0] : vector<8x8xf32> -> vector<8x8xf32>
    %cst_246 = arith.constant dense<0.000000e+00> : vector<6x8xf32>
    %596 = tpu.matmul %592, %595, %cst_246 {dimension_numbers = #tpu.dot_dimension_numbers<[1], [0], [0], [1], [0, 0, 1, 1], [], []>} : vector<6x8xf32>, vector<8x8xf32>, vector<6x8xf32> -> vector<6x8xf32>
    %cst_247 = arith.constant 0.353553385 : f32
    %597 = vector.broadcast %cst_247 : f32 to vector<6x8xf32>
    %598 = arith.mulf %596, %597 : vector<6x8xf32>
    %cst_248 = arith.constant dense<0xFF800000> : vector<6xf32>
    %599 = vector.multi_reduction <maximumf>, %598, %cst_248 [1] : vector<6x8xf32> to vector<6xf32>
    %600 = vector.shape_cast %599 : vector<6xf32> to vector<6x1xf32>
    %601 = vector.broadcast %600 : vector<6x1xf32> to vector<6x8xf32>
    %602 = arith.subf %598, %601 : vector<6x8xf32>
    %603 = math.exp %602 : vector<6x8xf32>
    %cst_249 = arith.constant dense<0.000000e+00> : vector<6xf32>
    %604 = vector.multi_reduction <add>, %603, %cst_249 [1] : vector<6x8xf32> to vector<6xf32>
    %605 = vector.shape_cast %604 : vector<6xf32> to vector<6x1xf32>
    %606 = tpu.reciprocal %605 {approx = true} : vector<6x1xf32> -> vector<6x1xf32>
    %607 = vector.broadcast %606 : vector<6x1xf32> to vector<6x8xf32>
    %608 = arith.mulf %603, %607 : vector<6x8xf32>
    %cst_250 = arith.constant dense<0.000000e+00> : vector<6x8xf32>
    %609 = tpu.matmul %608, %594, %cst_250 {dimension_numbers = #tpu.dot_dimension_numbers<[1], [0], [0], [1], [0, 0, 1, 1], [], []>} : vector<6x8xf32>, vector<8x8xf32>, vector<6x8xf32> -> vector<6x8xf32>
    %610 = vector.extract_strided_slice %551 {offsets = [0, 24], sizes = [6, 8], strides = [1, 1]} : vector<6x32xf32> to vector<6x8xf32>
    %611 = vector.extract_strided_slice %555 {offsets = [0, 24], sizes = [8, 8], strides = [1, 1]} : vector<8x64xf32> to vector<8x8xf32>
    %612 = vector.extract_strided_slice %555 {offsets = [0, 56], sizes = [8, 8], strides = [1, 1]} : vector<8x64xf32> to vector<8x8xf32>
    %613 = tpu.transpose %611, [1, 0] : vector<8x8xf32> -> vector<8x8xf32>
    %cst_251 = arith.constant dense<0.000000e+00> : vector<6x8xf32>
    %614 = tpu.matmul %610, %613, %cst_251 {dimension_numbers = #tpu.dot_dimension_numbers<[1], [0], [0], [1], [0, 0, 1, 1], [], []>} : vector<6x8xf32>, vector<8x8xf32>, vector<6x8xf32> -> vector<6x8xf32>
    %cst_252 = arith.constant 0.353553385 : f32
    %615 = vector.broadcast %cst_252 : f32 to vector<6x8xf32>
    %616 = arith.mulf %614, %615 : vector<6x8xf32>
    %cst_253 = arith.constant dense<0xFF800000> : vector<6xf32>
    %617 = vector.multi_reduction <maximumf>, %616, %cst_253 [1] : vector<6x8xf32> to vector<6xf32>
    %618 = vector.shape_cast %617 : vector<6xf32> to vector<6x1xf32>
    %619 = vector.broadcast %618 : vector<6x1xf32> to vector<6x8xf32>
    %620 = arith.subf %616, %619 : vector<6x8xf32>
    %621 = math.exp %620 : vector<6x8xf32>
    %cst_254 = arith.constant dense<0.000000e+00> : vector<6xf32>
    %622 = vector.multi_reduction <add>, %621, %cst_254 [1] : vector<6x8xf32> to vector<6xf32>
    %623 = vector.shape_cast %622 : vector<6xf32> to vector<6x1xf32>
    %624 = tpu.reciprocal %623 {approx = true} : vector<6x1xf32> -> vector<6x1xf32>
    %625 = vector.broadcast %624 : vector<6x1xf32> to vector<6x8xf32>
    %626 = arith.mulf %621, %625 : vector<6x8xf32>
    %cst_255 = arith.constant dense<0.000000e+00> : vector<6x8xf32>
    %627 = tpu.matmul %626, %612, %cst_255 {dimension_numbers = #tpu.dot_dimension_numbers<[1], [0], [0], [1], [0, 0, 1, 1], [], []>} : vector<6x8xf32>, vector<8x8xf32>, vector<6x8xf32> -> vector<6x8xf32>
    %cst_256 = arith.constant 0.000000e+00 : f32
    %628 = vector.broadcast %cst_256 : f32 to vector<6x32xf32>
    %629 = vector.extract_strided_slice %545 {offsets = [0, 0], sizes = [8, 32], strides = [1, 1]} : vector<32x32xbf16> to vector<8x32xbf16>
    %630 = arith.truncf %573 : vector<6x8xf32> to vector<6x8xbf16>
    %cst_257 = arith.constant dense<0.000000e+00> : vector<6x32xf32>
    %631 = tpu.matmul %630, %629, %cst_257 {dimension_numbers = #tpu.dot_dimension_numbers<[1], [0], [0], [1], [0, 0, 1, 1], [], []>} : vector<6x8xbf16>, vector<8x32xbf16>, vector<6x32xf32> -> vector<6x32xf32>
    %632 = arith.addf %628, %631 : vector<6x32xf32>
    %633 = vector.extract_strided_slice %545 {offsets = [8, 0], sizes = [8, 32], strides = [1, 1]} : vector<32x32xbf16> to vector<8x32xbf16>
    %634 = arith.truncf %591 : vector<6x8xf32> to vector<6x8xbf16>
    %cst_258 = arith.constant dense<0.000000e+00> : vector<6x32xf32>
    %635 = tpu.matmul %634, %633, %cst_258 {dimension_numbers = #tpu.dot_dimension_numbers<[1], [0], [0], [1], [0, 0, 1, 1], [], []>} : vector<6x8xbf16>, vector<8x32xbf16>, vector<6x32xf32> -> vector<6x32xf32>
    %636 = arith.addf %632, %635 : vector<6x32xf32>
    %637 = vector.extract_strided_slice %545 {offsets = [16, 0], sizes = [8, 32], strides = [1, 1]} : vector<32x32xbf16> to vector<8x32xbf16>
    %638 = arith.truncf %609 : vector<6x8xf32> to vector<6x8xbf16>
    %cst_259 = arith.constant dense<0.000000e+00> : vector<6x32xf32>
    %639 = tpu.matmul %638, %637, %cst_259 {dimension_numbers = #tpu.dot_dimension_numbers<[1], [0], [0], [1], [0, 0, 1, 1], [], []>} : vector<6x8xbf16>, vector<8x32xbf16>, vector<6x32xf32> -> vector<6x32xf32>
    %640 = arith.addf %636, %639 : vector<6x32xf32>
    %641 = vector.extract_strided_slice %545 {offsets = [24, 0], sizes = [8, 32], strides = [1, 1]} : vector<32x32xbf16> to vector<8x32xbf16>
    %642 = arith.truncf %627 : vector<6x8xf32> to vector<6x8xbf16>
    %cst_260 = arith.constant dense<0.000000e+00> : vector<6x32xf32>
    %643 = tpu.matmul %642, %641, %cst_260 {dimension_numbers = #tpu.dot_dimension_numbers<[1], [0], [0], [1], [0, 0, 1, 1], [], []>} : vector<6x8xbf16>, vector<8x32xbf16>, vector<6x32xf32> -> vector<6x32xf32>
    %644 = arith.addf %640, %643 : vector<6x32xf32>
    %645 = vector.broadcast %547 : vector<1x32xf32> to vector<6x32xf32>
    %646 = arith.addf %644, %645 : vector<6x32xf32>
    %647 = arith.addf %535, %646 : vector<6x32xf32>
    %c0_261 = arith.constant 0 : index
    %c0_262 = arith.constant 0 : index
    %c0_263 = arith.constant 0 : index
    %648 = vector.load %arg28[%c0_261, %c0_262, %c0_263] : memref<2x1x32xf32, #tpu.memory_space<vmem>>, vector<1x1x32xf32>
    %649 = vector.shape_cast %648 : vector<1x1x32xf32> to vector<1x32xf32>
    %c0_264 = arith.constant 0 : index
    %c0_265 = arith.constant 0 : index
    %c0_266 = arith.constant 0 : index
    %650 = vector.load %arg29[%c0_264, %c0_265, %c0_266] : memref<2x1x32xf32, #tpu.memory_space<vmem>>, vector<1x1x32xf32>
    %651 = vector.shape_cast %650 : vector<1x1x32xf32> to vector<1x32xf32>
    %cst_267 = arith.constant dense<0.000000e+00> : vector<6xf32>
    %652 = vector.multi_reduction <add>, %647, %cst_267 [1] : vector<6x32xf32> to vector<6xf32>
    %653 = vector.shape_cast %652 : vector<6xf32> to vector<6x1xf32>
    %cst_268 = arith.constant 3.200000e+01 : f32
    %654 = vector.broadcast %cst_268 : f32 to vector<6x1xf32>
    %655 = arith.divf %653, %654 : vector<6x1xf32>
    %656 = vector.broadcast %655 : vector<6x1xf32> to vector<6x32xf32>
    %657 = arith.subf %647, %656 : vector<6x32xf32>
    %658 = arith.mulf %657, %657 : vector<6x32xf32>
    %cst_269 = arith.constant dense<0.000000e+00> : vector<6xf32>
    %659 = vector.multi_reduction <add>, %658, %cst_269 [1] : vector<6x32xf32> to vector<6xf32>
    %660 = vector.shape_cast %659 : vector<6xf32> to vector<6x1xf32>
    %cst_270 = arith.constant 3.200000e+01 : f32
    %661 = vector.broadcast %cst_270 : f32 to vector<6x1xf32>
    %662 = arith.divf %660, %661 : vector<6x1xf32>
    %663 = vector.broadcast %655 : vector<6x1xf32> to vector<6x32xf32>
    %664 = arith.subf %647, %663 : vector<6x32xf32>
    %cst_271 = arith.constant 9.99999974E-6 : f32
    %665 = vector.broadcast %cst_271 : f32 to vector<6x1xf32>
    %666 = arith.addf %662, %665 : vector<6x1xf32>
    %667 = math.rsqrt %666 : vector<6x1xf32>
    %668 = vector.broadcast %667 : vector<6x1xf32> to vector<6x32xf32>
    %669 = arith.mulf %664, %668 : vector<6x32xf32>
    %670 = vector.broadcast %649 : vector<1x32xf32> to vector<6x32xf32>
    %671 = arith.mulf %669, %670 : vector<6x32xf32>
    %672 = vector.broadcast %651 : vector<1x32xf32> to vector<6x32xf32>
    %673 = arith.addf %671, %672 : vector<6x32xf32>
    %c0_272 = arith.constant 0 : index
    %c0_273 = arith.constant 0 : index
    %c0_274 = arith.constant 0 : index
    %674 = vector.load %arg30[%c0_272, %c0_273, %c0_274] : memref<2x32x64xbf16, #tpu.memory_space<vmem>>, vector<1x32x64xbf16>
    %675 = vector.shape_cast %674 : vector<1x32x64xbf16> to vector<32x64xbf16>
    %c0_275 = arith.constant 0 : index
    %c0_276 = arith.constant 0 : index
    %c0_277 = arith.constant 0 : index
    %676 = vector.load %arg31[%c0_275, %c0_276, %c0_277] : memref<2x1x64xf32, #tpu.memory_space<vmem>>, vector<1x1x64xf32>
    %677 = vector.shape_cast %676 : vector<1x1x64xf32> to vector<1x64xf32>
    %c0_278 = arith.constant 0 : index
    %c0_279 = arith.constant 0 : index
    %c0_280 = arith.constant 0 : index
    %678 = vector.load %arg32[%c0_278, %c0_279, %c0_280] : memref<2x64x32xbf16, #tpu.memory_space<vmem>>, vector<1x64x32xbf16>
    %679 = vector.shape_cast %678 : vector<1x64x32xbf16> to vector<64x32xbf16>
    %c0_281 = arith.constant 0 : index
    %c0_282 = arith.constant 0 : index
    %c0_283 = arith.constant 0 : index
    %680 = vector.load %arg33[%c0_281, %c0_282, %c0_283] : memref<2x1x32xf32, #tpu.memory_space<vmem>>, vector<1x1x32xf32>
    %681 = vector.shape_cast %680 : vector<1x1x32xf32> to vector<1x32xf32>
    %682 = arith.truncf %673 : vector<6x32xf32> to vector<6x32xbf16>
    %cst_284 = arith.constant dense<0.000000e+00> : vector<6x64xf32>
    %683 = tpu.matmul %682, %675, %cst_284 {dimension_numbers = #tpu.dot_dimension_numbers<[1], [0], [0], [1], [0, 0, 1, 1], [], []>} : vector<6x32xbf16>, vector<32x64xbf16>, vector<6x64xf32> -> vector<6x64xf32>
    %684 = vector.broadcast %677 : vector<1x64xf32> to vector<6x64xf32>
    %685 = arith.addf %683, %684 : vector<6x64xf32>
    %cst_285 = arith.constant 0.000000e+00 : f32
    %686 = vector.broadcast %cst_285 : f32 to vector<6x64xf32>
    %687 = arith.maximumf %685, %686 : vector<6x64xf32>
    %688 = arith.truncf %687 : vector<6x64xf32> to vector<6x64xbf16>
    %cst_286 = arith.constant dense<0.000000e+00> : vector<6x32xf32>
    %689 = tpu.matmul %688, %679, %cst_286 {dimension_numbers = #tpu.dot_dimension_numbers<[1], [0], [0], [1], [0, 0, 1, 1], [], []>} : vector<6x64xbf16>, vector<64x32xbf16>, vector<6x32xf32> -> vector<6x32xf32>
    %690 = vector.broadcast %681 : vector<1x32xf32> to vector<6x32xf32>
    %691 = arith.addf %689, %690 : vector<6x32xf32>
    %692 = arith.addf %673, %691 : vector<6x32xf32>
    %c0_287 = arith.constant 0 : index
    %c0_288 = arith.constant 0 : index
    %c0_289 = arith.constant 0 : index
    %693 = vector.load %arg34[%c0_287, %c0_288, %c0_289] : memref<2x1x32xf32, #tpu.memory_space<vmem>>, vector<1x1x32xf32>
    %694 = vector.shape_cast %693 : vector<1x1x32xf32> to vector<1x32xf32>
    %c0_290 = arith.constant 0 : index
    %c0_291 = arith.constant 0 : index
    %c0_292 = arith.constant 0 : index
    %695 = vector.load %arg35[%c0_290, %c0_291, %c0_292] : memref<2x1x32xf32, #tpu.memory_space<vmem>>, vector<1x1x32xf32>
    %696 = vector.shape_cast %695 : vector<1x1x32xf32> to vector<1x32xf32>
    %cst_293 = arith.constant dense<0.000000e+00> : vector<6xf32>
    %697 = vector.multi_reduction <add>, %692, %cst_293 [1] : vector<6x32xf32> to vector<6xf32>
    %698 = vector.shape_cast %697 : vector<6xf32> to vector<6x1xf32>
    %cst_294 = arith.constant 3.200000e+01 : f32
    %699 = vector.broadcast %cst_294 : f32 to vector<6x1xf32>
    %700 = arith.divf %698, %699 : vector<6x1xf32>
    %701 = vector.broadcast %700 : vector<6x1xf32> to vector<6x32xf32>
    %702 = arith.subf %692, %701 : vector<6x32xf32>
    %703 = arith.mulf %702, %702 : vector<6x32xf32>
    %cst_295 = arith.constant dense<0.000000e+00> : vector<6xf32>
    %704 = vector.multi_reduction <add>, %703, %cst_295 [1] : vector<6x32xf32> to vector<6xf32>
    %705 = vector.shape_cast %704 : vector<6xf32> to vector<6x1xf32>
    %cst_296 = arith.constant 3.200000e+01 : f32
    %706 = vector.broadcast %cst_296 : f32 to vector<6x1xf32>
    %707 = arith.divf %705, %706 : vector<6x1xf32>
    %708 = vector.broadcast %700 : vector<6x1xf32> to vector<6x32xf32>
    %709 = arith.subf %692, %708 : vector<6x32xf32>
    %cst_297 = arith.constant 9.99999974E-6 : f32
    %710 = vector.broadcast %cst_297 : f32 to vector<6x1xf32>
    %711 = arith.addf %707, %710 : vector<6x1xf32>
    %712 = math.rsqrt %711 : vector<6x1xf32>
    %713 = vector.broadcast %712 : vector<6x1xf32> to vector<6x32xf32>
    %714 = arith.mulf %709, %713 : vector<6x32xf32>
    %715 = vector.broadcast %694 : vector<1x32xf32> to vector<6x32xf32>
    %716 = arith.mulf %714, %715 : vector<6x32xf32>
    %717 = vector.broadcast %696 : vector<1x32xf32> to vector<6x32xf32>
    %718 = arith.addf %716, %717 : vector<6x32xf32>
    %c1_298 = arith.constant 1 : index
    %c0_299 = arith.constant 0 : index
    %c0_300 = arith.constant 0 : index
    %719 = vector.load %arg16[%c1_298, %c0_299, %c0_300] : memref<2x32x96xbf16, #tpu.memory_space<vmem>>, vector<1x32x96xbf16>
    %720 = vector.shape_cast %719 : vector<1x32x96xbf16> to vector<32x96xbf16>
    %c1_301 = arith.constant 1 : index
    %c0_302 = arith.constant 0 : index
    %c0_303 = arith.constant 0 : index
    %721 = vector.load %arg17[%c1_301, %c0_302, %c0_303] : memref<2x1x96xf32, #tpu.memory_space<vmem>>, vector<1x1x96xf32>
    %722 = vector.shape_cast %721 : vector<1x1x96xf32> to vector<1x96xf32>
    %c1_304 = arith.constant 1 : index
    %c0_305 = arith.constant 0 : index
    %c0_306 = arith.constant 0 : index
    %723 = vector.load %arg18[%c1_304, %c0_305, %c0_306] : memref<2x32x32xbf16, #tpu.memory_space<vmem>>, vector<1x32x32xbf16>
    %724 = vector.shape_cast %723 : vector<1x32x32xbf16> to vector<32x32xbf16>
    %c1_307 = arith.constant 1 : index
    %c0_308 = arith.constant 0 : index
    %c0_309 = arith.constant 0 : index
    %725 = vector.load %arg19[%c1_307, %c0_308, %c0_309] : memref<2x1x32xf32, #tpu.memory_space<vmem>>, vector<1x1x32xf32>
    %726 = vector.shape_cast %725 : vector<1x1x32xf32> to vector<1x32xf32>
    %727 = arith.truncf %718 : vector<6x32xf32> to vector<6x32xbf16>
    %cst_310 = arith.constant dense<0.000000e+00> : vector<6x96xf32>
    %728 = tpu.matmul %727, %720, %cst_310 {dimension_numbers = #tpu.dot_dimension_numbers<[1], [0], [0], [1], [0, 0, 1, 1], [], []>} : vector<6x32xbf16>, vector<32x96xbf16>, vector<6x96xf32> -> vector<6x96xf32>
    %729 = vector.broadcast %722 : vector<1x96xf32> to vector<6x96xf32>
    %730 = arith.addf %728, %729 : vector<6x96xf32>
    %731 = vector.extract_strided_slice %730 {offsets = [0, 0], sizes = [6, 8], strides = [1, 1]} : vector<6x96xf32> to vector<6x8xf32>
    %732 = vector.extract_strided_slice %730 {offsets = [0, 32], sizes = [6, 8], strides = [1, 1]} : vector<6x96xf32> to vector<6x8xf32>
    %733 = vector.extract_strided_slice %730 {offsets = [0, 64], sizes = [6, 8], strides = [1, 1]} : vector<6x96xf32> to vector<6x8xf32>
    %734 = tpu.transpose %732, [1, 0] : vector<6x8xf32> -> vector<8x6xf32>
    %cst_311 = arith.constant dense<0.000000e+00> : vector<6x6xf32>
    %735 = tpu.matmul %731, %734, %cst_311 {dimension_numbers = #tpu.dot_dimension_numbers<[1], [0], [0], [1], [0, 0, 1, 1], [], []>} : vector<6x8xf32>, vector<8x6xf32>, vector<6x6xf32> -> vector<6x6xf32>
    %cst_312 = arith.constant 0.353553385 : f32
    %736 = vector.broadcast %cst_312 : f32 to vector<6x6xf32>
    %737 = arith.mulf %735, %736 : vector<6x6xf32>
    %738 = arith.addf %737, %11 : vector<6x6xf32>
    %cst_313 = arith.constant dense<0xFF800000> : vector<6xf32>
    %739 = vector.multi_reduction <maximumf>, %738, %cst_313 [1] : vector<6x6xf32> to vector<6xf32>
    %740 = vector.shape_cast %739 : vector<6xf32> to vector<6x1xf32>
    %741 = vector.broadcast %740 : vector<6x1xf32> to vector<6x6xf32>
    %742 = arith.subf %738, %741 : vector<6x6xf32>
    %743 = math.exp %742 : vector<6x6xf32>
    %cst_314 = arith.constant dense<0.000000e+00> : vector<6xf32>
    %744 = vector.multi_reduction <add>, %743, %cst_314 [1] : vector<6x6xf32> to vector<6xf32>
    %745 = vector.shape_cast %744 : vector<6xf32> to vector<6x1xf32>
    %746 = tpu.reciprocal %745 {approx = true} : vector<6x1xf32> -> vector<6x1xf32>
    %747 = vector.broadcast %746 : vector<6x1xf32> to vector<6x6xf32>
    %748 = arith.mulf %743, %747 : vector<6x6xf32>
    %cst_315 = arith.constant dense<0.000000e+00> : vector<6x8xf32>
    %749 = tpu.matmul %748, %733, %cst_315 {dimension_numbers = #tpu.dot_dimension_numbers<[1], [0], [0], [1], [0, 0, 1, 1], [], []>} : vector<6x6xf32>, vector<6x8xf32>, vector<6x8xf32> -> vector<6x8xf32>
    %750 = vector.extract_strided_slice %730 {offsets = [0, 8], sizes = [6, 8], strides = [1, 1]} : vector<6x96xf32> to vector<6x8xf32>
    %751 = vector.extract_strided_slice %730 {offsets = [0, 40], sizes = [6, 8], strides = [1, 1]} : vector<6x96xf32> to vector<6x8xf32>
    %752 = vector.extract_strided_slice %730 {offsets = [0, 72], sizes = [6, 8], strides = [1, 1]} : vector<6x96xf32> to vector<6x8xf32>
    %753 = tpu.transpose %751, [1, 0] : vector<6x8xf32> -> vector<8x6xf32>
    %cst_316 = arith.constant dense<0.000000e+00> : vector<6x6xf32>
    %754 = tpu.matmul %750, %753, %cst_316 {dimension_numbers = #tpu.dot_dimension_numbers<[1], [0], [0], [1], [0, 0, 1, 1], [], []>} : vector<6x8xf32>, vector<8x6xf32>, vector<6x6xf32> -> vector<6x6xf32>
    %cst_317 = arith.constant 0.353553385 : f32
    %755 = vector.broadcast %cst_317 : f32 to vector<6x6xf32>
    %756 = arith.mulf %754, %755 : vector<6x6xf32>
    %757 = arith.addf %756, %11 : vector<6x6xf32>
    %cst_318 = arith.constant dense<0xFF800000> : vector<6xf32>
    %758 = vector.multi_reduction <maximumf>, %757, %cst_318 [1] : vector<6x6xf32> to vector<6xf32>
    %759 = vector.shape_cast %758 : vector<6xf32> to vector<6x1xf32>
    %760 = vector.broadcast %759 : vector<6x1xf32> to vector<6x6xf32>
    %761 = arith.subf %757, %760 : vector<6x6xf32>
    %762 = math.exp %761 : vector<6x6xf32>
    %cst_319 = arith.constant dense<0.000000e+00> : vector<6xf32>
    %763 = vector.multi_reduction <add>, %762, %cst_319 [1] : vector<6x6xf32> to vector<6xf32>
    %764 = vector.shape_cast %763 : vector<6xf32> to vector<6x1xf32>
    %765 = tpu.reciprocal %764 {approx = true} : vector<6x1xf32> -> vector<6x1xf32>
    %766 = vector.broadcast %765 : vector<6x1xf32> to vector<6x6xf32>
    %767 = arith.mulf %762, %766 : vector<6x6xf32>
    %cst_320 = arith.constant dense<0.000000e+00> : vector<6x8xf32>
    %768 = tpu.matmul %767, %752, %cst_320 {dimension_numbers = #tpu.dot_dimension_numbers<[1], [0], [0], [1], [0, 0, 1, 1], [], []>} : vector<6x6xf32>, vector<6x8xf32>, vector<6x8xf32> -> vector<6x8xf32>
    %769 = vector.extract_strided_slice %730 {offsets = [0, 16], sizes = [6, 8], strides = [1, 1]} : vector<6x96xf32> to vector<6x8xf32>
    %770 = vector.extract_strided_slice %730 {offsets = [0, 48], sizes = [6, 8], strides = [1, 1]} : vector<6x96xf32> to vector<6x8xf32>
    %771 = vector.extract_strided_slice %730 {offsets = [0, 80], sizes = [6, 8], strides = [1, 1]} : vector<6x96xf32> to vector<6x8xf32>
    %772 = tpu.transpose %770, [1, 0] : vector<6x8xf32> -> vector<8x6xf32>
    %cst_321 = arith.constant dense<0.000000e+00> : vector<6x6xf32>
    %773 = tpu.matmul %769, %772, %cst_321 {dimension_numbers = #tpu.dot_dimension_numbers<[1], [0], [0], [1], [0, 0, 1, 1], [], []>} : vector<6x8xf32>, vector<8x6xf32>, vector<6x6xf32> -> vector<6x6xf32>
    %cst_322 = arith.constant 0.353553385 : f32
    %774 = vector.broadcast %cst_322 : f32 to vector<6x6xf32>
    %775 = arith.mulf %773, %774 : vector<6x6xf32>
    %776 = arith.addf %775, %11 : vector<6x6xf32>
    %cst_323 = arith.constant dense<0xFF800000> : vector<6xf32>
    %777 = vector.multi_reduction <maximumf>, %776, %cst_323 [1] : vector<6x6xf32> to vector<6xf32>
    %778 = vector.shape_cast %777 : vector<6xf32> to vector<6x1xf32>
    %779 = vector.broadcast %778 : vector<6x1xf32> to vector<6x6xf32>
    %780 = arith.subf %776, %779 : vector<6x6xf32>
    %781 = math.exp %780 : vector<6x6xf32>
    %cst_324 = arith.constant dense<0.000000e+00> : vector<6xf32>
    %782 = vector.multi_reduction <add>, %781, %cst_324 [1] : vector<6x6xf32> to vector<6xf32>
    %783 = vector.shape_cast %782 : vector<6xf32> to vector<6x1xf32>
    %784 = tpu.reciprocal %783 {approx = true} : vector<6x1xf32> -> vector<6x1xf32>
    %785 = vector.broadcast %784 : vector<6x1xf32> to vector<6x6xf32>
    %786 = arith.mulf %781, %785 : vector<6x6xf32>
    %cst_325 = arith.constant dense<0.000000e+00> : vector<6x8xf32>
    %787 = tpu.matmul %786, %771, %cst_325 {dimension_numbers = #tpu.dot_dimension_numbers<[1], [0], [0], [1], [0, 0, 1, 1], [], []>} : vector<6x6xf32>, vector<6x8xf32>, vector<6x8xf32> -> vector<6x8xf32>
    %788 = vector.extract_strided_slice %730 {offsets = [0, 24], sizes = [6, 8], strides = [1, 1]} : vector<6x96xf32> to vector<6x8xf32>
    %789 = vector.extract_strided_slice %730 {offsets = [0, 56], sizes = [6, 8], strides = [1, 1]} : vector<6x96xf32> to vector<6x8xf32>
    %790 = vector.extract_strided_slice %730 {offsets = [0, 88], sizes = [6, 8], strides = [1, 1]} : vector<6x96xf32> to vector<6x8xf32>
    %791 = tpu.transpose %789, [1, 0] : vector<6x8xf32> -> vector<8x6xf32>
    %cst_326 = arith.constant dense<0.000000e+00> : vector<6x6xf32>
    %792 = tpu.matmul %788, %791, %cst_326 {dimension_numbers = #tpu.dot_dimension_numbers<[1], [0], [0], [1], [0, 0, 1, 1], [], []>} : vector<6x8xf32>, vector<8x6xf32>, vector<6x6xf32> -> vector<6x6xf32>
    %cst_327 = arith.constant 0.353553385 : f32
    %793 = vector.broadcast %cst_327 : f32 to vector<6x6xf32>
    %794 = arith.mulf %792, %793 : vector<6x6xf32>
    %795 = arith.addf %794, %11 : vector<6x6xf32>
    %cst_328 = arith.constant dense<0xFF800000> : vector<6xf32>
    %796 = vector.multi_reduction <maximumf>, %795, %cst_328 [1] : vector<6x6xf32> to vector<6xf32>
    %797 = vector.shape_cast %796 : vector<6xf32> to vector<6x1xf32>
    %798 = vector.broadcast %797 : vector<6x1xf32> to vector<6x6xf32>
    %799 = arith.subf %795, %798 : vector<6x6xf32>
    %800 = math.exp %799 : vector<6x6xf32>
    %cst_329 = arith.constant dense<0.000000e+00> : vector<6xf32>
    %801 = vector.multi_reduction <add>, %800, %cst_329 [1] : vector<6x6xf32> to vector<6xf32>
    %802 = vector.shape_cast %801 : vector<6xf32> to vector<6x1xf32>
    %803 = tpu.reciprocal %802 {approx = true} : vector<6x1xf32> -> vector<6x1xf32>
    %804 = vector.broadcast %803 : vector<6x1xf32> to vector<6x6xf32>
    %805 = arith.mulf %800, %804 : vector<6x6xf32>
    %cst_330 = arith.constant dense<0.000000e+00> : vector<6x8xf32>
    %806 = tpu.matmul %805, %790, %cst_330 {dimension_numbers = #tpu.dot_dimension_numbers<[1], [0], [0], [1], [0, 0, 1, 1], [], []>} : vector<6x6xf32>, vector<6x8xf32>, vector<6x8xf32> -> vector<6x8xf32>
    %cst_331 = arith.constant 0.000000e+00 : f32
    %807 = vector.broadcast %cst_331 : f32 to vector<6x32xf32>
    %808 = vector.extract_strided_slice %724 {offsets = [0, 0], sizes = [8, 32], strides = [1, 1]} : vector<32x32xbf16> to vector<8x32xbf16>
    %809 = arith.truncf %749 : vector<6x8xf32> to vector<6x8xbf16>
    %cst_332 = arith.constant dense<0.000000e+00> : vector<6x32xf32>
    %810 = tpu.matmul %809, %808, %cst_332 {dimension_numbers = #tpu.dot_dimension_numbers<[1], [0], [0], [1], [0, 0, 1, 1], [], []>} : vector<6x8xbf16>, vector<8x32xbf16>, vector<6x32xf32> -> vector<6x32xf32>
    %811 = arith.addf %807, %810 : vector<6x32xf32>
    %812 = vector.extract_strided_slice %724 {offsets = [8, 0], sizes = [8, 32], strides = [1, 1]} : vector<32x32xbf16> to vector<8x32xbf16>
    %813 = arith.truncf %768 : vector<6x8xf32> to vector<6x8xbf16>
    %cst_333 = arith.constant dense<0.000000e+00> : vector<6x32xf32>
    %814 = tpu.matmul %813, %812, %cst_333 {dimension_numbers = #tpu.dot_dimension_numbers<[1], [0], [0], [1], [0, 0, 1, 1], [], []>} : vector<6x8xbf16>, vector<8x32xbf16>, vector<6x32xf32> -> vector<6x32xf32>
    %815 = arith.addf %811, %814 : vector<6x32xf32>
    %816 = vector.extract_strided_slice %724 {offsets = [16, 0], sizes = [8, 32], strides = [1, 1]} : vector<32x32xbf16> to vector<8x32xbf16>
    %817 = arith.truncf %787 : vector<6x8xf32> to vector<6x8xbf16>
    %cst_334 = arith.constant dense<0.000000e+00> : vector<6x32xf32>
    %818 = tpu.matmul %817, %816, %cst_334 {dimension_numbers = #tpu.dot_dimension_numbers<[1], [0], [0], [1], [0, 0, 1, 1], [], []>} : vector<6x8xbf16>, vector<8x32xbf16>, vector<6x32xf32> -> vector<6x32xf32>
    %819 = arith.addf %815, %818 : vector<6x32xf32>
    %820 = vector.extract_strided_slice %724 {offsets = [24, 0], sizes = [8, 32], strides = [1, 1]} : vector<32x32xbf16> to vector<8x32xbf16>
    %821 = arith.truncf %806 : vector<6x8xf32> to vector<6x8xbf16>
    %cst_335 = arith.constant dense<0.000000e+00> : vector<6x32xf32>
    %822 = tpu.matmul %821, %820, %cst_335 {dimension_numbers = #tpu.dot_dimension_numbers<[1], [0], [0], [1], [0, 0, 1, 1], [], []>} : vector<6x8xbf16>, vector<8x32xbf16>, vector<6x32xf32> -> vector<6x32xf32>
    %823 = arith.addf %819, %822 : vector<6x32xf32>
    %824 = vector.broadcast %726 : vector<1x32xf32> to vector<6x32xf32>
    %825 = arith.addf %823, %824 : vector<6x32xf32>
    %826 = arith.addf %718, %825 : vector<6x32xf32>
    %c1_336 = arith.constant 1 : index
    %c0_337 = arith.constant 0 : index
    %c0_338 = arith.constant 0 : index
    %827 = vector.load %arg20[%c1_336, %c0_337, %c0_338] : memref<2x1x32xf32, #tpu.memory_space<vmem>>, vector<1x1x32xf32>
    %828 = vector.shape_cast %827 : vector<1x1x32xf32> to vector<1x32xf32>
    %c1_339 = arith.constant 1 : index
    %c0_340 = arith.constant 0 : index
    %c0_341 = arith.constant 0 : index
    %829 = vector.load %arg21[%c1_339, %c0_340, %c0_341] : memref<2x1x32xf32, #tpu.memory_space<vmem>>, vector<1x1x32xf32>
    %830 = vector.shape_cast %829 : vector<1x1x32xf32> to vector<1x32xf32>
    %cst_342 = arith.constant dense<0.000000e+00> : vector<6xf32>
    %831 = vector.multi_reduction <add>, %826, %cst_342 [1] : vector<6x32xf32> to vector<6xf32>
    %832 = vector.shape_cast %831 : vector<6xf32> to vector<6x1xf32>
    %cst_343 = arith.constant 3.200000e+01 : f32
    %833 = vector.broadcast %cst_343 : f32 to vector<6x1xf32>
    %834 = arith.divf %832, %833 : vector<6x1xf32>
    %835 = vector.broadcast %834 : vector<6x1xf32> to vector<6x32xf32>
    %836 = arith.subf %826, %835 : vector<6x32xf32>
    %837 = arith.mulf %836, %836 : vector<6x32xf32>
    %cst_344 = arith.constant dense<0.000000e+00> : vector<6xf32>
    %838 = vector.multi_reduction <add>, %837, %cst_344 [1] : vector<6x32xf32> to vector<6xf32>
    %839 = vector.shape_cast %838 : vector<6xf32> to vector<6x1xf32>
    %cst_345 = arith.constant 3.200000e+01 : f32
    %840 = vector.broadcast %cst_345 : f32 to vector<6x1xf32>
    %841 = arith.divf %839, %840 : vector<6x1xf32>
    %842 = vector.broadcast %834 : vector<6x1xf32> to vector<6x32xf32>
    %843 = arith.subf %826, %842 : vector<6x32xf32>
    %cst_346 = arith.constant 9.99999974E-6 : f32
    %844 = vector.broadcast %cst_346 : f32 to vector<6x1xf32>
    %845 = arith.addf %841, %844 : vector<6x1xf32>
    %846 = math.rsqrt %845 : vector<6x1xf32>
    %847 = vector.broadcast %846 : vector<6x1xf32> to vector<6x32xf32>
    %848 = arith.mulf %843, %847 : vector<6x32xf32>
    %849 = vector.broadcast %828 : vector<1x32xf32> to vector<6x32xf32>
    %850 = arith.mulf %848, %849 : vector<6x32xf32>
    %851 = vector.broadcast %830 : vector<1x32xf32> to vector<6x32xf32>
    %852 = arith.addf %850, %851 : vector<6x32xf32>
    %c1_347 = arith.constant 1 : index
    %c0_348 = arith.constant 0 : index
    %c0_349 = arith.constant 0 : index
    %853 = vector.load %arg22[%c1_347, %c0_348, %c0_349] : memref<2x32x32xbf16, #tpu.memory_space<vmem>>, vector<1x32x32xbf16>
    %854 = vector.shape_cast %853 : vector<1x32x32xbf16> to vector<32x32xbf16>
    %c1_350 = arith.constant 1 : index
    %c0_351 = arith.constant 0 : index
    %c0_352 = arith.constant 0 : index
    %855 = vector.load %arg23[%c1_350, %c0_351, %c0_352] : memref<2x1x32xf32, #tpu.memory_space<vmem>>, vector<1x1x32xf32>
    %856 = vector.shape_cast %855 : vector<1x1x32xf32> to vector<1x32xf32>
    %c1_353 = arith.constant 1 : index
    %c0_354 = arith.constant 0 : index
    %c0_355 = arith.constant 0 : index
    %857 = vector.load %arg24[%c1_353, %c0_354, %c0_355] : memref<2x32x64xbf16, #tpu.memory_space<vmem>>, vector<1x32x64xbf16>
    %858 = vector.shape_cast %857 : vector<1x32x64xbf16> to vector<32x64xbf16>
    %c1_356 = arith.constant 1 : index
    %c0_357 = arith.constant 0 : index
    %c0_358 = arith.constant 0 : index
    %859 = vector.load %arg25[%c1_356, %c0_357, %c0_358] : memref<2x1x64xf32, #tpu.memory_space<vmem>>, vector<1x1x64xf32>
    %860 = vector.shape_cast %859 : vector<1x1x64xf32> to vector<1x64xf32>
    %c1_359 = arith.constant 1 : index
    %c0_360 = arith.constant 0 : index
    %c0_361 = arith.constant 0 : index
    %861 = vector.load %arg26[%c1_359, %c0_360, %c0_361] : memref<2x32x32xbf16, #tpu.memory_space<vmem>>, vector<1x32x32xbf16>
    %862 = vector.shape_cast %861 : vector<1x32x32xbf16> to vector<32x32xbf16>
    %c1_362 = arith.constant 1 : index
    %c0_363 = arith.constant 0 : index
    %c0_364 = arith.constant 0 : index
    %863 = vector.load %arg27[%c1_362, %c0_363, %c0_364] : memref<2x1x32xf32, #tpu.memory_space<vmem>>, vector<1x1x32xf32>
    %864 = vector.shape_cast %863 : vector<1x1x32xf32> to vector<1x32xf32>
    %865 = arith.truncf %852 : vector<6x32xf32> to vector<6x32xbf16>
    %cst_365 = arith.constant dense<0.000000e+00> : vector<6x32xf32>
    %866 = tpu.matmul %865, %854, %cst_365 {dimension_numbers = #tpu.dot_dimension_numbers<[1], [0], [0], [1], [0, 0, 1, 1], [], []>} : vector<6x32xbf16>, vector<32x32xbf16>, vector<6x32xf32> -> vector<6x32xf32>
    %867 = vector.broadcast %856 : vector<1x32xf32> to vector<6x32xf32>
    %868 = arith.addf %866, %867 : vector<6x32xf32>
    %869 = arith.truncf %401 : vector<8x32xf32> to vector<8x32xbf16>
    %cst_366 = arith.constant dense<0.000000e+00> : vector<8x64xf32>
    %870 = tpu.matmul %869, %858, %cst_366 {dimension_numbers = #tpu.dot_dimension_numbers<[1], [0], [0], [1], [0, 0, 1, 1], [], []>} : vector<8x32xbf16>, vector<32x64xbf16>, vector<8x64xf32> -> vector<8x64xf32>
    %871 = vector.broadcast %860 : vector<1x64xf32> to vector<8x64xf32>
    %872 = arith.addf %870, %871 : vector<8x64xf32>
    %873 = vector.extract_strided_slice %868 {offsets = [0, 0], sizes = [6, 8], strides = [1, 1]} : vector<6x32xf32> to vector<6x8xf32>
    %874 = vector.extract_strided_slice %872 {offsets = [0, 0], sizes = [8, 8], strides = [1, 1]} : vector<8x64xf32> to vector<8x8xf32>
    %875 = vector.extract_strided_slice %872 {offsets = [0, 32], sizes = [8, 8], strides = [1, 1]} : vector<8x64xf32> to vector<8x8xf32>
    %876 = tpu.transpose %874, [1, 0] : vector<8x8xf32> -> vector<8x8xf32>
    %cst_367 = arith.constant dense<0.000000e+00> : vector<6x8xf32>
    %877 = tpu.matmul %873, %876, %cst_367 {dimension_numbers = #tpu.dot_dimension_numbers<[1], [0], [0], [1], [0, 0, 1, 1], [], []>} : vector<6x8xf32>, vector<8x8xf32>, vector<6x8xf32> -> vector<6x8xf32>
    %cst_368 = arith.constant 0.353553385 : f32
    %878 = vector.broadcast %cst_368 : f32 to vector<6x8xf32>
    %879 = arith.mulf %877, %878 : vector<6x8xf32>
    %cst_369 = arith.constant dense<0xFF800000> : vector<6xf32>
    %880 = vector.multi_reduction <maximumf>, %879, %cst_369 [1] : vector<6x8xf32> to vector<6xf32>
    %881 = vector.shape_cast %880 : vector<6xf32> to vector<6x1xf32>
    %882 = vector.broadcast %881 : vector<6x1xf32> to vector<6x8xf32>
    %883 = arith.subf %879, %882 : vector<6x8xf32>
    %884 = math.exp %883 : vector<6x8xf32>
    %cst_370 = arith.constant dense<0.000000e+00> : vector<6xf32>
    %885 = vector.multi_reduction <add>, %884, %cst_370 [1] : vector<6x8xf32> to vector<6xf32>
    %886 = vector.shape_cast %885 : vector<6xf32> to vector<6x1xf32>
    %887 = tpu.reciprocal %886 {approx = true} : vector<6x1xf32> -> vector<6x1xf32>
    %888 = vector.broadcast %887 : vector<6x1xf32> to vector<6x8xf32>
    %889 = arith.mulf %884, %888 : vector<6x8xf32>
    %cst_371 = arith.constant dense<0.000000e+00> : vector<6x8xf32>
    %890 = tpu.matmul %889, %875, %cst_371 {dimension_numbers = #tpu.dot_dimension_numbers<[1], [0], [0], [1], [0, 0, 1, 1], [], []>} : vector<6x8xf32>, vector<8x8xf32>, vector<6x8xf32> -> vector<6x8xf32>
    %891 = vector.extract_strided_slice %868 {offsets = [0, 8], sizes = [6, 8], strides = [1, 1]} : vector<6x32xf32> to vector<6x8xf32>
    %892 = vector.extract_strided_slice %872 {offsets = [0, 8], sizes = [8, 8], strides = [1, 1]} : vector<8x64xf32> to vector<8x8xf32>
    %893 = vector.extract_strided_slice %872 {offsets = [0, 40], sizes = [8, 8], strides = [1, 1]} : vector<8x64xf32> to vector<8x8xf32>
    %894 = tpu.transpose %892, [1, 0] : vector<8x8xf32> -> vector<8x8xf32>
    %cst_372 = arith.constant dense<0.000000e+00> : vector<6x8xf32>
    %895 = tpu.matmul %891, %894, %cst_372 {dimension_numbers = #tpu.dot_dimension_numbers<[1], [0], [0], [1], [0, 0, 1, 1], [], []>} : vector<6x8xf32>, vector<8x8xf32>, vector<6x8xf32> -> vector<6x8xf32>
    %cst_373 = arith.constant 0.353553385 : f32
    %896 = vector.broadcast %cst_373 : f32 to vector<6x8xf32>
    %897 = arith.mulf %895, %896 : vector<6x8xf32>
    %cst_374 = arith.constant dense<0xFF800000> : vector<6xf32>
    %898 = vector.multi_reduction <maximumf>, %897, %cst_374 [1] : vector<6x8xf32> to vector<6xf32>
    %899 = vector.shape_cast %898 : vector<6xf32> to vector<6x1xf32>
    %900 = vector.broadcast %899 : vector<6x1xf32> to vector<6x8xf32>
    %901 = arith.subf %897, %900 : vector<6x8xf32>
    %902 = math.exp %901 : vector<6x8xf32>
    %cst_375 = arith.constant dense<0.000000e+00> : vector<6xf32>
    %903 = vector.multi_reduction <add>, %902, %cst_375 [1] : vector<6x8xf32> to vector<6xf32>
    %904 = vector.shape_cast %903 : vector<6xf32> to vector<6x1xf32>
    %905 = tpu.reciprocal %904 {approx = true} : vector<6x1xf32> -> vector<6x1xf32>
    %906 = vector.broadcast %905 : vector<6x1xf32> to vector<6x8xf32>
    %907 = arith.mulf %902, %906 : vector<6x8xf32>
    %cst_376 = arith.constant dense<0.000000e+00> : vector<6x8xf32>
    %908 = tpu.matmul %907, %893, %cst_376 {dimension_numbers = #tpu.dot_dimension_numbers<[1], [0], [0], [1], [0, 0, 1, 1], [], []>} : vector<6x8xf32>, vector<8x8xf32>, vector<6x8xf32> -> vector<6x8xf32>
    %909 = vector.extract_strided_slice %868 {offsets = [0, 16], sizes = [6, 8], strides = [1, 1]} : vector<6x32xf32> to vector<6x8xf32>
    %910 = vector.extract_strided_slice %872 {offsets = [0, 16], sizes = [8, 8], strides = [1, 1]} : vector<8x64xf32> to vector<8x8xf32>
    %911 = vector.extract_strided_slice %872 {offsets = [0, 48], sizes = [8, 8], strides = [1, 1]} : vector<8x64xf32> to vector<8x8xf32>
    %912 = tpu.transpose %910, [1, 0] : vector<8x8xf32> -> vector<8x8xf32>
    %cst_377 = arith.constant dense<0.000000e+00> : vector<6x8xf32>
    %913 = tpu.matmul %909, %912, %cst_377 {dimension_numbers = #tpu.dot_dimension_numbers<[1], [0], [0], [1], [0, 0, 1, 1], [], []>} : vector<6x8xf32>, vector<8x8xf32>, vector<6x8xf32> -> vector<6x8xf32>
    %cst_378 = arith.constant 0.353553385 : f32
    %914 = vector.broadcast %cst_378 : f32 to vector<6x8xf32>
    %915 = arith.mulf %913, %914 : vector<6x8xf32>
    %cst_379 = arith.constant dense<0xFF800000> : vector<6xf32>
    %916 = vector.multi_reduction <maximumf>, %915, %cst_379 [1] : vector<6x8xf32> to vector<6xf32>
    %917 = vector.shape_cast %916 : vector<6xf32> to vector<6x1xf32>
    %918 = vector.broadcast %917 : vector<6x1xf32> to vector<6x8xf32>
    %919 = arith.subf %915, %918 : vector<6x8xf32>
    %920 = math.exp %919 : vector<6x8xf32>
    %cst_380 = arith.constant dense<0.000000e+00> : vector<6xf32>
    %921 = vector.multi_reduction <add>, %920, %cst_380 [1] : vector<6x8xf32> to vector<6xf32>
    %922 = vector.shape_cast %921 : vector<6xf32> to vector<6x1xf32>
    %923 = tpu.reciprocal %922 {approx = true} : vector<6x1xf32> -> vector<6x1xf32>
    %924 = vector.broadcast %923 : vector<6x1xf32> to vector<6x8xf32>
    %925 = arith.mulf %920, %924 : vector<6x8xf32>
    %cst_381 = arith.constant dense<0.000000e+00> : vector<6x8xf32>
    %926 = tpu.matmul %925, %911, %cst_381 {dimension_numbers = #tpu.dot_dimension_numbers<[1], [0], [0], [1], [0, 0, 1, 1], [], []>} : vector<6x8xf32>, vector<8x8xf32>, vector<6x8xf32> -> vector<6x8xf32>
    %927 = vector.extract_strided_slice %868 {offsets = [0, 24], sizes = [6, 8], strides = [1, 1]} : vector<6x32xf32> to vector<6x8xf32>
    %928 = vector.extract_strided_slice %872 {offsets = [0, 24], sizes = [8, 8], strides = [1, 1]} : vector<8x64xf32> to vector<8x8xf32>
    %929 = vector.extract_strided_slice %872 {offsets = [0, 56], sizes = [8, 8], strides = [1, 1]} : vector<8x64xf32> to vector<8x8xf32>
    %930 = tpu.transpose %928, [1, 0] : vector<8x8xf32> -> vector<8x8xf32>
    %cst_382 = arith.constant dense<0.000000e+00> : vector<6x8xf32>
    %931 = tpu.matmul %927, %930, %cst_382 {dimension_numbers = #tpu.dot_dimension_numbers<[1], [0], [0], [1], [0, 0, 1, 1], [], []>} : vector<6x8xf32>, vector<8x8xf32>, vector<6x8xf32> -> vector<6x8xf32>
    %cst_383 = arith.constant 0.353553385 : f32
    %932 = vector.broadcast %cst_383 : f32 to vector<6x8xf32>
    %933 = arith.mulf %931, %932 : vector<6x8xf32>
    %cst_384 = arith.constant dense<0xFF800000> : vector<6xf32>
    %934 = vector.multi_reduction <maximumf>, %933, %cst_384 [1] : vector<6x8xf32> to vector<6xf32>
    %935 = vector.shape_cast %934 : vector<6xf32> to vector<6x1xf32>
    %936 = vector.broadcast %935 : vector<6x1xf32> to vector<6x8xf32>
    %937 = arith.subf %933, %936 : vector<6x8xf32>
    %938 = math.exp %937 : vector<6x8xf32>
    %cst_385 = arith.constant dense<0.000000e+00> : vector<6xf32>
    %939 = vector.multi_reduction <add>, %938, %cst_385 [1] : vector<6x8xf32> to vector<6xf32>
    %940 = vector.shape_cast %939 : vector<6xf32> to vector<6x1xf32>
    %941 = tpu.reciprocal %940 {approx = true} : vector<6x1xf32> -> vector<6x1xf32>
    %942 = vector.broadcast %941 : vector<6x1xf32> to vector<6x8xf32>
    %943 = arith.mulf %938, %942 : vector<6x8xf32>
    %cst_386 = arith.constant dense<0.000000e+00> : vector<6x8xf32>
    %944 = tpu.matmul %943, %929, %cst_386 {dimension_numbers = #tpu.dot_dimension_numbers<[1], [0], [0], [1], [0, 0, 1, 1], [], []>} : vector<6x8xf32>, vector<8x8xf32>, vector<6x8xf32> -> vector<6x8xf32>
    %cst_387 = arith.constant 0.000000e+00 : f32
    %945 = vector.broadcast %cst_387 : f32 to vector<6x32xf32>
    %946 = vector.extract_strided_slice %862 {offsets = [0, 0], sizes = [8, 32], strides = [1, 1]} : vector<32x32xbf16> to vector<8x32xbf16>
    %947 = arith.truncf %890 : vector<6x8xf32> to vector<6x8xbf16>
    %cst_388 = arith.constant dense<0.000000e+00> : vector<6x32xf32>
    %948 = tpu.matmul %947, %946, %cst_388 {dimension_numbers = #tpu.dot_dimension_numbers<[1], [0], [0], [1], [0, 0, 1, 1], [], []>} : vector<6x8xbf16>, vector<8x32xbf16>, vector<6x32xf32> -> vector<6x32xf32>
    %949 = arith.addf %945, %948 : vector<6x32xf32>
    %950 = vector.extract_strided_slice %862 {offsets = [8, 0], sizes = [8, 32], strides = [1, 1]} : vector<32x32xbf16> to vector<8x32xbf16>
    %951 = arith.truncf %908 : vector<6x8xf32> to vector<6x8xbf16>
    %cst_389 = arith.constant dense<0.000000e+00> : vector<6x32xf32>
    %952 = tpu.matmul %951, %950, %cst_389 {dimension_numbers = #tpu.dot_dimension_numbers<[1], [0], [0], [1], [0, 0, 1, 1], [], []>} : vector<6x8xbf16>, vector<8x32xbf16>, vector<6x32xf32> -> vector<6x32xf32>
    %953 = arith.addf %949, %952 : vector<6x32xf32>
    %954 = vector.extract_strided_slice %862 {offsets = [16, 0], sizes = [8, 32], strides = [1, 1]} : vector<32x32xbf16> to vector<8x32xbf16>
    %955 = arith.truncf %926 : vector<6x8xf32> to vector<6x8xbf16>
    %cst_390 = arith.constant dense<0.000000e+00> : vector<6x32xf32>
    %956 = tpu.matmul %955, %954, %cst_390 {dimension_numbers = #tpu.dot_dimension_numbers<[1], [0], [0], [1], [0, 0, 1, 1], [], []>} : vector<6x8xbf16>, vector<8x32xbf16>, vector<6x32xf32> -> vector<6x32xf32>
    %957 = arith.addf %953, %956 : vector<6x32xf32>
    %958 = vector.extract_strided_slice %862 {offsets = [24, 0], sizes = [8, 32], strides = [1, 1]} : vector<32x32xbf16> to vector<8x32xbf16>
    %959 = arith.truncf %944 : vector<6x8xf32> to vector<6x8xbf16>
    %cst_391 = arith.constant dense<0.000000e+00> : vector<6x32xf32>
    %960 = tpu.matmul %959, %958, %cst_391 {dimension_numbers = #tpu.dot_dimension_numbers<[1], [0], [0], [1], [0, 0, 1, 1], [], []>} : vector<6x8xbf16>, vector<8x32xbf16>, vector<6x32xf32> -> vector<6x32xf32>
    %961 = arith.addf %957, %960 : vector<6x32xf32>
    %962 = vector.broadcast %864 : vector<1x32xf32> to vector<6x32xf32>
    %963 = arith.addf %961, %962 : vector<6x32xf32>
    %964 = arith.addf %852, %963 : vector<6x32xf32>
    %c1_392 = arith.constant 1 : index
    %c0_393 = arith.constant 0 : index
    %c0_394 = arith.constant 0 : index
    %965 = vector.load %arg28[%c1_392, %c0_393, %c0_394] : memref<2x1x32xf32, #tpu.memory_space<vmem>>, vector<1x1x32xf32>
    %966 = vector.shape_cast %965 : vector<1x1x32xf32> to vector<1x32xf32>
    %c1_395 = arith.constant 1 : index
    %c0_396 = arith.constant 0 : index
    %c0_397 = arith.constant 0 : index
    %967 = vector.load %arg29[%c1_395, %c0_396, %c0_397] : memref<2x1x32xf32, #tpu.memory_space<vmem>>, vector<1x1x32xf32>
    %968 = vector.shape_cast %967 : vector<1x1x32xf32> to vector<1x32xf32>
    %cst_398 = arith.constant dense<0.000000e+00> : vector<6xf32>
    %969 = vector.multi_reduction <add>, %964, %cst_398 [1] : vector<6x32xf32> to vector<6xf32>
    %970 = vector.shape_cast %969 : vector<6xf32> to vector<6x1xf32>
    %cst_399 = arith.constant 3.200000e+01 : f32
    %971 = vector.broadcast %cst_399 : f32 to vector<6x1xf32>
    %972 = arith.divf %970, %971 : vector<6x1xf32>
    %973 = vector.broadcast %972 : vector<6x1xf32> to vector<6x32xf32>
    %974 = arith.subf %964, %973 : vector<6x32xf32>
    %975 = arith.mulf %974, %974 : vector<6x32xf32>
    %cst_400 = arith.constant dense<0.000000e+00> : vector<6xf32>
    %976 = vector.multi_reduction <add>, %975, %cst_400 [1] : vector<6x32xf32> to vector<6xf32>
    %977 = vector.shape_cast %976 : vector<6xf32> to vector<6x1xf32>
    %cst_401 = arith.constant 3.200000e+01 : f32
    %978 = vector.broadcast %cst_401 : f32 to vector<6x1xf32>
    %979 = arith.divf %977, %978 : vector<6x1xf32>
    %980 = vector.broadcast %972 : vector<6x1xf32> to vector<6x32xf32>
    %981 = arith.subf %964, %980 : vector<6x32xf32>
    %cst_402 = arith.constant 9.99999974E-6 : f32
    %982 = vector.broadcast %cst_402 : f32 to vector<6x1xf32>
    %983 = arith.addf %979, %982 : vector<6x1xf32>
    %984 = math.rsqrt %983 : vector<6x1xf32>
    %985 = vector.broadcast %984 : vector<6x1xf32> to vector<6x32xf32>
    %986 = arith.mulf %981, %985 : vector<6x32xf32>
    %987 = vector.broadcast %966 : vector<1x32xf32> to vector<6x32xf32>
    %988 = arith.mulf %986, %987 : vector<6x32xf32>
    %989 = vector.broadcast %968 : vector<1x32xf32> to vector<6x32xf32>
    %990 = arith.addf %988, %989 : vector<6x32xf32>
    %c1_403 = arith.constant 1 : index
    %c0_404 = arith.constant 0 : index
    %c0_405 = arith.constant 0 : index
    %991 = vector.load %arg30[%c1_403, %c0_404, %c0_405] : memref<2x32x64xbf16, #tpu.memory_space<vmem>>, vector<1x32x64xbf16>
    %992 = vector.shape_cast %991 : vector<1x32x64xbf16> to vector<32x64xbf16>
    %c1_406 = arith.constant 1 : index
    %c0_407 = arith.constant 0 : index
    %c0_408 = arith.constant 0 : index
    %993 = vector.load %arg31[%c1_406, %c0_407, %c0_408] : memref<2x1x64xf32, #tpu.memory_space<vmem>>, vector<1x1x64xf32>
    %994 = vector.shape_cast %993 : vector<1x1x64xf32> to vector<1x64xf32>
    %c1_409 = arith.constant 1 : index
    %c0_410 = arith.constant 0 : index
    %c0_411 = arith.constant 0 : index
    %995 = vector.load %arg32[%c1_409, %c0_410, %c0_411] : memref<2x64x32xbf16, #tpu.memory_space<vmem>>, vector<1x64x32xbf16>
    %996 = vector.shape_cast %995 : vector<1x64x32xbf16> to vector<64x32xbf16>
    %c1_412 = arith.constant 1 : index
    %c0_413 = arith.constant 0 : index
    %c0_414 = arith.constant 0 : index
    %997 = vector.load %arg33[%c1_412, %c0_413, %c0_414] : memref<2x1x32xf32, #tpu.memory_space<vmem>>, vector<1x1x32xf32>
    %998 = vector.shape_cast %997 : vector<1x1x32xf32> to vector<1x32xf32>
    %999 = arith.truncf %990 : vector<6x32xf32> to vector<6x32xbf16>
    %cst_415 = arith.constant dense<0.000000e+00> : vector<6x64xf32>
    %1000 = tpu.matmul %999, %992, %cst_415 {dimension_numbers = #tpu.dot_dimension_numbers<[1], [0], [0], [1], [0, 0, 1, 1], [], []>} : vector<6x32xbf16>, vector<32x64xbf16>, vector<6x64xf32> -> vector<6x64xf32>
    %1001 = vector.broadcast %994 : vector<1x64xf32> to vector<6x64xf32>
    %1002 = arith.addf %1000, %1001 : vector<6x64xf32>
    %cst_416 = arith.constant 0.000000e+00 : f32
    %1003 = vector.broadcast %cst_416 : f32 to vector<6x64xf32>
    %1004 = arith.maximumf %1002, %1003 : vector<6x64xf32>
    %1005 = arith.truncf %1004 : vector<6x64xf32> to vector<6x64xbf16>
    %cst_417 = arith.constant dense<0.000000e+00> : vector<6x32xf32>
    %1006 = tpu.matmul %1005, %996, %cst_417 {dimension_numbers = #tpu.dot_dimension_numbers<[1], [0], [0], [1], [0, 0, 1, 1], [], []>} : vector<6x64xbf16>, vector<64x32xbf16>, vector<6x32xf32> -> vector<6x32xf32>
    %1007 = vector.broadcast %998 : vector<1x32xf32> to vector<6x32xf32>
    %1008 = arith.addf %1006, %1007 : vector<6x32xf32>
    %1009 = arith.addf %990, %1008 : vector<6x32xf32>
    %c1_418 = arith.constant 1 : index
    %c0_419 = arith.constant 0 : index
    %c0_420 = arith.constant 0 : index
    %1010 = vector.load %arg34[%c1_418, %c0_419, %c0_420] : memref<2x1x32xf32, #tpu.memory_space<vmem>>, vector<1x1x32xf32>
    %1011 = vector.shape_cast %1010 : vector<1x1x32xf32> to vector<1x32xf32>
    %c1_421 = arith.constant 1 : index
    %c0_422 = arith.constant 0 : index
    %c0_423 = arith.constant 0 : index
    %1012 = vector.load %arg35[%c1_421, %c0_422, %c0_423] : memref<2x1x32xf32, #tpu.memory_space<vmem>>, vector<1x1x32xf32>
    %1013 = vector.shape_cast %1012 : vector<1x1x32xf32> to vector<1x32xf32>
    %cst_424 = arith.constant dense<0.000000e+00> : vector<6xf32>
    %1014 = vector.multi_reduction <add>, %1009, %cst_424 [1] : vector<6x32xf32> to vector<6xf32>
    %1015 = vector.shape_cast %1014 : vector<6xf32> to vector<6x1xf32>
    %cst_425 = arith.constant 3.200000e+01 : f32
    %1016 = vector.broadcast %cst_425 : f32 to vector<6x1xf32>
    %1017 = arith.divf %1015, %1016 : vector<6x1xf32>
    %1018 = vector.broadcast %1017 : vector<6x1xf32> to vector<6x32xf32>
    %1019 = arith.subf %1009, %1018 : vector<6x32xf32>
    %1020 = arith.mulf %1019, %1019 : vector<6x32xf32>
    %cst_426 = arith.constant dense<0.000000e+00> : vector<6xf32>
    %1021 = vector.multi_reduction <add>, %1020, %cst_426 [1] : vector<6x32xf32> to vector<6xf32>
    %1022 = vector.shape_cast %1021 : vector<6xf32> to vector<6x1xf32>
    %cst_427 = arith.constant 3.200000e+01 : f32
    %1023 = vector.broadcast %cst_427 : f32 to vector<6x1xf32>
    %1024 = arith.divf %1022, %1023 : vector<6x1xf32>
    %1025 = vector.broadcast %1017 : vector<6x1xf32> to vector<6x32xf32>
    %1026 = arith.subf %1009, %1025 : vector<6x32xf32>
    %cst_428 = arith.constant 9.99999974E-6 : f32
    %1027 = vector.broadcast %cst_428 : f32 to vector<6x1xf32>
    %1028 = arith.addf %1024, %1027 : vector<6x1xf32>
    %1029 = math.rsqrt %1028 : vector<6x1xf32>
    %1030 = vector.broadcast %1029 : vector<6x1xf32> to vector<6x32xf32>
    %1031 = arith.mulf %1026, %1030 : vector<6x32xf32>
    %1032 = vector.broadcast %1011 : vector<1x32xf32> to vector<6x32xf32>
    %1033 = arith.mulf %1031, %1032 : vector<6x32xf32>
    %1034 = vector.broadcast %1013 : vector<1x32xf32> to vector<6x32xf32>
    %1035 = arith.addf %1033, %1034 : vector<6x32xf32>
    %c0_429 = arith.constant 0 : index
    %c0_430 = arith.constant 0 : index
    %1036 = vector.load %arg38[%c0_429, %c0_430] : memref<1x32xf32, #tpu.memory_space<vmem>>, vector<1x32xf32>
    %c0_431 = arith.constant 0 : index
    %c0_432 = arith.constant 0 : index
    %1037 = vector.load %arg39[%c0_431, %c0_432] : memref<1x32xf32, #tpu.memory_space<vmem>>, vector<1x32xf32>
    %cst_433 = arith.constant dense<0.000000e+00> : vector<6xf32>
    %1038 = vector.multi_reduction <add>, %1035, %cst_433 [1] : vector<6x32xf32> to vector<6xf32>
    %1039 = vector.shape_cast %1038 : vector<6xf32> to vector<6x1xf32>
    %cst_434 = arith.constant 3.200000e+01 : f32
    %1040 = vector.broadcast %cst_434 : f32 to vector<6x1xf32>
    %1041 = arith.divf %1039, %1040 : vector<6x1xf32>
    %1042 = vector.broadcast %1041 : vector<6x1xf32> to vector<6x32xf32>
    %1043 = arith.subf %1035, %1042 : vector<6x32xf32>
    %1044 = arith.mulf %1043, %1043 : vector<6x32xf32>
    %cst_435 = arith.constant dense<0.000000e+00> : vector<6xf32>
    %1045 = vector.multi_reduction <add>, %1044, %cst_435 [1] : vector<6x32xf32> to vector<6xf32>
    %1046 = vector.shape_cast %1045 : vector<6xf32> to vector<6x1xf32>
    %cst_436 = arith.constant 3.200000e+01 : f32
    %1047 = vector.broadcast %cst_436 : f32 to vector<6x1xf32>
    %1048 = arith.divf %1046, %1047 : vector<6x1xf32>
    %1049 = vector.broadcast %1041 : vector<6x1xf32> to vector<6x32xf32>
    %1050 = arith.subf %1035, %1049 : vector<6x32xf32>
    %cst_437 = arith.constant 9.99999974E-6 : f32
    %1051 = vector.broadcast %cst_437 : f32 to vector<6x1xf32>
    %1052 = arith.addf %1048, %1051 : vector<6x1xf32>
    %1053 = math.rsqrt %1052 : vector<6x1xf32>
    %1054 = vector.broadcast %1053 : vector<6x1xf32> to vector<6x32xf32>
    %1055 = arith.mulf %1050, %1054 : vector<6x32xf32>
    %1056 = vector.broadcast %1036 : vector<1x32xf32> to vector<6x32xf32>
    %1057 = arith.mulf %1055, %1056 : vector<6x32xf32>
    %1058 = vector.broadcast %1037 : vector<1x32xf32> to vector<6x32xf32>
    %1059 = arith.addf %1057, %1058 : vector<6x32xf32>
    %c0_438 = arith.constant 0 : index
    %c0_439 = arith.constant 0 : index
    %1060 = vector.load %arg40[%c0_438, %c0_439] : memref<32x128xbf16, #tpu.memory_space<vmem>>, vector<32x128xbf16>
    %1061 = arith.truncf %1059 : vector<6x32xf32> to vector<6x32xbf16>
    %cst_440 = arith.constant dense<0.000000e+00> : vector<6x128xf32>
    %1062 = tpu.matmul %1061, %1060, %cst_440 {dimension_numbers = #tpu.dot_dimension_numbers<[1], [0], [0], [1], [0, 0, 1, 1], [], []>} : vector<6x32xbf16>, vector<32x128xbf16>, vector<6x128xf32> -> vector<6x128xf32>
    %c0_441 = arith.constant 0 : index
    %c0_442 = arith.constant 0 : index
    %1063 = vector.load %arg41[%c0_441, %c0_442] : memref<1x128xf32, #tpu.memory_space<vmem>>, vector<1x128xf32>
    %1064 = vector.broadcast %1063 : vector<1x128xf32> to vector<6x128xf32>
    %1065 = arith.addf %1062, %1064 : vector<6x128xf32>
    %c0_443 = arith.constant 0 : index
    %c0_444 = arith.constant 0 : index
    %c0_445 = arith.constant 0 : index
    %1066 = vector.load %arg42[%c0_443, %c0_444, %c0_445] : memref<1x6x128xf32, #tpu.memory_space<vmem>>, vector<1x6x128xf32>
    %1067 = vector.shape_cast %1066 : vector<1x6x128xf32> to vector<6x128xf32>
    %1068 = vector.shape_cast %1065 : vector<6x128xf32> to vector<1x6x128xf32>
    tpu.vector_store %arg42[%c0_443, %c0_444, %c0_445], %1068 {strides = array<i32>} : memref<1x6x128xf32, #tpu.memory_space<vmem>>, vector<1x6x128xf32>,
    return
  }
  func.func @transform_0(%arg0: i32) -> (i32, i32, i32) {
    %c0_i32 = arith.constant 0 : i32
    %c0_i32_0 = arith.constant 0 : i32
    %c0_i32_1 = arith.constant 0 : i32
    return %arg0, %c0_i32, %c0_i32_0 : i32, i32, i32
  }
  func.func @transform_1(%arg0: i32) -> (i32, i32, i32) {
    %c0_i32 = arith.constant 0 : i32
    %c0_i32_0 = arith.constant 0 : i32
    %c0_i32_1 = arith.constant 0 : i32
    return %arg0, %c0_i32, %c0_i32_0 : i32, i32, i32
  }
  func.func @transform_2(%arg0: i32) -> (i32, i32, i32) {
    %c0_i32 = arith.constant 0 : i32
    %c0_i32_0 = arith.constant 0 : i32
    %c0_i32_1 = arith.constant 0 : i32
    return %arg0, %c0_i32, %c0_i32_0 : i32, i32, i32
  }
  func.func @transform_3(%arg0: i32) -> (i32, i32, i32) {
    %c0_i32 = arith.constant 0 : i32
    %c0_i32_0 = arith.constant 0 : i32
    %c0_i32_1 = arith.constant 0 : i32
    %c0_i32_2 = arith.constant 0 : i32
    return %c0_i32, %c0_i32_0, %c0_i32_1 : i32, i32, i32
  }
  func.func @transform_4(%arg0: i32) -> (i32, i32, i32) {
    %c0_i32 = arith.constant 0 : i32
    %c0_i32_0 = arith.constant 0 : i32
    %c0_i32_1 = arith.constant 0 : i32
    %c0_i32_2 = arith.constant 0 : i32
    return %c0_i32, %c0_i32_0, %c0_i32_1 : i32, i32, i32
  }
  func.func @transform_5(%arg0: i32) -> (i32, i32, i32) {
    %c0_i32 = arith.constant 0 : i32
    %c0_i32_0 = arith.constant 0 : i32
    %c0_i32_1 = arith.constant 0 : i32
    %c0_i32_2 = arith.constant 0 : i32
    return %c0_i32, %c0_i32_0, %c0_i32_1 : i32, i32, i32
  }
  func.func @transform_6(%arg0: i32) -> (i32, i32, i32) {
    %c0_i32 = arith.constant 0 : i32
    %c0_i32_0 = arith.constant 0 : i32
    %c0_i32_1 = arith.constant 0 : i32
    %c0_i32_2 = arith.constant 0 : i32
    return %c0_i32, %c0_i32_0, %c0_i32_1 : i32, i32, i32
  }
  func.func @transform_7(%arg0: i32) -> (i32, i32, i32) {
    %c0_i32 = arith.constant 0 : i32
    %c0_i32_0 = arith.constant 0 : i32
    %c0_i32_1 = arith.constant 0 : i32
    %c0_i32_2 = arith.constant 0 : i32
    return %c0_i32, %c0_i32_0, %c0_i32_1 : i32, i32, i32
  }
  func.func @transform_8(%arg0: i32) -> (i32, i32, i32) {
    %c0_i32 = arith.constant 0 : i32
    %c0_i32_0 = arith.constant 0 : i32
    %c0_i32_1 = arith.constant 0 : i32
    %c0_i32_2 = arith.constant 0 : i32
    return %c0_i32, %c0_i32_0, %c0_i32_1 : i32, i32, i32
  }
  func.func @transform_9(%arg0: i32) -> (i32, i32, i32) {
    %c0_i32 = arith.constant 0 : i32
    %c0_i32_0 = arith.constant 0 : i32
    %c0_i32_1 = arith.constant 0 : i32
    %c0_i32_2 = arith.constant 0 : i32
    return %c0_i32, %c0_i32_0, %c0_i32_1 : i32, i32, i32
  }
  func.func @transform_10(%arg0: i32) -> (i32, i32, i32) {
    %c0_i32 = arith.constant 0 : i32
    %c0_i32_0 = arith.constant 0 : i32
    %c0_i32_1 = arith.constant 0 : i32
    %c0_i32_2 = arith.constant 0 : i32
    return %c0_i32, %c0_i32_0, %c0_i32_1 : i32, i32, i32
  }
  func.func @transform_11(%arg0: i32) -> (i32, i32, i32) {
    %c0_i32 = arith.constant 0 : i32
    %c0_i32_0 = arith.constant 0 : i32
    %c0_i32_1 = arith.constant 0 : i32
    %c0_i32_2 = arith.constant 0 : i32
    return %c0_i32, %c0_i32_0, %c0_i32_1 : i32, i32, i32
  }
  func.func @transform_12(%arg0: i32) -> (i32, i32, i32) {
    %c0_i32 = arith.constant 0 : i32
    %c0_i32_0 = arith.constant 0 : i32
    %c0_i32_1 = arith.constant 0 : i32
    %c0_i32_2 = arith.constant 0 : i32
    return %c0_i32, %c0_i32_0, %c0_i32_1 : i32, i32, i32
  }
  func.func @transform_13(%arg0: i32) -> (i32, i32, i32) {
    %c0_i32 = arith.constant 0 : i32
    %c0_i32_0 = arith.constant 0 : i32
    %c0_i32_1 = arith.constant 0 : i32
    %c0_i32_2 = arith.constant 0 : i32
    return %c0_i32, %c0_i32_0, %c0_i32_1 : i32, i32, i32
  }
  func.func @transform_14(%arg0: i32) -> (i32, i32, i32) {
    %c0_i32 = arith.constant 0 : i32
    %c0_i32_0 = arith.constant 0 : i32
    %c0_i32_1 = arith.constant 0 : i32
    %c0_i32_2 = arith.constant 0 : i32
    return %c0_i32, %c0_i32_0, %c0_i32_1 : i32, i32, i32
  }
  func.func @transform_15(%arg0: i32) -> (i32, i32, i32) {
    %c0_i32 = arith.constant 0 : i32
    %c0_i32_0 = arith.constant 0 : i32
    %c0_i32_1 = arith.constant 0 : i32
    %c0_i32_2 = arith.constant 0 : i32
    return %c0_i32, %c0_i32_0, %c0_i32_1 : i32, i32, i32
  }
  func.func @transform_16(%arg0: i32) -> (i32, i32, i32) {
    %c0_i32 = arith.constant 0 : i32
    %c0_i32_0 = arith.constant 0 : i32
    %c0_i32_1 = arith.constant 0 : i32
    %c0_i32_2 = arith.constant 0 : i32
    return %c0_i32, %c0_i32_0, %c0_i32_1 : i32, i32, i32
  }
  func.func @transform_17(%arg0: i32) -> (i32, i32, i32) {
    %c0_i32 = arith.constant 0 : i32
    %c0_i32_0 = arith.constant 0 : i32
    %c0_i32_1 = arith.constant 0 : i32
    %c0_i32_2 = arith.constant 0 : i32
    return %c0_i32, %c0_i32_0, %c0_i32_1 : i32, i32, i32
  }
  func.func @transform_18(%arg0: i32) -> (i32, i32, i32) {
    %c0_i32 = arith.constant 0 : i32
    %c0_i32_0 = arith.constant 0 : i32
    %c0_i32_1 = arith.constant 0 : i32
    %c0_i32_2 = arith.constant 0 : i32
    return %c0_i32, %c0_i32_0, %c0_i32_1 : i32, i32, i32
  }
  func.func @transform_19(%arg0: i32) -> (i32, i32, i32) {
    %c0_i32 = arith.constant 0 : i32
    %c0_i32_0 = arith.constant 0 : i32
    %c0_i32_1 = arith.constant 0 : i32
    %c0_i32_2 = arith.constant 0 : i32
    return %c0_i32, %c0_i32_0, %c0_i32_1 : i32, i32, i32
  }
  func.func @transform_20(%arg0: i32) -> (i32, i32, i32) {
    %c0_i32 = arith.constant 0 : i32
    %c0_i32_0 = arith.constant 0 : i32
    %c0_i32_1 = arith.constant 0 : i32
    %c0_i32_2 = arith.constant 0 : i32
    return %c0_i32, %c0_i32_0, %c0_i32_1 : i32, i32, i32
  }
  func.func @transform_21(%arg0: i32) -> (i32, i32, i32) {
    %c0_i32 = arith.constant 0 : i32
    %c0_i32_0 = arith.constant 0 : i32
    %c0_i32_1 = arith.constant 0 : i32
    %c0_i32_2 = arith.constant 0 : i32
    return %c0_i32, %c0_i32_0, %c0_i32_1 : i32, i32, i32
  }
  func.func @transform_22(%arg0: i32) -> (i32, i32, i32) {
    %c0_i32 = arith.constant 0 : i32
    %c0_i32_0 = arith.constant 0 : i32
    %c0_i32_1 = arith.constant 0 : i32
    %c0_i32_2 = arith.constant 0 : i32
    return %c0_i32, %c0_i32_0, %c0_i32_1 : i32, i32, i32
  }
  func.func @transform_23(%arg0: i32) -> (i32, i32, i32) {
    %c0_i32 = arith.constant 0 : i32
    %c0_i32_0 = arith.constant 0 : i32
    %c0_i32_1 = arith.constant 0 : i32
    %c0_i32_2 = arith.constant 0 : i32
    return %c0_i32, %c0_i32_0, %c0_i32_1 : i32, i32, i32
  }
  func.func @transform_24(%arg0: i32) -> (i32, i32, i32) {
    %c0_i32 = arith.constant 0 : i32
    %c0_i32_0 = arith.constant 0 : i32
    %c0_i32_1 = arith.constant 0 : i32
    %c0_i32_2 = arith.constant 0 : i32
    return %c0_i32, %c0_i32_0, %c0_i32_1 : i32, i32, i32
  }
  func.func @transform_25(%arg0: i32) -> (i32, i32, i32) {
    %c0_i32 = arith.constant 0 : i32
    %c0_i32_0 = arith.constant 0 : i32
    %c0_i32_1 = arith.constant 0 : i32
    %c0_i32_2 = arith.constant 0 : i32
    return %c0_i32, %c0_i32_0, %c0_i32_1 : i32, i32, i32
  }
  func.func @transform_26(%arg0: i32) -> (i32, i32, i32) {
    %c0_i32 = arith.constant 0 : i32
    %c0_i32_0 = arith.constant 0 : i32
    %c0_i32_1 = arith.constant 0 : i32
    %c0_i32_2 = arith.constant 0 : i32
    return %c0_i32, %c0_i32_0, %c0_i32_1 : i32, i32, i32
  }
  func.func @transform_27(%arg0: i32) -> (i32, i32, i32) {
    %c0_i32 = arith.constant 0 : i32
    %c0_i32_0 = arith.constant 0 : i32
    %c0_i32_1 = arith.constant 0 : i32
    %c0_i32_2 = arith.constant 0 : i32
    return %c0_i32, %c0_i32_0, %c0_i32_1 : i32, i32, i32
  }
  func.func @transform_28(%arg0: i32) -> (i32, i32, i32) {
    %c0_i32 = arith.constant 0 : i32
    %c0_i32_0 = arith.constant 0 : i32
    %c0_i32_1 = arith.constant 0 : i32
    %c0_i32_2 = arith.constant 0 : i32
    return %c0_i32, %c0_i32_0, %c0_i32_1 : i32, i32, i32
  }
  func.func @transform_29(%arg0: i32) -> (i32, i32, i32) {
    %c0_i32 = arith.constant 0 : i32
    %c0_i32_0 = arith.constant 0 : i32
    %c0_i32_1 = arith.constant 0 : i32
    %c0_i32_2 = arith.constant 0 : i32
    return %c0_i32, %c0_i32_0, %c0_i32_1 : i32, i32, i32
  }
  func.func @transform_30(%arg0: i32) -> (i32, i32, i32) {
    %c0_i32 = arith.constant 0 : i32
    %c0_i32_0 = arith.constant 0 : i32
    %c0_i32_1 = arith.constant 0 : i32
    %c0_i32_2 = arith.constant 0 : i32
    return %c0_i32, %c0_i32_0, %c0_i32_1 : i32, i32, i32
  }
  func.func @transform_31(%arg0: i32) -> (i32, i32, i32) {
    %c0_i32 = arith.constant 0 : i32
    %c0_i32_0 = arith.constant 0 : i32
    %c0_i32_1 = arith.constant 0 : i32
    %c0_i32_2 = arith.constant 0 : i32
    return %c0_i32, %c0_i32_0, %c0_i32_1 : i32, i32, i32
  }
  func.func @transform_32(%arg0: i32) -> (i32, i32, i32) {
    %c0_i32 = arith.constant 0 : i32
    %c0_i32_0 = arith.constant 0 : i32
    %c0_i32_1 = arith.constant 0 : i32
    %c0_i32_2 = arith.constant 0 : i32
    return %c0_i32, %c0_i32_0, %c0_i32_1 : i32, i32, i32
  }
  func.func @transform_33(%arg0: i32) -> (i32, i32, i32) {
    %c0_i32 = arith.constant 0 : i32
    %c0_i32_0 = arith.constant 0 : i32
    %c0_i32_1 = arith.constant 0 : i32
    %c0_i32_2 = arith.constant 0 : i32
    return %c0_i32, %c0_i32_0, %c0_i32_1 : i32, i32, i32
  }
  func.func @transform_34(%arg0: i32) -> (i32, i32, i32) {
    %c0_i32 = arith.constant 0 : i32
    %c0_i32_0 = arith.constant 0 : i32
    %c0_i32_1 = arith.constant 0 : i32
    %c0_i32_2 = arith.constant 0 : i32
    return %c0_i32, %c0_i32_0, %c0_i32_1 : i32, i32, i32
  }
  func.func @transform_35(%arg0: i32) -> (i32, i32) {
    %c0_i32 = arith.constant 0 : i32
    %c0_i32_0 = arith.constant 0 : i32
    %c0_i32_1 = arith.constant 0 : i32
    return %c0_i32, %c0_i32_0 : i32, i32
  }
  func.func @transform_36(%arg0: i32) -> (i32, i32) {
    %c0_i32 = arith.constant 0 : i32
    %c0_i32_0 = arith.constant 0 : i32
    %c0_i32_1 = arith.constant 0 : i32
    return %c0_i32, %c0_i32_0 : i32, i32
  }
  func.func @transform_37(%arg0: i32) -> (i32, i32) {
    %c0_i32 = arith.constant 0 : i32
    %c0_i32_0 = arith.constant 0 : i32
    %c0_i32_1 = arith.constant 0 : i32
    return %c0_i32, %c0_i32_0 : i32, i32
  }
  func.func @transform_38(%arg0: i32) -> (i32, i32) {
    %c0_i32 = arith.constant 0 : i32
    %c0_i32_0 = arith.constant 0 : i32
    %c0_i32_1 = arith.constant 0 : i32
    return %c0_i32, %c0_i32_0 : i32, i32
  }
  func.func @transform_39(%arg0: i32) -> (i32, i32) {
    %c0_i32 = arith.constant 0 : i32
    %c0_i32_0 = arith.constant 0 : i32
    %c0_i32_1 = arith.constant 0 : i32
    return %c0_i32, %c0_i32_0 : i32, i32
  }
  func.func @transform_40(%arg0: i32) -> (i32, i32) {
    %c0_i32 = arith.constant 0 : i32
    %c0_i32_0 = arith.constant 0 : i32
    %c0_i32_1 = arith.constant 0 : i32
    return %c0_i32, %c0_i32_0 : i32, i32
  }
  func.func @transform_41(%arg0: i32) -> (i32, i32, i32) {
    %c0_i32 = arith.constant 0 : i32
    %c0_i32_0 = arith.constant 0 : i32
    %c0_i32_1 = arith.constant 0 : i32
    return %arg0, %c0_i32, %c0_i32_0 : i32, i32, i32
  }
}

</mosaic_0001>

<bundles_post_ra>
// kernel: model_forward.1
= control target key start
LH: loop header
LB: loop body
LE: loop exit
PB: predicated region body
PF: predicated region fallthrough
CT: control target
= control target key end

     0   :  { %s9477_s6 = smov 1   ;;  %s9478_s10 = smov 2   ;;  %s10599_s0 = inlined_call_operand.smem [shape: u32[42], index: -1, kind: input, shape index: {}] }
   0x1   :  { %s9539_s5 = sld [smem:[%s10599_s0]]   ;;  %s9479_s14 = smov 3  }
   0x2   :  { %s9544_s9 = sld [smem:[%s10599_s0 + %s9477_s6]]   ;;  %s9480_s18 = smov 4  }
   0x3   :  { %s9549_s13 = sld [smem:[%s10599_s0 + %s9478_s10]]   ;;  %s9481_s22 = smov 5  }
   0x4   :  { %s9554_s17 = sld [smem:[%s10599_s0 + %s9479_s14]]   ;;  %s9482_s26 = smov 6  }
   0x5   :  { %s9559_s21 = sld [smem:[%s10599_s0 + %s9480_s18]]   ;;  %s9483_s30 = smov 7  }
   0x6   :  { %s9564_s25 = sld [smem:[%s10599_s0 + %s9481_s22]]   ;;  %s9484_s4 = smov 8  }
   0x7   :  { %10656 = sst [smem:[#allocation2_spill]] %s9539_s5  ;;  %s9485_s10 = smov 9  }
   0x8   :  { %10657 = sst [smem:[#allocation3_spill]] %s9544_s9  ;;  %s9486_s15 = smov 10  }
   0x9   :  { %10658 = sst [smem:[#allocation4_spill]] %s9549_s13  ;;  %s9487_s20 = smov 11  }
   0xa   :  { %10659 = sst [smem:[#allocation5_spill]] %s9554_s17  ;;  %s9489_s1 = smov 13  }
   0xb   :  { %10660 = sst [smem:[#allocation6_spill]] %s9559_s21  ;;  %s9490_s7 = smov 14  }
   0xc   :  { %10661 = sst [smem:[#allocation7_spill]] %s9564_s25  ;;  %s9492_s22 = smov 16  }
   0xd   :  { %s9569_s29 = sld [smem:[%s10599_s0 + %s9482_s26]]   ;;  %s9488_s26 = smov 12  }
   0xe   :  { %s9574_s3 = sld [smem:[%s10599_s0 + %s9483_s30]]   ;;  %s9493_s28 = smov 17  }
   0xf   :  { %s9579_s8 = sld [smem:[%s10599_s0 + %s9484_s4]]  }
  0x10   :  { %s9584_s14 = sld [smem:[%s10599_s0 + %s9485_s10]]  }
  0x11   :  { %s9589_s19 = sld [smem:[%s10599_s0 + %s9486_s15]]   ;;  %s9491_s15 = smov 15  }
  0x12   :  { %s9594_s24 = sld [smem:[%s10599_s0 + %s9487_s20]]  }
  0x13   :  { %10662 = sst [smem:[#allocation8_spill]] %s9569_s29 }
  0x14   :  { %10663 = sst [smem:[#allocation9_spill]] %s9574_s3 }
  0x15   :  { %10664 = sst [smem:[#allocation10_spill]] %s9579_s8 }
  0x16   :  { %10665 = sst [smem:[#allocation11_spill]] %s9584_s14 }
  0x17   :  { %10666 = sst [smem:[#allocation12_spill]] %s9589_s19 }
  0x18   :  { %10667 = sst [smem:[#allocation13_spill]] %s9594_s24 }
  0x19   :  { %s9599_s30 = sld [smem:[%s10599_s0 + %s9488_s26]]  }
  0x1a   :  { %s9604_s6 = sld [smem:[%s10599_s0 + %s9489_s1]]  }
  0x1b   :  { %s9609_s12 = sld [smem:[%s10599_s0 + %s9490_s7]]   ;;  %s9494_s7 = smov 18  }
  0x1c   :  { %s9614_s20 = sld [smem:[%s10599_s0 + %s9491_s15]]   ;;  %s9495_s15 = smov 19  }
  0x1d   :  { %s9619_s27 = sld [smem:[%s10599_s0 + %s9492_s22]]   ;;  %s9496_s22 = smov 20  }
  0x1e   :  { %s9624_s4 = sld [smem:[%s10599_s0 + %s9493_s28]]   ;;  %s9497_s28 = smov 21  }
  0x1f   :  { %10668 = sst [smem:[#allocation14_spill]] %s9599_s30 }
  0x20   :  { %10669 = sst [smem:[#allocation15_spill]] %s9604_s6 }
  0x21   :  { %10670 = sst [smem:[#allocation16_spill]] %s9609_s12 }
  0x22   :  { %10671 = sst [smem:[#allocation17_spill]] %s9614_s20 }
  0x23   :  { %10672 = sst [smem:[#allocation18_spill]] %s9619_s27 }
  0x24   :  { %10673 = sst [smem:[#allocation19_spill]] %s9624_s4 }
  0x25   :  { %s9629_s13 = sld [smem:[%s10599_s0 + %s9494_s7]]   ;;  %s9498_s7 = smov 22  }
  0x26   :  { %s9634_s20 = sld [smem:[%s10599_s0 + %s9495_s15]]   ;;  %s9499_s15 = smov 23  }
  0x27   :  { %s9639_s27 = sld [smem:[%s10599_s0 + %s9496_s22]]   ;;  %s9500_s22 = smov 24  }
  0x28   :  { %s9644_s4 = sld [smem:[%s10599_s0 + %s9497_s28]]   ;;  %s9501_s28 = smov 25  }
  0x2b   :  { %10674 = sst [smem:[#allocation20_spill]] %s9629_s13 }
  0x2c   :  { %10675 = sst [smem:[#allocation21_spill]] %s9634_s20 }
  0x2d   :  { %10676 = sst [smem:[#allocation22_spill]] %s9639_s27 }
  0x2e   :  { %10677 = sst [smem:[#allocation23_spill]] %s9644_s4 }
  0x2f   :  { %s9649_s13 = sld [smem:[%s10599_s0 + %s9498_s7]]   ;;  %s9502_s7 = smov 26  }
  0x30   :  { %s9654_s20 = sld [smem:[%s10599_s0 + %s9499_s15]]   ;;  %s9503_s15 = smov 27  }
  0x31   :  { %s9659_s27 = sld [smem:[%s10599_s0 + %s9500_s22]]   ;;  %s9504_s22 = smov 28  }
  0x32   :  { %s9664_s4 = sld [smem:[%s10599_s0 + %s9501_s28]]   ;;  %s9505_s28 = smov 29  }
  0x35   :  { %10678 = sst [smem:[#allocation24_spill]] %s9649_s13 }
  0x36   :  { %10679 = sst [smem:[#allocation25_spill]] %s9654_s20 }
  0x37   :  { %10680 = sst [smem:[#allocation26_spill]] %s9659_s27 }
  0x38   :  { %10681 = sst [smem:[#allocation27_spill]] %s9664_s4 }
  0x39   :  { %s9669_s13 = sld [smem:[%s10599_s0 + %s9502_s7]]   ;;  %s9506_s7 = smov 30  }
  0x3a   :  { %s9674_s20 = sld [smem:[%s10599_s0 + %s9503_s15]]   ;;  %s9507_s15 = smov 31  }
  0x3b   :  { %s9679_s27 = sld [smem:[%s10599_s0 + %s9504_s22]]   ;;  %s9508_s22 = smov 32  }
  0x3c   :  { %s9684_s4 = sld [smem:[%s10599_s0 + %s9505_s28]]   ;;  %s9509_s28 = smov 33  }
  0x3f   :  { %10682 = sst [smem:[#allocation28_spill]] %s9669_s13 }
  0x40   :  { %10683 = sst [smem:[#allocation29_spill]] %s9674_s20 }
  0x41   :  { %10684 = sst [smem:[#allocation30_spill]] %s9679_s27 }
  0x42   :  { %10685 = sst [smem:[#allocation31_spill]] %s9684_s4 }
  0x43   :  { %s9689_s13 = sld [smem:[%s10599_s0 + %s9506_s7]]   ;;  %s9510_s7 = smov 34  }
  0x44   :  { %s9694_s20 = sld [smem:[%s10599_s0 + %s9507_s15]]   ;;  %s9511_s15 = smov 35  }
  0x45   :  { %s9699_s27 = sld [smem:[%s10599_s0 + %s9508_s22]]   ;;  %s9512_s22 = smov 36  }
  0x46   :  { %s9704_s4 = sld [smem:[%s10599_s0 + %s9509_s28]]   ;;  %s9513_s28 = smov 37  }
  0x49   :  { %10686 = sst [smem:[#allocation32_spill]] %s9689_s13 }
  0x4a   :  { %10687 = sst [smem:[#allocation33_spill]] %s9694_s20 }
  0x4b   :  { %10688 = sst [smem:[#allocation34_spill]] %s9699_s27 }
  0x4c   :  { %10689 = sst [smem:[#allocation35_spill]] %s9704_s4 }
  0x4d   :  { %s9709_s13 = sld [smem:[%s10599_s0 + %s9510_s7]]   ;;  %s9514_s7 = smov 38  }
  0x4e   :  { %s9714_s20 = sld [smem:[%s10599_s0 + %s9511_s15]]   ;;  %s9515_s15 = smov 39  }
  0x4f   :  { %s9719_s27 = sld [smem:[%s10599_s0 + %s9512_s22]]   ;;  %s9516_s22 = smov 40  }
  0x50   :  { %s9724_s4 = sld [smem:[%s10599_s0 + %s9513_s28]]   ;;  %s9517_s28 = smov 41  }
  0x53   :  { %10690 = sst [smem:[#allocation36_spill]] %s9709_s13 }
  0x54   :  { %10691 = sst [smem:[#allocation37_spill]] %s9714_s20 }
  0x55   :  { %10692 = sst [smem:[#allocation38_spill]] %s9719_s27 }
  0x56   :  { %10693 = sst [smem:[#allocation39_spill]] %s9724_s4 }
  0x57   :  { %s9729_s13 = sld [smem:[%s10599_s0 + %s9514_s7]]   ;;  %s9746_s7 = smov 0  }
  0x58   :  { %s9734_s20 = sld [smem:[%s10599_s0 + %s9515_s15]]  }
  0x59   :  { %s9739_s27 = sld [smem:[%s10599_s0 + %s9516_s22]]  }
  0x5a   :  { %s9744_s4 = sld [smem:[%s10599_s0 + %s9517_s28]]  }
  0x5d   :  { %10694 = sst [smem:[#allocation40_spill]] %s9729_s13 }
  0x5e   :  { %10695 = sst [smem:[#allocation41_spill]] %s9734_s20 }
  0x5f   :  { %10696 = sst [smem:[#allocation42_spill]] %s9739_s27 }
  0x60   :  { %10697 = sst [smem:[#allocation43_spill]] %s9744_s4 }
  0x61 LB: > { %s10698_s30 = sld [smem:[#allocation14_spill]]  ;;  %s10699_s29 = sld [smem:[#allocation8_spill]]  ;;  %s9475_s7 = sphi %s9746_s7, %s93_s7  }
  0x62   : > { %s10700_s25 = sld [smem:[#allocation7_spill]]  ;;  %s10701_s24 = sld [smem:[#allocation13_spill]] }
  0x63   : > { %s10702_s21 = sld [smem:[#allocation6_spill]]  ;;  %s10703_s19 = sld [smem:[#allocation12_spill]] }
  0x64   : > { %s10704_s17 = sld [smem:[#allocation5_spill]]  ;;  %s10705_s14 = sld [smem:[#allocation11_spill]] }
  0x65   : > { %s10706_s12 = sld [smem:[#allocation16_spill]]  ;;  %s10707_s8 = sld [smem:[#allocation10_spill]] }
  0x66   : > { %s10708_s6 = sld [smem:[#allocation15_spill]]  ;;  %s10709_s3 = sld [smem:[#allocation9_spill]] }
  0x67   : > { %10710 = sst [smem:[#allocation44_spill]] %s9475_s7  ;;  %s8212_s10 = sadd.s32 4294967295, %s9475_s7  }
  0x68   : > { %p8216_p0 = scmp.ge.s32.totalorder %s9475_s7, 1  ;;  %p1145_p1 = scmp.lt.s32.totalorder %s9475_s7, 3 }
  0x6a   : > { %p1146_p2 = pnand %p8216_p0, %p1145_p1 }
  0x6c   : > { %1149 = sbr.rel (%p1146_p2) target bundleno = 13202 (0x3392), region = 184 }
  0x73   : > { %s10711_s9 = sld [smem:[#allocation3_spill]]  ;;  %v9307_v0 = vld [vmem:[%s10704_s17] sm:$0xff]   ;;  %v9518_v1 = vmov 0.0   ;;  %v9308_v2 = vld [vmem:[%s10704_s17 + $0x8] sm:$0xff]   ;;  %vm9519_vm0 = vmmov 0   ;;  %p1250_p3 = scmp.lt.s32.totalorder %s8212_s10, 1 }
  0x74   : > { %8709 = vmatprep.subr.bf16.mxu0 %v9518_v1  ;;  %8717 = vmatprep.subr.mxu1 %v9518_v1  ;;  %vm1304_vm1 = vcmask 261120   ;;  %v8220_v5 = vld [vmem:[%s10702_s21] ss:$0 sm:$0xff]  ;;  %s10624_s15 = smov 64   ;;  %s10631_s16 = smov 96   ;;  %vm1351_vm2 = vcmask 64512  }
  0x75   : > { %8710 = vmatpush3.bf16.msra.mxu0 %v9307_v0  ;;  %8713 = vmatprep.mubr.msk.bf16.mxu0 %vm9519_vm0, %v9518_v1  ;;  %s10758_s10 = smov (!%p1250_p3, %s8212_s10), 1  ;;  %s10713_s5 = sld [smem:[#allocation2_spill]]  ;;  %vm2027_vm3 = vcmask 1043456   ;;  %vm2359_vm4 = vcmask 523264   ;;  %vm3772_vm6 = vcmask 46080   ;;  %vm3790_vm7 = vcmask 1045504  }
  0x76   : > { %8711 = vmatprep.subr.bf16.mxu0 %v9518_v1  ;;  %8719 = vmatprep.mubr.msk.f32.mxu1 %vm9519_vm0, %v9518_v1  ;;  %s9766_s0 = sshll.u32 %s10758_s10, 3  ;;  %s10633_s18 = smov 88   ;;  %vm3786_vm8 = vcmask 48128   ;;  %vm4567_vm9 = vcmask 259072   ;;  %vm4811_vm10 = vcmask 62464  }
  0x77   : > { %10712 = sst [smem:[#allocation45_spill]] %s9766_s0  ;;  %s10639_s22 = smov 120  }
  0x78   : > { %s10627_s26 = smov 72   ;;  %s10629_s28 = smov 80  }
  0x79   : > { %8712 = vmatpush3.bf16.msra.mxu0 %v9308_v2  ;;  %s1256_s11 = scalar_lea.vmem %s10711_s9, %s9766_s0  ;;  %s10637_s1 = smov 112  }
  0x7a   : > { %8732 = vmatprep.subr.mxu0 %v9518_v1  ;;  %v9771_v3 = vld [vmem:[%s1256_s11] sm:$0xff]  ;;  %s10635_s2 = smov 104   ;;  %s10620_s11 = smov 40  }
  0x7b   : > { %v1285_v4 = vpack.c.bf16 %v9771_v3, %v9771_v3  ;;  %s1252_s23 = scalar_lea.vmem %s10713_s5, %s10758_s10  ;;  %s10626_s10 = smov 56  }
  0x7c   : > { %v9798_v13 = vld [vmem:[%s1252_s23] ss:$0 sm:$0xff]  ;;  %s10622_s23 = smov 48   ;;  %s10729_s5 = smov 120  }
  0x7d   : > { %8714 = vmatmul.mubr.msk.bf16.vlgmr.msra.gmra.mrb[0].mxu0 %vm1304_vm1, %v1285_v4  ;;  %s10732_s9 = smov 104   ;;  %s10742_s7 = sld [smem:[#allocation30_spill]] }
  0x7e   : > { %8734 = vmatprep.mubr.msk.f32.mxu0 %vm9519_vm0, %v9518_v1  ;;  %s10745_s27 = sld [smem:[#allocation34_spill]]  ;;  %s10748_s20 = sld [smem:[#allocation36_spill]] }
  0x83   : > { %s10743_s4 = smov %s10742_s7 }
 0x150   : > { %v1342_v6 = vpop.f32.mrb[0].mxu0 }
 0x151   : > { %v9779_v7 = vadd.f32 %v8220_v5, %v1342_v6  ;;  %v8715_v8 = vpop.f32.mrb[1].mxu0 }
 0x152   : > { %v1345_v9 = vpop.f32.mrb[2].mxu0 }
 0x153   : > { %1445 = vrot.lane.b32.xlu1 %v9779_v7, %s10624_s15  ;;  %1349 = vrot.lane.b32.xlu0 %v9779_v7, %s10631_s16  ;;  %v8716_v10 = vpop.f32.mrb[3].mxu0 }
 0x157   : > { %1523 = vrot.lane.b32.xlu1 %v9779_v7, %s10633_s18 }
 0x15b   : > { %1521 = vrot.lane.b32.xlu1 %v9779_v7, %s10639_s22 }
 0x1c5   : > { %v1350_v11 = vpop.permute.xlu0 %1349  ;;  %v1446_v12 = vpop.permute.xlu1 %1445 }
 0x1c6   : > { %8718 = vmatpush3.xpose.msk.msra.mxu1 %vm1351_vm2, %v1350_v11 }
 0x1c7   : > { %8722 = vmatprep.subr.mxu1 %v9518_v1 }
 0x1c9   : > { %8720 = vmatmul.mubr.msk.f32.vlgmr.msra.gmra.mrb[0].mxu1 %vm1351_vm2, %v9779_v7  ;;  %v1524_v24 = vpop.permute.xlu1 %1523 }
 0x1ca   : > { %8723 = vmatpush3.msra.mxu1 %v1446_v12  ;;  %8724 = vmatprep.mubr.msk.f32.mxu1 %vm9519_vm0, %v9518_v1  ;;  %v1280_v12 = vld [vmem:[%s10700_s25] sm:$0xf] }
 0x1cb   : > { %8727 = vmatprep.subr.mxu1 %v9518_v1 }
 0x1cd   : > { %v1522_v25 = vpop.permute.xlu1 %1521 }
 0x29c   : > { %v1422_v14 = vpop.f32.mrb[0].mxu1 }
 0x29d   : > { %v1426_v15 = vmul.f32 0.35355338, %v1422_v14  ;;  %v8721_v16 = vpop.f32.mrb[1].mxu1 }
 0x29f   : > { %v1433_v17 = vadd.f32 %v9798_v13, %v1426_v15 }
 0x2a1   : > { %v1434_v18 = vsel %vm1351_vm2, %v1433_v17, -inf }
 0x2a2   : > { %1435 = vmax.xlane.f32.xlu0 %v1434_v18 }
 0x2b8   : > { %1857 = vrot.lane.b32.xlu0 %v9779_v7, %s10627_s26 }
 0x32f   : > { %v1436_v19 = vpop.xlane.xlu0 %1435 }
 0x330   : > { %v1437_v20 = vsub.f32 %v1433_v17, %v1436_v19  ;;  %v2075_v17 = vsel %vm2027_vm3, %v1280_v12, 0  ;;  %v1281_v19 = vld [vmem:[%s10700_s25 + $0x4] sm:$0xf] }
 0x332   : > { %v1438_v21 = vmul.f32 1.442695, %v1437_v20  ;;  %v2029_v20 = vsel %vm2027_vm3, %v1281_v19, 0 }
 0x333   : > { %v1858_v31 = vpop.permute.xlu0 %1857 }
 0x334   : > { %9349 = vpow2.f32 %v1438_v21  ;;  %v1283_v21 = vld [vmem:[%s10700_s25 + $0xc] sm:$0xf] }
 0x33e   : > { %v9350_v22 = vpop.eup %9349 }
 0x33f   : > { %v1440_v23 = vsel %vm1351_vm2, %v9350_v22, 0.0 }
 0x340   : > { %1441 = vadd.xlane.f32.xlu1 %v1440_v23  ;;  %v1282_v23 = vld [vmem:[%s10700_s25 + $0x8] sm:$0xf] }
 0x351   : > { %1690 = vrot.lane.b32.xlu1 %v9779_v7, %s10629_s28 }
 0x355   : > { %1688 = vrot.lane.b32.xlu1 %v9779_v7, %s10637_s1 }
 0x359   : > { %1855 = vrot.lane.b32.xlu1 %v9779_v7, %s10635_s2 }
 0x3cd   : > { %v1442_v26 = vpop.xlane.xlu1 %1441 }
 0x3ce   : > { %9351 = vrcp.f32 %v1442_v26 }
 0x3d1   : > { %v1691_v29 = vpop.permute.xlu1 %1690 }
 0x3d5   : > { %v1689_v30 = vpop.permute.xlu1 %1688 }
 0x3d8   : > { %v9352_v27 = vpop.eup %9351 }
 0x3d9   : > { %v1444_v28 = vmul.f32 %v9352_v27, %v9350_v22  ;;  %v1856_v32 = vpop.permute.xlu1 %1855  ;;  %v2170_v22 = vsel %vm2027_vm3, %v1283_v21, 0  ;;  %v2122_v27 = vsel %vm2027_vm3, %v1282_v23, 0 }
 0x3db   : > { %8725 = vmatmul.mubr.msk.f32.vlgmr.msra.gmra.mrb[2].mxu1 %vm1351_vm2, %v1444_v28 }
 0x3dc   : > { %8728 = vmatpush3.xpose.msk.msra.mxu1 %vm1351_vm2, %v1524_v24  ;;  %8729 = vmatprep.mubr.msk.f32.mxu1 %vm9519_vm0, %v9518_v1 }
 0x3dd   : > { %8737 = vmatprep.subr.mxu1 %v9518_v1 }
 0x3df   : > { %8730 = vmatmul.mubr.msk.f32.vlgmr.msra.gmra.mrb[4].mxu1 %vm1351_vm2, %v1522_v25 }
 0x3e0   : > { %8738 = vmatpush3.xpose.msk.msra.mxu1 %vm1351_vm2, %v1691_v29  ;;  %8739 = vmatprep.mubr.msk.f32.mxu1 %vm9519_vm0, %v9518_v1 }
 0x3e1   : > { %8747 = vmatprep.subr.mxu1 %v9518_v1 }
 0x3e3   : > { %8740 = vmatmul.mubr.msk.f32.vlgmr.msra.gmra.mrb[6].mxu1 %vm1351_vm2, %v1689_v30 }
 0x3e4   : > { %8748 = vmatpush3.xpose.msk.msra.mxu1 %vm1351_vm2, %v1858_v31  ;;  %8749 = vmatprep.mubr.msk.f32.mxu1 %vm9519_vm0, %v9518_v1 }
 0x3e5   : > { %8757 = vmatprep.subr.bf16.mxu1 %v9518_v1 }
 0x3e7   : > { %8750 = vmatmul.mubr.msk.f32.vlgmr.msra.gmra.mrb[8].mxu1 %vm1351_vm2, %v1856_v32 }
 0x3e8   : > { %8759 = vmatprep.mubr.msk.bf16.mxu1 %vm9519_vm0, %v9518_v1  ;;  %8758 = vmatpush3.bf16.msra.mxu1 %v2029_v20 }
 0x3e9   : > { %8769 = vmatprep.subr.bf16.mxu1 %v9518_v1 }
 0x4ae   : > { %v9829_v33 = vpop.f32.mrb[2].mxu1 }
 0x4af   : > { %v8726_v34 = vpop.f32.mrb[3].mxu1  ;;  %v2022_v18 = vpack.c.bf16 %v9829_v33, %v9829_v33 }
 0x4b2   : > { %v1595_v35 = vpop.f32.mrb[4].mxu1 }
 0x4b3   : > { %v1599_v36 = vmul.f32 0.35355338, %v1595_v35  ;;  %v8731_v37 = vpop.f32.mrb[5].mxu1 }
 0x4b5   : > { %v1600_v38 = vadd.f32 %v9798_v13, %v1599_v36 }
 0x4b6   : > { %v1762_v39 = vpop.f32.mrb[6].mxu1 }
 0x4b7   : > { %v1766_v40 = vmul.f32 0.35355338, %v1762_v39  ;;  %v8741_v41 = vpop.f32.mrb[7].mxu1  ;;  %v1601_v42 = vsel %vm1351_vm2, %v1600_v38, -inf }
 0x4b8   : > { %1602 = vmax.xlane.f32.xlu1 %v1601_v42 }
 0x4b9   : > { %v1767_v43 = vadd.f32 %v9798_v13, %v1766_v40 }
 0x4ba   : > { %v1929_v44 = vpop.f32.mrb[8].mxu1 }
 0x4bb   : > { %v1933_v45 = vmul.f32 0.35355338, %v1929_v44  ;;  %v8751_v46 = vpop.f32.mrb[9].mxu1  ;;  %v1768_v47 = vsel %vm1351_vm2, %v1767_v43, -inf }
 0x4bc   : > { %1769 = vmax.xlane.f32.xlu0 %v1768_v47 }
 0x4bd   : > { %v1934_v48 = vadd.f32 %v9798_v13, %v1933_v45 }
 0x4bf   : > { %v1935_v49 = vsel %vm1351_vm2, %v1934_v48, -inf }
 0x4c0   : > { %1936 = vmax.xlane.f32.xlu1 %v1935_v49 }
 0x4d1   : > { %1612 = vrot.lane.b32.xlu1 %v9779_v7, %s10626_s10 }
 0x545   : > { %v1603_v50 = vpop.xlane.xlu1 %1602 }
 0x546   : > { %v1604_v51 = vsub.f32 %v1600_v38, %v1603_v50 }
 0x548   : > { %v1605_v52 = vmul.f32 1.442695, %v1604_v51 }
 0x549   : > { %v1770_v53 = vpop.xlane.xlu0 %1769 }
 0x54a   : > { %9353 = vpow2.f32 %v1605_v52  ;;  %v1771_v54 = vsub.f32 %v1767_v43, %v1770_v53 }
 0x54c   : > { %v1772_v55 = vmul.f32 1.442695, %v1771_v54 }
 0x54d   : > { %v1937_v56 = vpop.xlane.xlu1 %1936 }
 0x54e   : > { %9355 = vpow2.f32 %v1772_v55  ;;  %v1938_v57 = vsub.f32 %v1934_v48, %v1937_v56  ;;  %v8241_v48 = vld [vmem:[%s10699_s29] ss:$0 sm:$0xff] }
 0x550   : > { %v1939_v58 = vmul.f32 1.442695, %v1938_v57 }
 0x551   : > { %v1613_v59 = vpop.permute.xlu1 %1612 }
 0x552   : > { %9357 = vpow2.f32 %v1939_v58  ;;  %8733 = vmatpush3.msra.mxu0 %v1613_v59 }
 0x553   : > { %8742 = vmatprep.subr.mxu0 %v9518_v1 }
 0x554   : > { %v9354_v60 = vpop.eup %9353 }
 0x555   : > { %v1607_v61 = vsel %vm1351_vm2, %v9354_v60, 0.0 }
 0x556   : > { %1608 = vadd.xlane.f32.xlu1 %v1607_v61 }
 0x558   : > { %v9356_v62 = vpop.eup %9355 }
 0x559   : > { %v1774_v63 = vsel %vm1351_vm2, %v9356_v62, 0.0 }
 0x55a   : > { %1775 = vadd.xlane.f32.xlu1 %v1774_v63  ;;  %v9310_v63 = vld [vmem:[%s10705_s14 + $0x8] sm:$0xff]  }
 0x55c   : > { %v9358_v0 = vpop.eup %9357 }
 0x55d   : > { %v1941_v2 = vsel %vm1351_vm2, %v9358_v0, 0.0 }
 0x55e   : > { %1942 = vadd.xlane.f32.xlu0 %v1941_v2 }
 0x56b   : > { %1946 = vrot.lane.b32.xlu1 %v9779_v7, %s10620_s11 }
 0x574   : > { %1779 = vrot.lane.b32.xlu0 %v9779_v7, %s10622_s23 }
 0x5e3   : > { %v1609_v4 = vpop.xlane.xlu1 %1608 }
 0x5e4   : > { %9359 = vrcp.f32 %v1609_v4 }
 0x5e7   : > { %v1776_v5 = vpop.xlane.xlu1 %1775 }
 0x5e8   : > { %9361 = vrcp.f32 %v1776_v5 }
 0x5eb   : > { %v1943_v6 = vpop.xlane.xlu0 %1942  ;;  %v1947_v14 = vpop.permute.xlu1 %1946 }
 0x5ec   : > { %9363 = vrcp.f32 %v1943_v6 }
 0x5ee   : > { %v9360_v8 = vpop.eup %9359 }
 0x5ef   : > { %v1780_v9 = vpop.permute.xlu0 %1779  ;;  %v1611_v10 = vmul.f32 %v9360_v8, %v9354_v60  ;;  %v8242_v8 = vld [vmem:[%s10709_s3] ss:$0 sm:$0xff] }
 0x5f1   : > { %8735 = vmatmul.mubr.msk.f32.vlgmr.msra.gmra.mrb[4].mxu0 %vm1351_vm2, %v1611_v10  ;;  %v8243_v10 = vld [vmem:[%s10707_s8] ss:$0 sm:$0xff] }
 0x5f2   : > { %v9362_v11 = vpop.eup %9361  ;;  %8743 = vmatpush3.msra.mxu0 %v1780_v9  ;;  %8744 = vmatprep.mubr.msk.f32.mxu0 %vm9519_vm0, %v9518_v1 }
 0x5f3   : > { %8752 = vmatprep.subr.mxu0 %v9518_v1  ;;  %v1778_v7 = vmul.f32 %v9362_v11, %v9356_v62  ;;  %v9309_v62 = vld [vmem:[%s10705_s14] sm:$0xff]  }
 0x5f5   : > { %8745 = vmatmul.mubr.msk.f32.vlgmr.msra.gmra.mrb[6].mxu0 %vm1351_vm2, %v1778_v7 }
 0x5f6   : > { %v9364_v15 = vpop.eup %9363  ;;  %8753 = vmatpush3.msra.mxu0 %v1947_v14  ;;  %8754 = vmatprep.mubr.msk.f32.mxu0 %vm9519_vm0, %v9518_v1  ;;  %v9313_v14 = vld [vmem:[%s10701_s24 + $0x10] sm:$0xff]  }
 0x5f7   : > { %v1945_v16 = vmul.f32 %v9364_v15, %v9358_v0  ;;  %8763 = vmatprep.subr.bf16.mxu0 %v9518_v1  ;;  %v9312_v0 = vld [vmem:[%s10701_s24 + $0x8] sm:$0xff]   ;;  %v9314_v15 = vld [vmem:[%s10701_s24 + $0x18] sm:$0xff]  }
 0x5f9   : > { %8755 = vmatmul.mubr.msk.f32.vlgmr.msra.gmra.mrb[8].mxu0 %vm1351_vm2, %v1945_v16  ;;  %v8244_v16 = vld [vmem:[%s10703_s19] ss:$0 sm:$0xff] }
 0x5fa   : > { %8764 = vmatpush3.bf16.msra.mxu0 %v2075_v17  ;;  %8765 = vmatprep.mubr.msk.bf16.mxu0 %vm9519_vm0, %v9518_v1 }
 0x5fb   : > { %8775 = vmatprep.subr.bf16.mxu0 %v9518_v1 }
 0x5fd   : > { %8766 = vmatmul.mubr.msk.bf16.vlgmr.msra.gmra.mrb[12].mxu0 %vm1351_vm2, %v2022_v18 }
 0x5fe   : > { %8777 = vmatprep.mubr.msk.bf16.mxu0 %vm9519_vm0, %v9518_v1  ;;  %8776 = vmatpush3.bf16.msra.mxu0 %v2170_v22 }
 0x5ff   : > { %8789 = vmatprep.subr.bf16.mxu0 %v9518_v1 }
 0x6c4   : > { %v1684_v24 = vpop.f32.mrb[4].mxu0 }
 0x6c5   : > { %v2023_v25 = vpack.c.bf16 %v1684_v24, %v1684_v24  ;;  %v8736_v26 = vpop.f32.mrb[5].mxu0  ;;  %v8248_v24 = vld [vmem:[%s10698_s30] ss:$0 sm:$0xff] }
 0x6c7   : > { %8760 = vmatmul.mubr.msk.bf16.vlgmr.msra.gmra.mrb[12].mxu1 %vm1351_vm2, %v2023_v25 }
 0x6c8   : > { %v1851_v28 = vpop.f32.mrb[6].mxu0  ;;  %8770 = vmatpush3.bf16.msra.mxu1 %v2122_v27  ;;  %8771 = vmatprep.mubr.msk.bf16.mxu1 %vm9519_vm0, %v9518_v1 }
 0x6c9   : > { %v8746_v29 = vpop.f32.mrb[7].mxu0  ;;  %8781 = vmatprep.subr.bf16.mxu1 %v9518_v1  ;;  %v2117_v31 = vpack.c.bf16 %v1851_v28, %v1851_v28 }
 0x6cc   : > { %v2018_v30 = vpop.f32.mrb[8].mxu0 }
 0x6cd   : > { %v2165_v32 = vpack.c.bf16 %v2018_v30, %v2018_v30  ;;  %v8756_v33 = vpop.f32.mrb[9].mxu0 }
 0x6cf   : > { %8772 = vmatmul.mubr.msk.bf16.vlgmr.msra.gmra.mrb[16].mxu1 %vm1351_vm2, %v2117_v31  ;;  %8778 = vmatmul.mubr.msk.bf16.vlgmr.msra.gmra.mrb[16].mxu0 %vm1351_vm2, %v2165_v32 }
 0x6d0   : > { %v2111_v34 = vpop.f32.mrb[12].mxu0  ;;  %8785 = vmatprep.mubr.msk.bf16.mxu1 %vm9519_vm0, %v9518_v1  ;;  %8797 = vmatprep.mubr.msk.bf16.mxu0 %vm9519_vm0, %v9518_v1 }
 0x6d1   : > { %v8767_v35 = vpop.f32.mrb[13].mxu0  ;;  %8782 = vmatpush3.bf16.msra.mxu1 %v9309_v62 }
 0x6d2   : > { %v2114_v36 = vpop.f32.mrb[14].mxu0  ;;  %8783 = vmatprep.subr.bf16.mxu1 %v9518_v1 }
 0x6d3   : > { %v8768_v37 = vpop.f32.mrb[15].mxu0 }
 0x6d4   : > { %v9315_v37 = vld [vmem:[%s10704_s17 + $0x10] sm:$0xff]  }
 0x6d5   : > { %8784 = vmatpush3.bf16.msra.mxu1 %v9310_v63 }
 0x6d6   : > { %8801 = vmatprep.subr.bf16.mxu1 %v9518_v1 }
 0x79a   : > { %v2065_v38 = vpop.f32.mrb[12].mxu1 }
 0x79b   : > { %v2112_v39 = vadd.f32 %v2111_v34, %v2065_v38  ;;  %v8761_v40 = vpop.f32.mrb[13].mxu1  ;;  %v9316_v38 = vld [vmem:[%s10704_s17 + $0x18] sm:$0xff]   ;;  %s10735_s17 = smov 80  }
 0x79c   : > { %v2068_v41 = vpop.f32.mrb[14].mxu1 }
 0x79d   : > { %v8762_v42 = vpop.f32.mrb[15].mxu1 }
 0x7a2   : > { %v2158_v43 = vpop.f32.mrb[16].mxu1  ;;  %v2206_v44 = vpop.f32.mrb[16].mxu0 }
 0x7a3   : > { %v2164_v45 = vadd.f32 %v2158_v43, %v2112_v39  ;;  %v8773_v46 = vpop.f32.mrb[17].mxu1  ;;  %v8779_v47 = vpop.f32.mrb[17].mxu0  ;;  %v8254_v43 = vld [vmem:[%s10708_s6] ss:$0 sm:$0xff] }
 0x7a4   : > { %v2161_v49 = vpop.f32.mrb[18].mxu1  ;;  %v2209_v50 = vpop.f32.mrb[18].mxu0 }
 0x7a5   : > { %v2212_v51 = vadd.f32 %v2206_v44, %v2164_v45  ;;  %v8774_v52 = vpop.f32.mrb[19].mxu1  ;;  %v8780_v53 = vpop.f32.mrb[19].mxu0  ;;  %v8255_v45 = vld [vmem:[%s10706_s12] ss:$0 sm:$0xff]  ;;  %v8266_v49 = vld [vmem:[%s10702_s21 + $0x1] ss:$0 sm:$0xff] }
 0x7a6   : > { %s10737_s21 = sld [smem:[#allocation27_spill]] }
 0x7a7   : > { %v2219_v54 = vadd.f32 %v8241_v48, %v2212_v51 }
 0x7a9   : > { %v2220_v55 = vadd.f32 %v2219_v54, %v9771_v3  ;;  %v9311_v3 = vld [vmem:[%s10701_s24] sm:$0xff]  }
 0x7aa   : > { %8790 = vmatpush3.bf16.msra.mxu0 %v9311_v3 }
 0x7ab   : > { %v2223_v56 = vsel %vm1304_vm1, %v2220_v55, 0.0  ;;  %8791 = vmatprep.subr.bf16.mxu0 %v9518_v1 }
 0x7ac   : > { %2224 = vadd.xlane.f32.xlu1 %v2223_v56 }
 0x7ae   : > { %8792 = vmatpush3.bf16.msra.mxu0 %v9312_v0 }
 0x7af   : > { %8793 = vmatprep.subr.bf16.mxu0 %v9518_v1 }
 0x7b2   : > { %8794 = vmatpush3.bf16.msra.mxu0 %v9313_v14 }
 0x7b3   : > { %8795 = vmatprep.subr.bf16.mxu0 %v9518_v1 }
 0x7b6   : > { %8796 = vmatpush3.bf16.msra.mxu0 %v9314_v15 }
 0x7b7   : > { %8814 = vmatprep.subr.mxu0 %v9518_v1 }
 0x839   : > { %v2225_v57 = vpop.xlane.xlu1 %2224 }
 0x83a   : > { %v2227_v58 = vmul.f32 0.03125, %v2225_v57 }
 0x83c   : > { %v2228_v59 = vsub.f32 %v2220_v55, %v2227_v58 }
 0x83e   : > { %v2229_v60 = vmul.f32 %v2228_v59, %v2228_v59 }
 0x840   : > { %v2230_v61 = vsel %vm1304_vm1, %v2229_v60, 0.0 }
 0x841   : > { %2231 = vadd.xlane.f32.xlu0 %v2230_v61 }
 0x8ce   : > { %v2232_v2 = vpop.xlane.xlu0 %2231 }
 0x8cf   : > { %v2233_v4 = vmul.f32 0.03125, %v2232_v2 }
 0x8d1   : > { %v2234_v5 = vadd.f32 1e-05, %v2233_v4 }
 0x8d3   : > { %9365 = vrsqrt.f32 %v2234_v5 }
 0x8dd   : > { %v9366_v6 = vpop.eup %9365 }
 0x8de   : > { %v2236_v9 = vmul.f32 %v9366_v6, %v2228_v59 }
 0x8e0   : > { %v2243_v11 = vmul.f32 %v8242_v8, %v2236_v9 }
 0x8e2   : > { %v2250_v7 = vadd.f32 %v8243_v10, %v2243_v11 }
 0x8e4   : > { %v2265_v12 = vpack.c.bf16 %v2250_v7, %v2250_v7 }
 0x8e6   : > { %8786 = vmatmul.mubr.msk.bf16.vlgmr.msra.gmra.mrb[20].mxu1 %vm1304_vm1, %v2265_v12 }
 0x8e7   : > { %8805 = vmatprep.mubr.msk.bf16.mxu1 %vm9519_vm0, %v9518_v1  ;;  %8802 = vmatpush3.bf16.msra.mxu1 %v9315_v37 }
 0x8e8   : > { %8803 = vmatprep.subr.bf16.mxu1 %v9518_v1 }
 0x8eb   : > { %8804 = vmatpush3.bf16.msra.mxu1 %v9316_v38 }
 0x8ec   : > { %8809 = vmatprep.subr.mxu1 %v9518_v1 }
 0x9b9   : > { %v2321_v17 = vpop.f32.mrb[20].mxu1 }
 0x9ba   : > { %v2322_v18 = vadd.f32 %v8244_v16, %v2321_v17  ;;  %v8787_v19 = vpop.f32.mrb[21].mxu1 }
 0x9bb   : > { %v2324_v20 = vpop.f32.mrb[22].mxu1 }
 0x9bc   : > { %v2327_v21 = vmax.f32 %v2322_v18, 0.0  ;;  %v8788_v22 = vpop.f32.mrb[23].mxu1 }
 0x9be   : > { %v2328_v23 = vpack.c.bf16 %v2327_v21, %v2327_v21 }
 0x9c0   : > { %8798 = vmatmul.mubr.msk.bf16.vlgmr.msra.gmra.mrb[20].mxu0 %vm2359_vm4, %v2328_v23 }
 0x9c1   : > { %8816 = vmatprep.mubr.msk.f32.mxu0 %vm9519_vm0, %v9518_v1 }
 0xa93   : > { %v2397_v25 = vpop.f32.mrb[20].mxu0 }
 0xa94   : > { %v2398_v26 = vadd.f32 %v8248_v24, %v2397_v25  ;;  %v8799_v27 = vpop.f32.mrb[21].mxu0 }
 0xa95   : > { %v2400_v28 = vpop.f32.mrb[22].mxu0 }
 0xa96   : > { %v8800_v29 = vpop.f32.mrb[23].mxu0  ;;  %v2403_v30 = vadd.f32 %v2398_v26, %v2250_v7 }
 0xa98   : > { %v2406_v31 = vsel %vm1304_vm1, %v2403_v30, 0.0 }
 0xa99   : > { %2407 = vadd.xlane.f32.xlu0 %v2406_v31 }
 0xb26   : > { %v2408_v32 = vpop.xlane.xlu0 %2407 }
 0xb27   : > { %v2409_v33 = vmul.f32 0.03125, %v2408_v32 }
 0xb29   : > { %v2410_v34 = vsub.f32 %v2403_v30, %v2409_v33 }
 0xb2b   : > { %v2411_v35 = vmul.f32 %v2410_v34, %v2410_v34 }
 0xb2d   : > { %v2412_v36 = vsel %vm1304_vm1, %v2411_v35, 0.0 }
 0xb2e   : > { %2413 = vadd.xlane.f32.xlu1 %v2412_v36 }
 0xbbb   : > { %v2414_v39 = vpop.xlane.xlu1 %2413 }
 0xbbc   : > { %v2415_v40 = vmul.f32 0.03125, %v2414_v39 }
 0xbbe   : > { %v2416_v41 = vadd.f32 1e-05, %v2415_v40 }
 0xbc0   : > { %9367 = vrsqrt.f32 %v2416_v41 }
 0xbca   : > { %v9368_v42 = vpop.eup %9367 }
 0xbcb   : > { %v2418_v44 = vmul.f32 %v9368_v42, %v2410_v34 }
 0xbcd   : > { %v2425_v46 = vmul.f32 %v8254_v43, %v2418_v44 }
 0xbcf   : > { %v9918_v47 = vadd.f32 %v8255_v45, %v2425_v46 }
 0xbd1   : > { %v2447_v48 = vpack.c.bf16 %v9918_v47, %v9918_v47 }
 0xbd3   : > { %8806 = vmatmul.mubr.msk.bf16.vlgmr.msra.gmra.mrb[24].mxu1 %vm1304_vm1, %v2447_v48 }
 0xbd4   : > { %8811 = vmatprep.mubr.msk.f32.mxu1 %vm9519_vm0, %v9518_v1 }
 0xca6   : > { %v2503_v50 = vpop.f32.mrb[24].mxu1 }
 0xca7   : > { %v9926_v51 = vadd.f32 %v8266_v49, %v2503_v50  ;;  %v8807_v52 = vpop.f32.mrb[25].mxu1 }
 0xca8   : > { %v2506_v53 = vpop.f32.mrb[26].mxu1 }
 0xca9   : > { %2677 = vrot.lane.b32.xlu1 %v9926_v51, %s10633_s18  ;;  %2510 = vrot.lane.b32.xlu0 %v9926_v51, %s10631_s16  ;;  %v8808_v54 = vpop.f32.mrb[27].mxu1 }
 0xcad   : > { %2675 = vrot.lane.b32.xlu1 %v9926_v51, %s10639_s22  ;;  %2844 = vrot.lane.b32.xlu0 %v9926_v51, %s10629_s28 }
 0xcb1   : > { %2842 = vrot.lane.b32.xlu1 %v9926_v51, %s10637_s1  ;;  %3011 = vrot.lane.b32.xlu0 %v9926_v51, %s10627_s26 }
 0xcb5   : > { %3009 = vrot.lane.b32.xlu1 %v9926_v51, %s10635_s2 }
 0xd1b   : > { %v2678_v55 = vpop.permute.xlu1 %2677  ;;  %v2511_v56 = vpop.permute.xlu0 %2510 }
 0xd1c   : > { %8810 = vmatpush3.xpose.msk.msra.mxu1 %vm1351_vm2, %v2511_v56  ;;  %v8261_v56 = vld [vmem:[%s10700_s25 + $0x10] sm:$0xf] }
 0xd1d   : > { %8819 = vmatprep.subr.mxu1 %v9518_v1 }
 0xd1f   : > { %v2676_v57 = vpop.permute.xlu1 %2675  ;;  %8812 = vmatmul.mubr.msk.f32.vlgmr.msra.gmra.mrb[10].mxu1 %vm1351_vm2, %v9926_v51  ;;  %v2845_v58 = vpop.permute.xlu0 %2844 }
 0xd20   : > { %8820 = vmatpush3.xpose.msk.msra.mxu1 %vm1351_vm2, %v2678_v55  ;;  %8821 = vmatprep.mubr.msk.f32.mxu1 %vm9519_vm0, %v9518_v1 }
 0xd21   : > { %8829 = vmatprep.subr.mxu1 %v9518_v1 }
 0xd23   : > { %8822 = vmatmul.mubr.msk.f32.vlgmr.msra.gmra.mrb[28].mxu1 %vm1351_vm2, %v2676_v57  ;;  %v2843_v59 = vpop.permute.xlu1 %2842  ;;  %v3012_v60 = vpop.permute.xlu0 %3011  ;;  %v3228_v57 = vsel %vm2027_vm3, %v8261_v56, 0 }
 0xd24   : > { %8830 = vmatpush3.xpose.msk.msra.mxu1 %vm1351_vm2, %v2845_v58  ;;  %8831 = vmatprep.mubr.msk.f32.mxu1 %vm9519_vm0, %v9518_v1  ;;  %v8262_v58 = vld [vmem:[%s10700_s25 + $0x14] sm:$0xf] }
 0xd25   : > { %8839 = vmatprep.subr.mxu1 %v9518_v1 }
 0xd27   : > { %8832 = vmatmul.mubr.msk.f32.vlgmr.msra.gmra.mrb[30].mxu1 %vm1351_vm2, %v2843_v59  ;;  %v3010_v61 = vpop.permute.xlu1 %3009  ;;  %v3182_v59 = vsel %vm2027_vm3, %v8262_v58, 0 }
 0xd28   : > { %8840 = vmatpush3.xpose.msk.msra.mxu1 %vm1351_vm2, %v3012_v60  ;;  %8841 = vmatprep.mubr.msk.f32.mxu1 %vm9519_vm0, %v9518_v1  ;;  %v8264_v60 = vld [vmem:[%s10700_s25 + $0x1c] sm:$0xf] }
 0xd29   : > { %8849 = vmatprep.subr.bf16.mxu1 %v9518_v1 }
 0xd2b   : > { %8842 = vmatmul.mubr.msk.f32.vlgmr.msra.gmra.mrb[32].mxu1 %vm1351_vm2, %v3010_v61 }
 0xd2c   : > { %8851 = vmatprep.mubr.msk.bf16.mxu1 %vm9519_vm0, %v9518_v1  ;;  %8850 = vmatpush3.bf16.msra.mxu1 %v3182_v59  ;;  %v9323_v59 = vld [vmem:[%s10701_s24 + $0x30] sm:$0xff]  }
 0xd2d   : > { %8861 = vmatprep.subr.bf16.mxu1 %v9518_v1 }
 0xdf2   : > { %v2582_v62 = vpop.f32.mrb[10].mxu1 }
 0xdf3   : > { %v2586_v63 = vmul.f32 0.35355338, %v2582_v62  ;;  %v8813_v3 = vpop.f32.mrb[11].mxu1 }
 0xdf4   : > { %v3323_v3 = vsel %vm2027_vm3, %v8264_v60, 0  ;;  %v9324_v60 = vld [vmem:[%s10701_s24 + $0x38] sm:$0xff]  }
 0xdf5   : > { %v2587_v0 = vadd.f32 %v9798_v13, %v2586_v63 }
 0xdf6   : > { %v2749_v2 = vpop.f32.mrb[28].mxu1 }
 0xdf7   : > { %v2753_v4 = vmul.f32 0.35355338, %v2749_v2  ;;  %v8823_v5 = vpop.f32.mrb[29].mxu1  ;;  %v2588_v6 = vsel %vm1351_vm2, %v2587_v0, -inf }
 0xdf8   : > { %2589 = vmax.xlane.f32.xlu0 %v2588_v6 }
 0xdf9   : > { %v2754_v8 = vadd.f32 %v9798_v13, %v2753_v4 }
 0xdfa   : > { %v2916_v9 = vpop.f32.mrb[30].mxu1 }
 0xdfb   : > { %v2920_v10 = vmul.f32 0.35355338, %v2916_v9  ;;  %v8833_v11 = vpop.f32.mrb[31].mxu1  ;;  %v2755_v7 = vsel %vm1351_vm2, %v2754_v8, -inf }
 0xdfc   : > { %2756 = vmax.xlane.f32.xlu1 %v2755_v7 }
 0xdfd   : > { %v2921_v12 = vadd.f32 %v9798_v13, %v2920_v10 }
 0xdfe   : > { %v3083_v14 = vpop.f32.mrb[32].mxu1 }
 0xdff   : > { %v3087_v15 = vmul.f32 0.35355338, %v3083_v14  ;;  %v8843_v16 = vpop.f32.mrb[33].mxu1  ;;  %v2922_v17 = vsel %vm1351_vm2, %v2921_v12, -inf }
 0xe00   : > { %2923 = vmax.xlane.f32.xlu0 %v2922_v17 }
 0xe01   : > { %v3088_v18 = vadd.f32 %v9798_v13, %v3087_v15 }
 0xe03   : > { %v3089_v19 = vsel %vm1351_vm2, %v3088_v18, -inf }
 0xe04   : > { %3090 = vmax.xlane.f32.xlu0 %v3089_v19 }
 0xe0d   : > { %2599 = vrot.lane.b32.xlu1 %v9926_v51, %s10624_s15 }
 0xe85   : > { %v2590_v20 = vpop.xlane.xlu0 %2589 }
 0xe86   : > { %v2591_v21 = vsub.f32 %v2587_v0, %v2590_v20  ;;  %v8263_v0 = vld [vmem:[%s10700_s25 + $0x18] sm:$0xf]  ;;  %s10739_s25 = sld [smem:[#allocation31_spill]] }
 0xe87   : > { %v3275_v6 = vsel %vm2027_vm3, %v8263_v0, 0 }
 0xe88   : > { %v2592_v22 = vmul.f32 1.442695, %v2591_v21 }
 0xe89   : > { %v2757_v23 = vpop.xlane.xlu1 %2756 }
 0xe8a   : > { %9369 = vpow2.f32 %v2592_v22  ;;  %v2758_v24 = vsub.f32 %v2754_v8, %v2757_v23 }
 0xe8c   : > { %v2759_v25 = vmul.f32 1.442695, %v2758_v24 }
 0xe8d   : > { %v2600_v26 = vpop.permute.xlu1 %2599  ;;  %v2924_v27 = vpop.xlane.xlu0 %2923 }
 0xe8e   : > { %9371 = vpow2.f32 %v2759_v25  ;;  %v2925_v28 = vsub.f32 %v2921_v12, %v2924_v27  ;;  %8815 = vmatpush3.msra.mxu0 %v2600_v26 }
 0xe8f   : > { %8824 = vmatprep.subr.mxu0 %v9518_v1 }
 0xe90   : > { %v2926_v13 = vmul.f32 1.442695, %v2925_v28  ;;  %v8286_v28 = vld [vmem:[%s10699_s29 + $0x1] ss:$0 sm:$0xff]  ;;  %s10740_s29 = sld [smem:[#allocation33_spill]] }
 0xe91   : > { %v3091_v29 = vpop.xlane.xlu0 %3090 }
 0xe92   : > { %9373 = vpow2.f32 %v2926_v13  ;;  %v3092_v30 = vsub.f32 %v3088_v18, %v3091_v29 }
 0xe94   : > { %v9370_v31 = vpop.eup %9369  ;;  %v3093_v32 = vmul.f32 1.442695, %v3092_v30 }
 0xe95   : > { %v2594_v33 = vsel %vm1351_vm2, %v9370_v31, 0.0 }
 0xe96   : > { %9375 = vpow2.f32 %v3093_v32  ;;  %2595 = vadd.xlane.f32.xlu1 %v2594_v33 }
 0xe98   : > { %v9372_v34 = vpop.eup %9371 }
 0xe99   : > { %v2761_v35 = vsel %vm1351_vm2, %v9372_v34, 0.0 }
 0xe9a   : > { %2762 = vadd.xlane.f32.xlu0 %v2761_v35 }
 0xe9c   : > { %v9374_v36 = vpop.eup %9373 }
 0xe9d   : > { %v2928_v37 = vsel %vm1351_vm2, %v9374_v36, 0.0 }
 0xe9e   : > { %2929 = vadd.xlane.f32.xlu1 %v2928_v37 }
 0xea0   : > { %v9376_v38 = vpop.eup %9375 }
 0xea1   : > { %v3095_v39 = vsel %vm1351_vm2, %v9376_v38, 0.0 }
 0xea2   : > { %3096 = vadd.xlane.f32.xlu0 %v3095_v39 }
 0xeaf   : > { %2933 = vrot.lane.b32.xlu1 %v9926_v51, %s10622_s23  ;;  %s10715_s23 = sld [smem:[#allocation4_spill]] }
 0xeb3   : > { %3100 = vrot.lane.b32.xlu1 %v9926_v51, %s10620_s11  ;;  %s10714_s11 = sld [smem:[#allocation17_spill]] }
 0xeb5   : > { %s1260_s15 = scalar_lea.vmem %s10715_s23, %s9766_s0  ;;  %s10716_s23 = sld [smem:[#allocation18_spill]] }
 0xeb6   : > { %s10744_s0 = sld [smem:[#allocation32_spill]] }
 0xeb8   : > { %2766 = vrot.lane.b32.xlu0 %v9926_v51, %s10626_s10 }
 0xeb9   : > { %v9320_v56 = vld [vmem:[%s10714_s11 + $0x8] sm:$0xff]  }
 0xf23   : > { %v2596_v40 = vpop.xlane.xlu1 %2595 }
 0xf24   : > { %9377 = vrcp.f32 %v2596_v40 }
 0xf27   : > { %v2763_v41 = vpop.xlane.xlu0 %2762 }
 0xf28   : > { %9379 = vrcp.f32 %v2763_v41  ;;  %v9317_v41 = vld [vmem:[%s10705_s14 + $0x10] sm:$0xff]  }
 0xf2b   : > { %v2930_v42 = vpop.xlane.xlu1 %2929 }
 0xf2c   : > { %9381 = vrcp.f32 %v2930_v42  ;;  %v9318_v42 = vld [vmem:[%s10705_s14 + $0x18] sm:$0xff]   ;;  %s10734_s14 = smov 96  }
 0xf2e   : > { %v9378_v43 = vpop.eup %9377 }
 0xf2f   : > { %v3097_v44 = vpop.xlane.xlu0 %3096  ;;  %v2598_v45 = vmul.f32 %v9378_v43, %v9370_v31  ;;  %v2934_v48 = vpop.permute.xlu1 %2933  ;;  %v9322_v43 = vld [vmem:[%s10701_s24 + $0x28] sm:$0xff]  }
 0xf30   : > { %9383 = vrcp.f32 %v3097_v44 }
 0xf31   : > { %8817 = vmatmul.mubr.msk.f32.vlgmr.msra.gmra.mrb[10].mxu0 %vm1351_vm2, %v2598_v45 }
 0xf32   : > { %v9380_v46 = vpop.eup %9379  ;;  %8826 = vmatprep.mubr.msk.f32.mxu0 %vm9519_vm0, %v9518_v1 }
 0xf33   : > { %v2767_v49 = vpop.permute.xlu0 %2766  ;;  %v2765_v50 = vmul.f32 %v9380_v46, %v9372_v34  ;;  %v3101_v53 = vpop.permute.xlu1 %3100 }
 0xf34   : > { %8825 = vmatpush3.msra.mxu0 %v2767_v49  ;;  %v8289_v49 = vld [vmem:[%s10709_s3 + $0x1] ss:$0 sm:$0xff]  ;;  %s10726_s3 = sld [smem:[#allocation26_spill]] }
 0xf35   : > { %8827 = vmatmul.mubr.msk.f32.vlgmr.msra.gmra.mrb[24].mxu0 %vm1351_vm2, %v2765_v50  ;;  %8834 = vmatprep.subr.mxu0 %v9518_v1 }
 0xf36   : > { %v9382_v51 = vpop.eup %9381  ;;  %8835 = vmatpush3.msra.mxu0 %v2934_v48  ;;  %8836 = vmatprep.mubr.msk.f32.mxu0 %vm9519_vm0, %v9518_v1 }
 0xf37   : > { %v2932_v52 = vmul.f32 %v9382_v51, %v9374_v36  ;;  %8844 = vmatprep.subr.mxu0 %v9518_v1  ;;  %v8290_v51 = vld [vmem:[%s10707_s8 + $0x1] ss:$0 sm:$0xff]  ;;  %s10731_s8 = smov 112  }
 0xf39   : > { %8837 = vmatmul.mubr.msk.f32.vlgmr.msra.gmra.mrb[26].mxu0 %vm1351_vm2, %v2932_v52 }
 0xf3a   : > { %v9384_v54 = vpop.eup %9383  ;;  %8845 = vmatpush3.msra.mxu0 %v3101_v53  ;;  %8846 = vmatprep.mubr.msk.f32.mxu0 %vm9519_vm0, %v9518_v1 }
 0xf3b   : > { %v3099_v55 = vmul.f32 %v9384_v54, %v9376_v38  ;;  %8855 = vmatprep.subr.bf16.mxu0 %v9518_v1  ;;  %v9319_v54 = vld [vmem:[%s10714_s11] sm:$0xff]  }
 0xf3d   : > { %8847 = vmatmul.mubr.msk.f32.vlgmr.msra.gmra.mrb[28].mxu0 %vm1351_vm2, %v3099_v55 }
 0xf3e   : > { %8857 = vmatprep.mubr.msk.bf16.mxu0 %vm9519_vm0, %v9518_v1  ;;  %8856 = vmatpush3.bf16.msra.mxu0 %v3228_v57  ;;  %v10048_v57 = vld [vmem:[%s1260_s15] sm:$0x3f]  ;;  %s10717_s15 = smov 64  }
 0xf3f   : > { %8867 = vmatprep.subr.bf16.mxu0 %v9518_v1  ;;  %v3631_v58 = vpack.c.bf16 %v10048_v57, %v10048_v57 }
0x1004   : > { %v2671_v61 = vpop.f32.mrb[10].mxu0 }
0x1005   : > { %v3176_v62 = vpack.c.bf16 %v2671_v61, %v2671_v61  ;;  %v8818_v63 = vpop.f32.mrb[11].mxu0  ;;  %v8305_v61 = vld [vmem:[%s10703_s19 + $0x1] ss:$0 sm:$0xff]  ;;  %s10736_s19 = smov 72  }
0x1007   : > { %8858 = vmatmul.mubr.msk.bf16.vlgmr.msra.gmra.mrb[32].mxu0 %vm1351_vm2, %v3176_v62 }
0x1008   : > { %v2838_v2 = vpop.f32.mrb[24].mxu0  ;;  %8868 = vmatpush3.bf16.msra.mxu0 %v3323_v3  ;;  %8869 = vmatprep.mubr.msk.bf16.mxu0 %vm9519_vm0, %v9518_v1 }
0x1009   : > { %v3177_v4 = vpack.c.bf16 %v2838_v2, %v2838_v2  ;;  %v8828_v5 = vpop.f32.mrb[25].mxu0  ;;  %8881 = vmatprep.subr.bf16.mxu0 %v9518_v1 }
0x100b   : > { %8852 = vmatmul.mubr.msk.bf16.vlgmr.msra.gmra.mrb[36].mxu1 %vm1351_vm2, %v3177_v4 }
0x100c   : > { %v3005_v8 = vpop.f32.mrb[26].mxu0  ;;  %8862 = vmatpush3.bf16.msra.mxu1 %v3275_v6  ;;  %8863 = vmatprep.mubr.msk.bf16.mxu1 %vm9519_vm0, %v9518_v1  ;;  %v8321_v6 = vld [vmem:[%s10716_s23] ss:$0 sm:$0xff] }
0x100d   : > { %v8838_v9 = vpop.f32.mrb[27].mxu0  ;;  %8873 = vmatprep.subr.bf16.mxu1 %v9518_v1  ;;  %v3270_v11 = vpack.c.bf16 %v3005_v8, %v3005_v8 }
0x1010   : > { %v3172_v10 = vpop.f32.mrb[28].mxu0 }
0x1011   : > { %v3318_v7 = vpack.c.bf16 %v3172_v10, %v3172_v10  ;;  %v8848_v12 = vpop.f32.mrb[29].mxu0 }
0x1013   : > { %8864 = vmatmul.mubr.msk.bf16.vlgmr.msra.gmra.mrb[40].mxu1 %vm1351_vm2, %v3270_v11  ;;  %8870 = vmatmul.mubr.msk.bf16.vlgmr.msra.gmra.mrb[36].mxu0 %vm1351_vm2, %v3318_v7 }
0x1014   : > { %8877 = vmatprep.mubr.msk.bf16.mxu1 %vm9519_vm0, %v9518_v1  ;;  %8889 = vmatprep.mubr.msk.bf16.mxu0 %vm9519_vm0, %v9518_v1 }
0x1015   : > { %8874 = vmatpush3.bf16.msra.mxu1 %v9317_v41 }
0x1016   : > { %8875 = vmatprep.subr.bf16.mxu1 %v9518_v1 }
0x1019   : > { %8876 = vmatpush3.bf16.msra.mxu1 %v9318_v42 }
0x101a   : > { %8893 = vmatprep.subr.bf16.mxu1 %v9518_v1 }
0x10da   : > { %v3264_v14 = vpop.f32.mrb[32].mxu0 }
0x10db   : > { %v8859_v15 = vpop.f32.mrb[33].mxu0 }
0x10dc   : > { %v3267_v16 = vpop.f32.mrb[34].mxu0 }
0x10dd   : > { %v8860_v17 = vpop.f32.mrb[35].mxu0 }
0x10de   : > { %v3218_v18 = vpop.f32.mrb[36].mxu1 }
0x10df   : > { %v3265_v19 = vadd.f32 %v3264_v14, %v3218_v18  ;;  %v8853_v20 = vpop.f32.mrb[37].mxu1 }
0x10e0   : > { %v3221_v21 = vpop.f32.mrb[38].mxu1 }
0x10e1   : > { %v8854_v22 = vpop.f32.mrb[39].mxu1 }
0x10e6   : > { %v3311_v23 = vpop.f32.mrb[40].mxu1  ;;  %v3359_v24 = vpop.f32.mrb[36].mxu0 }
0x10e7   : > { %v3317_v25 = vadd.f32 %v3311_v23, %v3265_v19  ;;  %v8865_v26 = vpop.f32.mrb[41].mxu1  ;;  %v8871_v27 = vpop.f32.mrb[37].mxu0 }
0x10e8   : > { %v3314_v13 = vpop.f32.mrb[42].mxu1  ;;  %v3362_v29 = vpop.f32.mrb[38].mxu0 }
0x10e9   : > { %v3365_v30 = vadd.f32 %v3359_v24, %v3317_v25  ;;  %v8866_v31 = vpop.f32.mrb[43].mxu1  ;;  %v8872_v32 = vpop.f32.mrb[39].mxu0  ;;  %v1269_v24 = vlaneseq }
0x10eb   : > { %v3372_v33 = vadd.f32 %v8286_v28, %v3365_v30  ;;  %v1270_v25 = vshrl.u32 %v1269_v24, 7  ;;  %v1272_v26 = vand.u32 127, %v1269_v24 }
0x10ed   : > { %v3373_v34 = vadd.f32 %v3372_v33, %v9918_v47  ;;  %v9321_v47 = vld [vmem:[%s10701_s24 + $0x20] sm:$0xff]   ;;  %vm1273_vm5 = vcmp.gt.s32.totalorder %v1270_v25, %v1272_v26  ;;  %s10738_s24 = sld [smem:[#allocation28_spill]] }
0x10ee   : > { %8882 = vmatpush3.bf16.msra.mxu0 %v9321_v47  ;;  %v10106_v28 = vsel %vm1273_vm5, -1e+09, %v9518_v1 }
0x10ef   : > { %v3378_v35 = vsel %vm1304_vm1, %v3373_v34, 0.0  ;;  %8883 = vmatprep.subr.bf16.mxu0 %v9518_v1 }
0x10f0   : > { %3379 = vadd.xlane.f32.xlu0 %v3378_v35 }
0x10f2   : > { %8884 = vmatpush3.bf16.msra.mxu0 %v9322_v43 }
0x10f3   : > { %8885 = vmatprep.subr.bf16.mxu0 %v9518_v1 }
0x10f6   : > { %8886 = vmatpush3.bf16.msra.mxu0 %v9323_v59 }
0x10f7   : > { %8887 = vmatprep.subr.bf16.mxu0 %v9518_v1 }
0x10fa   : > { %8888 = vmatpush3.bf16.msra.mxu0 %v9324_v60 }
0x10fb   : > { %8906 = vmatprep.subr.mxu0 %v9518_v1 }
0x117d   : > { %v3380_v36 = vpop.xlane.xlu0 %3379 }
0x117e   : > { %v3381_v37 = vmul.f32 0.03125, %v3380_v36 }
0x1180   : > { %v3382_v38 = vsub.f32 %v3373_v34, %v3381_v37 }
0x1182   : > { %v3383_v39 = vmul.f32 %v3382_v38, %v3382_v38 }
0x1184   : > { %v3384_v40 = vsel %vm1304_vm1, %v3383_v39, 0.0 }
0x1185   : > { %3385 = vadd.xlane.f32.xlu1 %v3384_v40 }
0x1212   : > { %v3386_v44 = vpop.xlane.xlu1 %3385 }
0x1213   : > { %v3387_v45 = vmul.f32 0.03125, %v3386_v44 }
0x1215   : > { %v3388_v46 = vadd.f32 1e-05, %v3387_v45 }
0x1217   : > { %9385 = vrsqrt.f32 %v3388_v46 }
0x1221   : > { %v9386_v48 = vpop.eup %9385 }
0x1222   : > { %v3390_v50 = vmul.f32 %v9386_v48, %v3382_v38 }
0x1224   : > { %v3397_v52 = vmul.f32 %v8289_v49, %v3390_v50 }
0x1226   : > { %v10037_v53 = vadd.f32 %v8290_v51, %v3397_v52 }
0x1228   : > { %v3423_v55 = vpack.c.bf16 %v10037_v53, %v10037_v53 }
0x122a   : > { %8878 = vmatmul.mubr.msk.bf16.vlgmr.msra.gmra.mrb[44].mxu1 %vm1304_vm1, %v3423_v55 }
0x122b   : > { %8894 = vmatpush3.bf16.msra.mxu1 %v9319_v54  ;;  %8897 = vmatprep.mubr.msk.bf16.mxu1 %vm9519_vm0, %v9518_v1 }
0x122c   : > { %8895 = vmatprep.subr.bf16.mxu1 %v9518_v1 }
0x122f   : > { %8896 = vmatpush3.bf16.msra.mxu1 %v9320_v56 }
0x1230   : > { %8901 = vmatprep.subr.mxu1 %v9518_v1 }
0x1232   : > { %8898 = vmatmul.mubr.msk.bf16.vlgmr.msra.gmra.mrb[48].mxu1 %vm1304_vm1, %v3631_v58 }
0x1233   : > { %8903 = vmatprep.mubr.msk.f32.mxu1 %vm9519_vm0, %v9518_v1 }
0x12fd   : > { %v3479_v62 = vpop.f32.mrb[44].mxu1 }
0x12fe   : > { %v3480_v63 = vadd.f32 %v8305_v61, %v3479_v62  ;;  %v8879_v3 = vpop.f32.mrb[45].mxu1 }
0x12ff   : > { %v3482_v0 = vpop.f32.mrb[46].mxu1 }
0x1300   : > { %v3485_v2 = vmax.f32 %v3480_v63, 0.0  ;;  %v8880_v4 = vpop.f32.mrb[47].mxu1 }
0x1302   : > { %v3486_v5 = vpack.c.bf16 %v3485_v2, %v3485_v2 }
0x1304   : > { %8890 = vmatmul.mubr.msk.bf16.vlgmr.msra.gmra.mrb[40].mxu0 %vm2359_vm4, %v3486_v5 }
0x1305   : > { %v3687_v8 = vpop.f32.mrb[48].mxu1  ;;  %8908 = vmatprep.mubr.msk.f32.mxu0 %vm9519_vm0, %v9518_v1 }
0x1306   : > { %v10066_v9 = vadd.f32 %v8321_v6, %v3687_v8  ;;  %v8899_v10 = vpop.f32.mrb[49].mxu1  ;;  %v8309_v6 = vld [vmem:[%s10698_s30 + $0x1] ss:$0 sm:$0xff]  ;;  %s10741_s30 = sld [smem:[#allocation29_spill]] }
0x1307   : > { %v3690_v11 = vpop.f32.mrb[50].mxu1 }
0x1308   : > { %3865 = vrot.lane.b32.xlu1 %v10066_v9, %s10633_s18  ;;  %3694 = vrot.lane.b32.xlu0 %v10066_v9, %s10631_s16  ;;  %v8900_v7 = vpop.f32.mrb[51].mxu1  ;;  %s10721_s16 = sld [smem:[#allocation25_spill]]  ;;  %s10722_s18 = sld [smem:[#allocation20_spill]] }
0x130c   : > { %4033 = vrot.lane.b32.xlu1 %v10066_v9, %s10629_s28  ;;  %3863 = vrot.lane.b32.xlu0 %v10066_v9, %s10639_s22  ;;  %s10720_s28 = sld [smem:[#allocation19_spill]]  ;;  %s10725_s22 = sld [smem:[#allocation23_spill]] }
0x1310   : > { %4201 = vrot.lane.b32.xlu1 %v10066_v9, %s10627_s26  ;;  %4031 = vrot.lane.b32.xlu0 %v10066_v9, %s10637_s1  ;;  %s10719_s26 = smov 40   ;;  %s10724_s1 = sld [smem:[#allocation38_spill]] }
0x1314   : > { %4199 = vrot.lane.b32.xlu0 %v10066_v9, %s10635_s2  ;;  %s10723_s2 = sld [smem:[#allocation37_spill]] }
0x137a   : > { %v3866_v12 = vpop.permute.xlu1 %3865  ;;  %v3695_v14 = vpop.permute.xlu0 %3694 }
0x137b   : > { %8902 = vmatpush3.xpose.msk.msra.mxu1 %vm1351_vm2, %v3695_v14 }
0x137c   : > { %8911 = vmatprep.subr.mxu1 %v9518_v1 }
0x137e   : > { %8904 = vmatmul.mubr.msk.f32.vlgmr.msra.gmra.mrb[34].mxu1 %vm1351_vm2, %v10066_v9  ;;  %v3864_v15 = vpop.permute.xlu0 %3863  ;;  %v4034_v16 = vpop.permute.xlu1 %4033 }
0x137f   : > { %8912 = vmatpush3.xpose.msk.msra.mxu1 %vm1351_vm2, %v3866_v12  ;;  %8913 = vmatprep.mubr.msk.f32.mxu1 %vm9519_vm0, %v9518_v1 }
0x1380   : > { %8921 = vmatprep.subr.mxu1 %v9518_v1 }
0x1382   : > { %8914 = vmatmul.mubr.msk.f32.vlgmr.msra.gmra.mrb[52].mxu1 %vm1351_vm2, %v3864_v15  ;;  %v4032_v17 = vpop.permute.xlu0 %4031  ;;  %v4202_v18 = vpop.permute.xlu1 %4201 }
0x1383   : > { %8922 = vmatpush3.xpose.msk.msra.mxu1 %vm1351_vm2, %v4034_v16  ;;  %8923 = vmatprep.mubr.msk.f32.mxu1 %vm9519_vm0, %v9518_v1 }
0x1384   : > { %8931 = vmatprep.subr.mxu1 %v9518_v1 }
0x1386   : > { %8924 = vmatmul.mubr.msk.f32.vlgmr.msra.gmra.mrb[54].mxu1 %vm1351_vm2, %v4032_v17  ;;  %v4200_v19 = vpop.permute.xlu0 %4199 }
0x1387   : > { %8932 = vmatpush3.xpose.msk.msra.mxu1 %vm1351_vm2, %v4202_v18  ;;  %8933 = vmatprep.mubr.msk.f32.mxu1 %vm9519_vm0, %v9518_v1 }
0x1388   : > { %8941 = vmatprep.subr.bf16.mxu1 %v9518_v1 }
0x138a   : > { %8934 = vmatmul.mubr.msk.f32.vlgmr.msra.gmra.mrb[56].mxu1 %vm1351_vm2, %v4200_v19 }
0x138b   : > { %8943 = vmatprep.mubr.msk.bf16.mxu1 %vm9519_vm0, %v9518_v1 }
0x13d7   : > { %v10103_v20 = vpop.f32.mrb[40].mxu0 }
0x13d8   : > { %v8891_v21 = vpop.f32.mrb[41].mxu0  ;;  %v3555_v8 = vadd.f32 %v8309_v6, %v10103_v20  ;;  %v9326_v6 = vld [vmem:[%s10721_s16 + $0x8] sm:$0xff]  }
0x13d9   : > { %v3557_v22 = vpop.f32.mrb[42].mxu0 }
0x13da   : > { %v8892_v23 = vpop.f32.mrb[43].mxu0  ;;  %v3560_v10 = vadd.f32 %v3555_v8, %v10037_v53 }
0x13dc   : > { %v3565_v11 = vsel %vm1304_vm1, %v3560_v10, 0.0 }
0x1451   : > { %v3766_v27 = vpop.f32.mrb[34].mxu1 }
0x1452   : > { %v3770_v13 = vmul.f32 0.35355338, %v3766_v27  ;;  %v8905_v29 = vpop.f32.mrb[35].mxu1 }
0x1454   : > { %v3771_v30 = vadd.f32 %v3770_v13, %v10106_v28 }
0x1455   : > { %v3937_v31 = vpop.f32.mrb[52].mxu1 }
0x1456   : > { %v3941_v32 = vmul.f32 0.35355338, %v3937_v31  ;;  %v8915_v33 = vpop.f32.mrb[53].mxu1  ;;  %v3773_v34 = vsel %vm3772_vm6, %v3771_v30, -inf  ;;  %v3626_v31 = vld [vmem:[%s10720_s28] sm:$0xf] }
0x1457   : > { %3774 = vmax.xlane.f32.xlu1 %v3773_v34  ;;  %v3627_v33 = vld [vmem:[%s10720_s28 + $0x4] sm:$0xf] }
0x1458   : > { %v3942_v35 = vadd.f32 %v3941_v32, %v10106_v28  ;;  %v4419_v32 = vsel %vm2027_vm3, %v3626_v31, 0  ;;  %v4373_v34 = vsel %vm2027_vm3, %v3627_v33, 0 }
0x1459   : > { %v4105_v36 = vpop.f32.mrb[54].mxu1  ;;  %8942 = vmatpush3.bf16.msra.mxu1 %v4373_v34  ;;  %v8319_v34 = vld [vmem:[%s10723_s2] ss:$0 sm:$0xff]  ;;  %s10728_s2 = sld [smem:[#allocation22_spill]] }
0x145a   : > { %v4109_v37 = vmul.f32 0.35355338, %v4105_v36  ;;  %v8925_v38 = vpop.f32.mrb[55].mxu1  ;;  %v3943_v39 = vsel %vm3772_vm6, %v3942_v35, -inf  ;;  %8953 = vmatprep.subr.bf16.mxu1 %v9518_v1 }
0x145b   : > { %3944 = vmax.xlane.f32.xlu0 %v3943_v39  ;;  %v3629_v38 = vld [vmem:[%s10720_s28 + $0xc] sm:$0xf] }
0x145c   : > { %v4110_v40 = vadd.f32 %v4109_v37, %v10106_v28 }
0x145d   : > { %v4273_v41 = vpop.f32.mrb[56].mxu1 }
0x145e   : > { %v4277_v42 = vmul.f32 0.35355338, %v4273_v41  ;;  %v8935_v47 = vpop.f32.mrb[57].mxu1  ;;  %v4111_v43 = vsel %vm3772_vm6, %v4110_v40, -inf }
0x145f   : > { %4112 = vmax.xlane.f32.xlu0 %v4111_v43  ;;  %v3628_v47 = vld [vmem:[%s10720_s28 + $0x8] sm:$0xf] }
0x1460   : > { %v4278_v44 = vadd.f32 %v4277_v42, %v10106_v28  ;;  %v4514_v42 = vsel %vm2027_vm3, %v3629_v38, 0 }
0x1462   : > { %v4279_v45 = vsel %vm3772_vm6, %v4278_v44, -inf }
0x1463   : > { %4280 = vmax.xlane.f32.xlu1 %v4279_v45  ;;  %v8317_v45 = vld [vmem:[%s10708_s6 + $0x1] ss:$0 sm:$0xff]  ;;  %s10730_s6 = sld [smem:[#allocation24_spill]] }
0x1474   : > { %3954 = vrot.lane.b32.xlu1 %v10066_v9, %s10626_s10  ;;  %s10718_s10 = smov 48  }
0x14e4   : > { %v3775_v46 = vpop.xlane.xlu1 %3774 }
0x14e5   : > { %v3776_v48 = vsub.f32 %v3771_v30, %v3775_v46 }
0x14e7   : > { %v3777_v49 = vmul.f32 1.442695, %v3776_v48 }
0x14e8   : > { %v3945_v50 = vpop.xlane.xlu0 %3944 }
0x14e9   : > { %9387 = vpow2.f32 %v3777_v49  ;;  %v3946_v51 = vsub.f32 %v3942_v35, %v3945_v50  ;;  %v4466_v50 = vsel %vm2027_vm3, %v3628_v47, 0 }
0x14eb   : > { %v3947_v52 = vmul.f32 1.442695, %v3946_v51  ;;  %v8318_v51 = vld [vmem:[%s10706_s12 + $0x1] ss:$0 sm:$0xff]  ;;  %s10733_s12 = smov 88  }
0x14ec   : > { %v4113_v3 = vpop.xlane.xlu0 %4112 }
0x14ed   : > { %9389 = vpow2.f32 %v3947_v52  ;;  %v4114_v0 = vsub.f32 %v4110_v40, %v4113_v3 }
0x14ef   : > { %v4115_v2 = vmul.f32 1.442695, %v4114_v0 }
0x14f0   : > { %v4281_v54 = vpop.xlane.xlu1 %4280 }
0x14f1   : > { %v4282_v55 = vsub.f32 %v4278_v44, %v4281_v54 }
0x14f3   : > { %v9388_v56 = vpop.eup %9387  ;;  %v4283_v58 = vmul.f32 1.442695, %v4282_v55 }
0x14f4   : > { %v3779_v59 = vsel %vm3772_vm6, %v9388_v56, 0.0  ;;  %v3955_v7 = vpop.permute.xlu1 %3954 }
0x14f5   : > { %9391 = vpow2.f32 %v4283_v58  ;;  %3780 = vadd.xlane.f32.xlu0 %v3779_v59 }
0x14f6   : > { %9393 = vpow2.f32 %v4115_v2 }
0x14f7   : > { %v9390_v60 = vpop.eup %9389 }
0x14f8   : > { %v3949_v61 = vsel %vm3772_vm6, %v9390_v60, 0.0 }
0x14f9   : > { %3950 = vadd.xlane.f32.xlu1 %v3949_v61 }
0x14ff   : > { %v9392_v62 = vpop.eup %9391 }
0x1500   : > { %v4285_v63 = vsel %vm3772_vm6, %v9392_v62, 0.0  ;;  %v9394_v4 = vpop.eup %9393 }
0x1501   : > { %4286 = vadd.xlane.f32.xlu1 %v4285_v63  ;;  %v4117_v5 = vsel %vm3772_vm6, %v9394_v4, 0.0 }
0x150b   : > { %3784 = vrot.lane.b32.xlu0 %v10066_v9, %s10717_s15 }
0x1512   : > { %4122 = vrot.lane.b32.xlu1 %v10066_v9, %s10718_s10 }
0x152a   : > { %4118 = vadd.xlane.f32.xlu0 %v4117_v5  ;;  %v9325_v5 = vld [vmem:[%s10721_s16] sm:$0xff]  }
0x1536   : > { %3566 = vadd.xlane.f32.xlu1 %v3565_v11 }
0x1540   : > { %4290 = vrot.lane.b32.xlu0 %v10066_v9, %s10719_s26 }
0x1582   : > { %v3781_v12 = vpop.xlane.xlu0 %3780 }
0x1583   : > { %9395 = vrcp.f32 %v3781_v12 }
0x1586   : > { %v3785_v14 = vpop.permute.xlu0 %3784  ;;  %v3951_v15 = vpop.xlane.xlu1 %3950 }
0x1587   : > { %9397 = vrcp.f32 %v3951_v15  ;;  %8907 = vmatpush3.msk.msra.mxu0 %vm3790_vm7, %v3785_v14 }
0x1588   : > { %8916 = vmatprep.subr.mxu0 %v9518_v1 }
0x158d   : > { %v9396_v16 = vpop.eup %9395 }
0x158e   : > { %v3783_v53 = vmul.f32 %v9396_v16, %v9388_v56  ;;  %v4287_v17 = vpop.xlane.xlu1 %4286 }
0x1590   : > { %8909 = vmatmul.mubr.msk.f32.vlgmr.msra.gmra.mrb[30].mxu0 %vm3786_vm8, %v3783_v53 }
0x1591   : > { %v9398_v18 = vpop.eup %9397  ;;  %8917 = vmatpush3.msk.msra.mxu0 %vm3790_vm7, %v3955_v7  ;;  %8918 = vmatprep.mubr.msk.f32.mxu0 %vm9519_vm0, %v9518_v1 }
0x1592   : > { %v3953_v9 = vmul.f32 %v9398_v18, %v9390_v60  ;;  %v4123_v19 = vpop.permute.xlu1 %4122  ;;  %8926 = vmatprep.subr.mxu0 %v9518_v1 }
0x1594   : > { %8919 = vmatmul.mubr.msk.f32.vlgmr.msra.gmra.mrb[44].mxu0 %vm3786_vm8, %v3953_v9 }
0x1595   : > { %8927 = vmatpush3.msk.msra.mxu0 %vm3790_vm7, %v4123_v19  ;;  %8928 = vmatprep.mubr.msk.f32.mxu0 %vm9519_vm0, %v9518_v1 }
0x1596   : > { %8936 = vmatprep.subr.mxu0 %v9518_v1 }
0x15b7   : > { %v4119_v20 = vpop.xlane.xlu0 %4118 }
0x15b8   : > { %9399 = vrcp.f32 %v4119_v20 }
0x15b9   : > { %9401 = vrcp.f32 %v4287_v17 }
0x15bb   : > { %v4291_v26 = vpop.permute.xlu0 %4290 }
0x15c2   : > { %v9400_v21 = vpop.eup %9399 }
0x15c3   : > { %v4121_v22 = vmul.f32 %v9400_v21, %v9394_v4  ;;  %v3567_v23 = vpop.xlane.xlu1 %3566  ;;  %v9402_v24 = vpop.eup %9401  ;;  %v8345_v21 = vld [vmem:[%s10722_s18] ss:$0 sm:$0xff] }
0x15c4   : > { %v3568_v25 = vmul.f32 0.03125, %v3567_v23  ;;  %v4289_v13 = vmul.f32 %v9402_v24, %v9392_v62 }
0x15c5   : > { %8929 = vmatmul.mubr.msk.f32.vlgmr.msra.gmra.mrb[46].mxu0 %vm3786_vm8, %v4121_v22 }
0x15c6   : > { %v3569_v27 = vsub.f32 %v3560_v10, %v3568_v25  ;;  %8937 = vmatpush3.msk.msra.mxu0 %vm3790_vm7, %v4291_v26  ;;  %8938 = vmatprep.mubr.msk.f32.mxu0 %vm9519_vm0, %v9518_v1 }
0x15c7   : > { %8947 = vmatprep.subr.bf16.mxu0 %v9518_v1 }
0x15c8   : > { %v3570_v29 = vmul.f32 %v3569_v27, %v3569_v27 }
0x15c9   : > { %8939 = vmatmul.mubr.msk.f32.vlgmr.msra.gmra.mrb[48].mxu0 %vm3786_vm8, %v4289_v13 }
0x15ca   : > { %v3571_v30 = vsel %vm1304_vm1, %v3570_v29, 0.0  ;;  %8949 = vmatprep.mubr.msk.bf16.mxu0 %vm9519_vm0, %v9518_v1  ;;  %8948 = vmatpush3.bf16.msra.mxu0 %v4419_v32 }
0x15cb   : > { %3572 = vadd.xlane.f32.xlu0 %v3571_v30  ;;  %8959 = vmatprep.subr.bf16.mxu0 %v9518_v1 }
0x1658   : > { %v3573_v35 = vpop.xlane.xlu0 %3572 }
0x1659   : > { %v3574_v36 = vmul.f32 0.03125, %v3573_v35 }
0x165b   : > { %v3575_v37 = vadd.f32 1e-05, %v3574_v36  ;;  %v8320_v36 = vld [vmem:[%s10724_s1] ss:$0 sm:$0xff]  ;;  %s10727_s1 = sld [smem:[#allocation21_spill]] }
0x165d   : > { %9403 = vrsqrt.f32 %v3575_v37 }
0x1663   : > { %v3859_v39 = vpop.f32.mrb[30].mxu0 }
0x1664   : > { %v4367_v40 = vpack.c.bf16 %v3859_v39, %v3859_v39  ;;  %v8910_v41 = vpop.f32.mrb[31].mxu0 }
0x1666   : > { %8950 = vmatmul.mubr.msk.bf16.vlgmr.msra.gmra.mrb[52].mxu0 %vm1351_vm2, %v4367_v40 }
0x1667   : > { %v9404_v43 = vpop.eup %9403  ;;  %v4027_v44 = vpop.f32.mrb[44].mxu0  ;;  %8960 = vmatpush3.bf16.msra.mxu0 %v4514_v42  ;;  %8961 = vmatprep.mubr.msk.bf16.mxu0 %vm9519_vm0, %v9518_v1 }
0x1668   : > { %v4368_v46 = vpack.c.bf16 %v4027_v44, %v4027_v44  ;;  %v8920_v48 = vpop.f32.mrb[45].mxu0  ;;  %v3577_v49 = vmul.f32 %v9404_v43, %v3569_v27  ;;  %8973 = vmatprep.subr.bf16.mxu0 %v9518_v1  ;;  %v9327_v43 = vld [vmem:[%s10725_s22] sm:$0xff]   ;;  %v9328_v44 = vld [vmem:[%s10725_s22 + $0x8] sm:$0xff]  }
0x166a   : > { %8944 = vmatmul.mubr.msk.bf16.vlgmr.msra.gmra.mrb[60].mxu1 %vm1351_vm2, %v4368_v46  ;;  %v3584_v52 = vmul.f32 %v8317_v45, %v3577_v49  ;;  %v8352_v45 = vld [vmem:[%s10726_s3] ss:$0 sm:$0xff] }
0x166b   : > { %8954 = vmatpush3.bf16.msra.mxu1 %v4466_v50  ;;  %8955 = vmatprep.mubr.msk.bf16.mxu1 %vm9519_vm0, %v9518_v1 }
0x166c   : > { %v3591_v54 = vadd.f32 %v8318_v51, %v3584_v52  ;;  %8965 = vmatprep.subr.bf16.mxu1 %v9518_v1 }
0x166e   : > { %v3594_v55 = vsel %vm1304_vm1, %v3591_v54, 0.0 }
0x166f   : > { %3595 = vadd.xlane.f32.xlu0 %v3594_v55 }
0x1698   : > { %v4195_v56 = vpop.f32.mrb[46].mxu0 }
0x1699   : > { %v4461_v58 = vpack.c.bf16 %v4195_v56, %v4195_v56  ;;  %v8930_v59 = vpop.f32.mrb[47].mxu0 }
0x169b   : > { %8956 = vmatmul.mubr.msk.bf16.vlgmr.msra.gmra.mrb[64].mxu1 %vm1351_vm2, %v4461_v58  ;;  %v8346_v58 = vld [vmem:[%s10727_s1] ss:$0 sm:$0xff] }
0x169c   : > { %v4363_v60 = vpop.f32.mrb[48].mxu0  ;;  %8969 = vmatprep.mubr.msk.bf16.mxu1 %vm9519_vm0, %v9518_v1  ;;  %8966 = vmatpush3.bf16.msra.mxu1 %v9327_v43 }
0x169d   : > { %v4509_v61 = vpack.c.bf16 %v4363_v60, %v4363_v60  ;;  %v8940_v62 = vpop.f32.mrb[49].mxu0  ;;  %8967 = vmatprep.subr.bf16.mxu1 %v9518_v1  ;;  %v8347_v60 = vld [vmem:[%s10728_s2] ss:$0 sm:$0xff] }
0x169f   : > { %8962 = vmatmul.mubr.msk.bf16.vlgmr.msra.gmra.mrb[56].mxu0 %vm1351_vm2, %v4509_v61 }
0x16a0   : > { %8977 = vmatprep.mubr.msk.bf16.mxu0 %vm9519_vm0, %v9518_v1  ;;  %8974 = vmatpush3.bf16.msra.mxu0 %v9325_v5 }
0x16a1   : > { %8975 = vmatprep.subr.bf16.mxu0 %v9518_v1  ;;  %8968 = vmatpush3.bf16.msra.mxu1 %v9328_v44 }
0x16a2   : > { %8981 = vmatprep.subr.mxu1 %v9518_v1 }
0x16a4   : > { %8976 = vmatpush3.bf16.msra.mxu0 %v9326_v6 }
0x16a5   : > { %8986 = vmatprep.subr.mxu0 %v9518_v1 }
0x16fc   : > { %v3596_v63 = vpop.xlane.xlu0 %3595 }
0x16fd   : > { %v3597_v3 = vmul.f32 0.03125, %v3596_v63 }
0x16ff   : > { %v3598_v0 = vsub.f32 %v3591_v54, %v3597_v3  ;;  %v8348_v3 = vld [vmem:[%s10730_s6] ss:$0 sm:$0xff] }
0x1701   : > { %v3599_v2 = vmul.f32 %v3598_v0, %v3598_v0 }
0x1703   : > { %v3600_v4 = vsel %vm1304_vm1, %v3599_v2, 0.0 }
0x1704   : > { %3601 = vadd.xlane.f32.xlu0 %v3600_v4 }
0x1739   : > { %v4455_v8 = vpop.f32.mrb[52].mxu0 }
0x173a   : > { %v8951_v10 = vpop.f32.mrb[53].mxu0 }
0x173b   : > { %v4458_v11 = vpop.f32.mrb[54].mxu0 }
0x173c   : > { %v8952_v7 = vpop.f32.mrb[55].mxu0 }
0x173d   : > { %v4409_v12 = vpop.f32.mrb[60].mxu1 }
0x173e   : > { %v4456_v14 = vadd.f32 %v4455_v8, %v4409_v12  ;;  %v8945_v15 = vpop.f32.mrb[61].mxu1 }
0x173f   : > { %v4412_v16 = vpop.f32.mrb[62].mxu1 }
0x1740   : > { %v8946_v53 = vpop.f32.mrb[63].mxu1 }
0x176e   : > { %v4502_v17 = vpop.f32.mrb[64].mxu1 }
0x176f   : > { %v4508_v18 = vadd.f32 %v4502_v17, %v4456_v14  ;;  %v8957_v9 = vpop.f32.mrb[65].mxu1 }
0x1770   : > { %v4505_v19 = vpop.f32.mrb[66].mxu1 }
0x1771   : > { %v8958_v20 = vpop.f32.mrb[67].mxu1 }
0x1772   : > { %v4550_v22 = vpop.f32.mrb[56].mxu0 }
0x1773   : > { %v4556_v23 = vadd.f32 %v4550_v22, %v4508_v18  ;;  %v8963_v24 = vpop.f32.mrb[57].mxu0 }
0x1774   : > { %v4553_v25 = vpop.f32.mrb[58].mxu0 }
0x1775   : > { %v4563_v26 = vadd.f32 %v8345_v21, %v4556_v23  ;;  %v8964_v27 = vpop.f32.mrb[59].mxu0 }
0x1777   : > { %v4564_v13 = vadd.f32 %v4563_v26, %v10048_v57 }
0x1779   : > { %v4568_v29 = vsel %vm4567_vm9, %v4564_v13, 0.0 }
0x177a   : > { %4569 = vadd.xlane.f32.xlu1 %v4568_v29 }
0x1791   : > { %v3602_v30 = vpop.xlane.xlu0 %3601 }
0x1792   : > { %v3603_v31 = vmul.f32 0.03125, %v3602_v30 }
0x1794   : > { %v3604_v32 = vadd.f32 1e-05, %v3603_v31 }
0x1796   : > { %9405 = vrsqrt.f32 %v3604_v32 }
0x17a0   : > { %v9406_v33 = vpop.eup %9405 }
0x17a1   : > { %v3606_v35 = vmul.f32 %v9406_v33, %v3598_v0 }
0x17a3   : > { %v3613_v37 = vmul.f32 %v8319_v34, %v3606_v35 }
0x17a5   : > { %v3620_v38 = vadd.f32 %v8320_v36, %v3613_v37 }
0x17a7   : > { %v10190_v39 = vpack.c.bf16 %v3620_v38, %v3620_v38 }
0x17a9   : > { %8978 = vmatmul.mubr.msk.bf16.vlgmr.msra.gmra.mrb[60].mxu0 %vm1304_vm1, %v10190_v39 }
0x17aa   : > { %8988 = vmatprep.mubr.msk.f32.mxu0 %vm9519_vm0, %v9518_v1 }
0x1807   : > { %v4570_v57 = vpop.xlane.xlu1 %4569 }
0x1808   : > { %v4571_v40 = vmul.f32 0.03125, %v4570_v57 }
0x180a   : > { %v4572_v41 = vsub.f32 %v4564_v13, %v4571_v40 }
0x180c   : > { %v4573_v42 = vmul.f32 %v4572_v41, %v4572_v41 }
0x180e   : > { %v4574_v47 = vsel %vm4567_vm9, %v4573_v42, 0.0 }
0x180f   : > { %4575 = vadd.xlane.f32.xlu1 %v4574_v47 }
0x187c   : > { %v4728_v46 = vpop.f32.mrb[60].mxu0 }
0x187d   : > { %v10202_v48 = vadd.f32 %v8352_v45, %v4728_v46  ;;  %v8979_v49 = vpop.f32.mrb[61].mxu0 }
0x187e   : > { %v4731_v50 = vpop.f32.mrb[62].mxu0 }
0x187f   : > { %4901 = vrot.lane.b32.xlu0 %v10202_v48, %s10729_s5  ;;  %v8980_v51 = vpop.f32.mrb[63].mxu0 }
0x189c   : > { %v4576_v52 = vpop.xlane.xlu1 %4575 }
0x189d   : > { %v4577_v54 = vmul.f32 0.03125, %v4576_v52 }
0x189f   : > { %v4578_v55 = vadd.f32 1e-05, %v4577_v54 }
0x18a1   : > { %9407 = vrsqrt.f32 %v4578_v55 }
0x18ab   : > { %v9408_v56 = vpop.eup %9407 }
0x18ac   : > { %v4580_v59 = vmul.f32 %v9408_v56, %v4572_v41 }
0x18ae   : > { %v4587_v61 = vmul.f32 %v8346_v58, %v4580_v59 }
0x18b0   : > { %v10208_v62 = vadd.f32 %v8347_v60, %v4587_v61 }
0x18b2   : > { %v4610_v63 = vpack.c.bf16 %v10208_v62, %v10208_v62 }
0x18b4   : > { %8970 = vmatmul.mubr.msk.bf16.vlgmr.msra.gmra.mrb[68].mxu1 %vm1304_vm1, %v4610_v63 }
0x18b5   : > { %8982 = vmatpush3.xpose.msk.msra.mxu1 %vm1351_vm2, %v10202_v48  ;;  %8983 = vmatprep.mubr.msk.f32.mxu1 %vm9519_vm0, %v9518_v1 }
0x18b6   : > { %8991 = vmatprep.subr.mxu1 %v9518_v1 }
0x18f1   : > { %v4902_v8 = vpop.permute.xlu0 %4901 }
0x1987   : > { %v4666_v0 = vpop.f32.mrb[68].mxu1 }
0x1988   : > { %v4667_v2 = vadd.f32 %v8348_v3, %v4666_v0  ;;  %v8971_v4 = vpop.f32.mrb[69].mxu1  ;;  %v4605_v0 = vld [vmem:[%s10737_s21] sm:$0xf] }
0x1989   : > { %v4669_v5 = vpop.f32.mrb[70].mxu1 }
0x198a   : > { %4899 = vrot.lane.b32.xlu1 %v4667_v2, %s10729_s5  ;;  %v8972_v6 = vpop.f32.mrb[71].mxu1  ;;  %5065 = vrot.lane.b32.xlu0 %v4667_v2, %s10731_s8 }
0x198b   : > { %8984 = vmatmul.mubr.msk.f32.vlgmr.msra.gmra.mrb[58].mxu1 %vm1351_vm2, %v4667_v2  ;;  %v5449_v6 = vsel %vm2027_vm3, %v4605_v0, 0  ;;  %v8374_v0 = vld [vmem:[%s10742_s7] ss:$0 sm:$0xff]  ;;  %s10746_s7 = sld [smem:[#allocation35_spill]] }
0x198c   : > { %8992 = vmatpush3.xpose.msk.msra.mxu1 %vm1351_vm2, %v4902_v8  ;;  %8993 = vmatprep.mubr.msk.f32.mxu1 %vm9519_vm0, %v9518_v1  ;;  %v4606_v8 = vld [vmem:[%s10737_s21 + $0x4] sm:$0xf] }
0x198d   : > { %9001 = vmatprep.subr.mxu1 %v9518_v1 }
0x198e   : > { %5067 = vrot.lane.b32.xlu1 %v10202_v48, %s10731_s8  ;;  %5231 = vrot.lane.b32.xlu0 %v4667_v2, %s10732_s9 }
0x1991   : > { %s10747_s13 = smov %s10746_s7 }
0x1992   : > { %5233 = vrot.lane.b32.xlu1 %v10202_v48, %s10732_s9 }
0x19fc   : > { %v4900_v10 = vpop.permute.xlu1 %4899  ;;  %v5066_v7 = vpop.permute.xlu0 %5065 }
0x19fd   : > { %8994 = vmatmul.mubr.msk.f32.vlgmr.msra.gmra.mrb[72].mxu1 %vm1351_vm2, %v4900_v10  ;;  %v5403_v10 = vsel %vm2027_vm3, %v4606_v8, 0  ;;  %v9334_v8 = vld [vmem:[%s10740_s29 + $0x18] sm:$0xff]  }
0x19fe   : > { %9003 = vmatprep.mubr.msk.f32.mxu1 %vm9519_vm0, %v9518_v1 }
0x1a00   : > { %v5068_v11 = vpop.permute.xlu1 %5067  ;;  %v5232_v14 = vpop.permute.xlu0 %5231 }
0x1a01   : > { %9002 = vmatpush3.xpose.msk.msra.mxu1 %vm1351_vm2, %v5068_v11  ;;  %v4608_v11 = vld [vmem:[%s10737_s21 + $0xc] sm:$0xf] }
0x1a02   : > { %9011 = vmatprep.subr.mxu1 %v9518_v1 }
0x1a04   : > { %v5234_v12 = vpop.permute.xlu1 %5233  ;;  %9004 = vmatmul.mubr.msk.f32.vlgmr.msra.gmra.mrb[74].mxu1 %vm1351_vm2, %v5066_v7 }
0x1a05   : > { %9012 = vmatpush3.xpose.msk.msra.mxu1 %vm1351_vm2, %v5234_v12  ;;  %9013 = vmatprep.mubr.msk.f32.mxu1 %vm9519_vm0, %v9518_v1 }
0x1a06   : > { %9021 = vmatprep.subr.bf16.mxu1 %v9518_v1 }
0x1a08   : > { %9014 = vmatmul.mubr.msk.f32.vlgmr.msra.gmra.mrb[76].mxu1 %vm1351_vm2, %v5232_v14 }
0x1a09   : > { %9023 = vmatprep.mubr.msk.bf16.mxu1 %vm9519_vm0, %v9518_v1  ;;  %9022 = vmatpush3.bf16.msra.mxu1 %v5403_v10  ;;  %v8375_v10 = vld [vmem:[%s10744_s0] ss:$0 sm:$0xff] }
0x1a0a   : > { %9033 = vmatprep.subr.bf16.mxu1 %v9518_v1 }
0x1a5e   : > { %v4806_v15 = vpop.f32.mrb[58].mxu1 }
0x1a5f   : > { %v4810_v16 = vmul.f32 0.35355338, %v4806_v15  ;;  %v8985_v53 = vpop.f32.mrb[59].mxu1  ;;  %v5544_v15 = vsel %vm2027_vm3, %v4608_v11, 0 }
0x1a61   : > { %v4812_v17 = vsel %vm4811_vm10, %v4810_v16, -inf }
0x1a62   : > { %4813 = vmax.xlane.f32.xlu1 %v4812_v17 }
0x1ad0   : > { %v4973_v18 = vpop.f32.mrb[72].mxu1 }
0x1ad1   : > { %v4977_v9 = vmul.f32 0.35355338, %v4973_v18  ;;  %v8995_v19 = vpop.f32.mrb[73].mxu1 }
0x1ad3   : > { %v4978_v20 = vsel %vm4811_vm10, %v4977_v9, -inf }
0x1ad4   : > { %4979 = vmax.xlane.f32.xlu0 %v4978_v20 }
0x1ad7   : > { %v5139_v21 = vpop.f32.mrb[74].mxu1 }
0x1ad8   : > { %v5143_v22 = vmul.f32 0.35355338, %v5139_v21  ;;  %v9005_v23 = vpop.f32.mrb[75].mxu1 }
0x1ada   : > { %v5144_v24 = vsel %vm4811_vm10, %v5143_v22, -inf }
0x1adb   : > { %5145 = vmax.xlane.f32.xlu0 %v5144_v24  ;;  %v5305_v25 = vpop.f32.mrb[76].mxu1 }
0x1adc   : > { %v5309_v26 = vmul.f32 0.35355338, %v5305_v25  ;;  %v9015_v27 = vpop.f32.mrb[77].mxu1 }
0x1ade   : > { %v5310_v13 = vsel %vm4811_vm10, %v5309_v26, -inf }
0x1adf   : > { %5311 = vmax.xlane.f32.xlu1 %v5310_v13 }
0x1aef   : > { %v4814_v29 = vpop.xlane.xlu1 %4813 }
0x1af0   : > { %v4815_v30 = vsub.f32 %v4810_v16, %v4814_v29  ;;  %4989 = vrot.lane.b32.xlu1 %v10202_v48, %s10733_s12  ;;  %v4607_v16 = vld [vmem:[%s10737_s21 + $0x8] sm:$0xf] }
0x1af2   : > { %v4816_v31 = vmul.f32 1.442695, %v4815_v30 }
0x1af4   : > { %9409 = vpow2.f32 %v4816_v31 }
0x1afe   : > { %v9410_v32 = vpop.eup %9409 }
0x1aff   : > { %v4818_v33 = vsel %vm4811_vm10, %v9410_v32, 0.0 }
0x1b00   : > { %4819 = vadd.xlane.f32.xlu0 %v4818_v33 }
0x1b16   : > { %4823 = vrot.lane.b32.xlu0 %v10202_v48, %s10734_s14 }
0x1b61   : > { %v4980_v34 = vpop.xlane.xlu0 %4979 }
0x1b62   : > { %v4981_v35 = vsub.f32 %v4977_v9, %v4980_v34  ;;  %v5496_v9 = vsel %vm2027_vm3, %v4607_v16, 0 }
0x1b64   : > { %v4982_v36 = vmul.f32 1.442695, %v4981_v35 }
0x1b66   : > { %9411 = vpow2.f32 %v4982_v36 }
0x1b68   : > { %v5146_v37 = vpop.xlane.xlu0 %5145 }
0x1b69   : > { %v5147_v38 = vsub.f32 %v5143_v22, %v5146_v37 }
0x1b6b   : > { %v5148_v57 = vmul.f32 1.442695, %v5147_v38 }
0x1b6c   : > { %v5312_v40 = vpop.xlane.xlu1 %5311 }
0x1b6d   : > { %9413 = vpow2.f32 %v5148_v57  ;;  %v5313_v41 = vsub.f32 %v5309_v26, %v5312_v40  ;;  %v8372_v57 = vld [vmem:[%s10738_s24] ss:$0 sm:$0xff] }
0x1b6f   : > { %v5314_v42 = vmul.f32 1.442695, %v5313_v41 }
0x1b70   : > { %v9412_v47 = vpop.eup %9411  ;;  %v4990_v55 = vpop.permute.xlu1 %4989 }
0x1b71   : > { %9415 = vpow2.f32 %v5314_v42  ;;  %v4984_v43 = vsel %vm4811_vm10, %v9412_v47, 0.0 }
0x1b72   : > { %4985 = vadd.xlane.f32.xlu1 %v4984_v43 }
0x1b77   : > { %v9414_v44 = vpop.eup %9413 }
0x1b78   : > { %v5150_v45 = vsel %vm4811_vm10, %v9414_v44, 0.0 }
0x1b79   : > { %5151 = vadd.xlane.f32.xlu0 %v5150_v45 }
0x1b7b   : > { %v9416_v46 = vpop.eup %9415 }
0x1b7c   : > { %v5316_v49 = vsel %vm4811_vm10, %v9416_v46, 0.0 }
0x1b7d   : > { %5317 = vadd.xlane.f32.xlu1 %v5316_v49 }
0x1b8d   : > { %v4820_v50 = vpop.xlane.xlu0 %4819 }
0x1b8e   : > { %9417 = vrcp.f32 %v4820_v50  ;;  %5155 = vrot.lane.b32.xlu1 %v10202_v48, %s10735_s17 }
0x1b8f   : > { %5321 = vrot.lane.b32.xlu0 %v10202_v48, %s10736_s19 }
0x1b91   : > { %v4824_v51 = vpop.permute.xlu0 %4823 }
0x1b92   : > { %8987 = vmatpush3.msra.mxu0 %v4824_v51 }
0x1b93   : > { %8996 = vmatprep.subr.mxu0 %v9518_v1 }
0x1b98   : > { %v9418_v52 = vpop.eup %9417 }
0x1b99   : > { %v4822_v54 = vmul.f32 %v9418_v52, %v9410_v32 }
0x1b9b   : > { %8989 = vmatmul.mubr.msk.f32.vlgmr.msra.gmra.mrb[50].mxu0 %vm1351_vm2, %v4822_v54 }
0x1b9c   : > { %8997 = vmatpush3.msra.mxu0 %v4990_v55  ;;  %8998 = vmatprep.mubr.msk.f32.mxu0 %vm9519_vm0, %v9518_v1  ;;  %v9329_v55 = vld [vmem:[%s10739_s25] sm:$0xff]  }
0x1b9d   : > { %9006 = vmatprep.subr.mxu0 %v9518_v1 }
0x1bff   : > { %v4986_v56 = vpop.xlane.xlu1 %4985 }
0x1c00   : > { %9419 = vrcp.f32 %v4986_v56  ;;  %v9330_v56 = vld [vmem:[%s10739_s25 + $0x8] sm:$0xff]  }
0x1c06   : > { %v5152_v58 = vpop.xlane.xlu0 %5151 }
0x1c07   : > { %9421 = vrcp.f32 %v5152_v58  ;;  %v9332_v58 = vld [vmem:[%s10740_s29 + $0x8] sm:$0xff]  }
0x1c0a   : > { %v9420_v48 = vpop.eup %9419  ;;  %v5318_v59 = vpop.xlane.xlu1 %5317 }
0x1c0b   : > { %v4988_v60 = vmul.f32 %v9420_v48, %v9412_v47  ;;  %9423 = vrcp.f32 %v5318_v59  ;;  %v5322_v2 = vpop.permute.xlu0 %5321 }
0x1c0d   : > { %8999 = vmatmul.mubr.msk.f32.vlgmr.msra.gmra.mrb[64].mxu0 %vm1351_vm2, %v4988_v60 }
0x1c0e   : > { %v5156_v61 = vpop.permute.xlu1 %5155  ;;  %9008 = vmatprep.mubr.msk.f32.mxu0 %vm9519_vm0, %v9518_v1 }
0x1c0f   : > { %9007 = vmatpush3.msra.mxu0 %v5156_v61 }
0x1c10   : > { %9016 = vmatprep.subr.mxu0 %v9518_v1 }
0x1c11   : > { %v9422_v63 = vpop.eup %9421 }
0x1c12   : > { %v5154_v3 = vmul.f32 %v9422_v63, %v9414_v44  ;;  %v8373_v63 = vld [vmem:[%s10741_s30] ss:$0 sm:$0xff] }
0x1c14   : > { %9009 = vmatmul.mubr.msk.f32.vlgmr.msra.gmra.mrb[66].mxu0 %vm1351_vm2, %v5154_v3 }
0x1c15   : > { %v9424_v4 = vpop.eup %9423  ;;  %9017 = vmatpush3.msra.mxu0 %v5322_v2  ;;  %9018 = vmatprep.mubr.msk.f32.mxu0 %vm9519_vm0, %v9518_v1 }
0x1c16   : > { %v5320_v5 = vmul.f32 %v9424_v4, %v9416_v46  ;;  %9027 = vmatprep.subr.bf16.mxu0 %v9518_v1 }
0x1c18   : > { %9019 = vmatmul.mubr.msk.f32.vlgmr.msra.gmra.mrb[68].mxu0 %vm1351_vm2, %v5320_v5 }
0x1c19   : > { %9028 = vmatpush3.bf16.msra.mxu0 %v5449_v6  ;;  %9029 = vmatprep.mubr.msk.bf16.mxu0 %vm9519_vm0, %v9518_v1  ;;  %v9333_v6 = vld [vmem:[%s10740_s29 + $0x10] sm:$0xff]  }
0x1c1a   : > { %9039 = vmatprep.subr.bf16.mxu0 %v9518_v1 }
0x1c6e   : > { %v4895_v7 = vpop.f32.mrb[50].mxu0 }
0x1c6f   : > { %v5397_v12 = vpack.c.bf16 %v4895_v7, %v4895_v7  ;;  %v8990_v14 = vpop.f32.mrb[51].mxu0 }
0x1c71   : > { %9030 = vmatmul.mubr.msk.bf16.vlgmr.msra.gmra.mrb[72].mxu0 %vm1351_vm2, %v5397_v12 }
0x1c72   : > { %9040 = vmatpush3.bf16.msra.mxu0 %v5544_v15  ;;  %9041 = vmatprep.mubr.msk.bf16.mxu0 %vm9519_vm0, %v9518_v1 }
0x1c73   : > { %9053 = vmatprep.subr.bf16.mxu0 %v9518_v1 }
0x1ce0   : > { %v5061_v53 = vpop.f32.mrb[64].mxu0 }
0x1ce1   : > { %v5398_v17 = vpack.c.bf16 %v5061_v53, %v5061_v53  ;;  %v9000_v18 = vpop.f32.mrb[65].mxu0 }
0x1ce3   : > { %9024 = vmatmul.mubr.msk.bf16.vlgmr.msra.gmra.mrb[80].mxu1 %vm1351_vm2, %v5398_v17  ;;  %v8379_v17 = vld [vmem:[%s10745_s27] ss:$0 sm:$0xff] }
0x1ce4   : > { %9034 = vmatpush3.bf16.msra.mxu1 %v5496_v9  ;;  %9035 = vmatprep.mubr.msk.bf16.mxu1 %vm9519_vm0, %v9518_v1 }
0x1ce5   : > { %9045 = vmatprep.subr.bf16.mxu1 %v9518_v1 }
0x1ce7   : > { %v5227_v19 = vpop.f32.mrb[66].mxu0 }
0x1ce8   : > { %v5491_v20 = vpack.c.bf16 %v5227_v19, %v5227_v19  ;;  %v9010_v21 = vpop.f32.mrb[67].mxu0 }
0x1ceb   : > { %v5393_v22 = vpop.f32.mrb[68].mxu0  ;;  %9036 = vmatmul.mubr.msk.bf16.vlgmr.msra.gmra.mrb[84].mxu1 %vm1351_vm2, %v5491_v20 }
0x1cec   : > { %v5539_v23 = vpack.c.bf16 %v5393_v22, %v5393_v22  ;;  %v9020_v24 = vpop.f32.mrb[69].mxu0  ;;  %9049 = vmatprep.mubr.msk.bf16.mxu1 %vm9519_vm0, %v9518_v1  ;;  %9046 = vmatpush3.bf16.msra.mxu1 %v9329_v55 }
0x1ced   : > { %9047 = vmatprep.subr.bf16.mxu1 %v9518_v1 }
0x1cee   : > { %9042 = vmatmul.mubr.msk.bf16.vlgmr.msra.gmra.mrb[76].mxu0 %vm1351_vm2, %v5539_v23 }
0x1cef   : > { %9061 = vmatprep.mubr.msk.bf16.mxu0 %vm9519_vm0, %v9518_v1 }
0x1cf0   : > { %9048 = vmatpush3.bf16.msra.mxu1 %v9330_v56 }
0x1cf1   : > { %9065 = vmatprep.subr.bf16.mxu1 %v9518_v1 }
0x1d44   : > { %v5485_v25 = vpop.f32.mrb[72].mxu0 }
0x1d45   : > { %v9031_v26 = vpop.f32.mrb[73].mxu0 }
0x1d46   : > { %v5488_v27 = vpop.f32.mrb[74].mxu0 }
0x1d47   : > { %v9032_v13 = vpop.f32.mrb[75].mxu0 }
0x1db6   : > { %v5439_v29 = vpop.f32.mrb[80].mxu1 }
0x1db7   : > { %v5486_v30 = vadd.f32 %v5485_v25, %v5439_v29  ;;  %v9025_v31 = vpop.f32.mrb[81].mxu1  ;;  %v9335_v29 = vld [vmem:[%s10714_s11 + $0x10] sm:$0xff]  }
0x1db8   : > { %v5442_v32 = vpop.f32.mrb[82].mxu1 }
0x1db9   : > { %v9026_v33 = vpop.f32.mrb[83].mxu1 }
0x1dbe   : > { %v5532_v34 = vpop.f32.mrb[84].mxu1 }
0x1dbf   : > { %v5538_v35 = vadd.f32 %v5532_v34, %v5486_v30  ;;  %v9037_v36 = vpop.f32.mrb[85].mxu1  ;;  %v9336_v30 = vld [vmem:[%s10714_s11 + $0x18] sm:$0xff]  }
0x1dc0   : > { %v5535_v37 = vpop.f32.mrb[86].mxu1 }
0x1dc1   : > { %v9038_v38 = vpop.f32.mrb[87].mxu1  ;;  %v5580_v40 = vpop.f32.mrb[76].mxu0  ;;  %v8386_v37 = vld [vmem:[%s10748_s20] ss:$0 sm:$0xff] }
0x1dc2   : > { %v5586_v41 = vadd.f32 %v5580_v40, %v5538_v35  ;;  %v9043_v42 = vpop.f32.mrb[77].mxu0  ;;  %v8385_v35 = vld [vmem:[%s10746_s7] ss:$0 sm:$0xff] }
0x1dc3   : > { %v5583_v47 = vpop.f32.mrb[78].mxu0 }
0x1dc4   : > { %v5593_v43 = vadd.f32 %v8372_v57, %v5586_v41  ;;  %v9044_v44 = vpop.f32.mrb[79].mxu0  ;;  %v8397_v41 = vld [vmem:[%s10716_s23 + $0x1] ss:$0 sm:$0xff] }
0x1dc6   : > { %v5594_v45 = vadd.f32 %v5593_v43, %v10208_v62  ;;  %v9331_v62 = vld [vmem:[%s10740_s29] sm:$0xff]  }
0x1dc7   : > { %9054 = vmatpush3.bf16.msra.mxu0 %v9331_v62 }
0x1dc8   : > { %v5597_v46 = vsel %vm4567_vm9, %v5594_v45, 0.0  ;;  %9055 = vmatprep.subr.bf16.mxu0 %v9518_v1 }
0x1dc9   : > { %5598 = vadd.xlane.f32.xlu1 %v5597_v46 }
0x1dcb   : > { %9056 = vmatpush3.bf16.msra.mxu0 %v9332_v58 }
0x1dcc   : > { %9057 = vmatprep.subr.bf16.mxu0 %v9518_v1 }
0x1dcf   : > { %9058 = vmatpush3.bf16.msra.mxu0 %v9333_v6 }
0x1dd0   : > { %9059 = vmatprep.subr.bf16.mxu0 %v9518_v1 }
0x1dd3   : > { %9060 = vmatpush3.bf16.msra.mxu0 %v9334_v8 }
0x1dd4   : > { %9078 = vmatprep.subr.mxu0 %v9518_v1 }
0x1e56   : > { %v5599_v49 = vpop.xlane.xlu1 %5598 }
0x1e57   : > { %v5600_v50 = vmul.f32 0.03125, %v5599_v49 }
0x1e59   : > { %v5601_v51 = vsub.f32 %v5594_v45, %v5600_v50 }
0x1e5b   : > { %v5602_v52 = vmul.f32 %v5601_v51, %v5601_v51 }
0x1e5d   : > { %v5603_v54 = vsel %vm4567_vm9, %v5602_v52, 0.0 }
0x1e5e   : > { %5604 = vadd.xlane.f32.xlu0 %v5603_v54 }
0x1eeb   : > { %v5605_v48 = vpop.xlane.xlu0 %5604 }
0x1eec   : > { %v5606_v59 = vmul.f32 0.03125, %v5605_v48 }
0x1eee   : > { %v5607_v60 = vadd.f32 1e-05, %v5606_v59 }
0x1ef0   : > { %9425 = vrsqrt.f32 %v5607_v60 }
0x1efa   : > { %v9426_v61 = vpop.eup %9425 }
0x1efb   : > { %v5609_v3 = vmul.f32 %v9426_v61, %v5601_v51 }
0x1efd   : > { %v5616_v2 = vmul.f32 %v8373_v63, %v5609_v3 }
0x1eff   : > { %v5623_v4 = vadd.f32 %v8374_v0, %v5616_v2 }
0x1f01   : > { %v5638_v5 = vpack.c.bf16 %v5623_v4, %v5623_v4 }
0x1f03   : > { %9050 = vmatmul.mubr.msk.bf16.vlgmr.msra.gmra.mrb[88].mxu1 %vm1304_vm1, %v5638_v5 }
0x1f04   : > { %9069 = vmatprep.mubr.msk.bf16.mxu1 %vm9519_vm0, %v9518_v1  ;;  %9066 = vmatpush3.bf16.msra.mxu1 %v9335_v29 }
0x1f05   : > { %9067 = vmatprep.subr.bf16.mxu1 %v9518_v1 }
0x1f08   : > { %9068 = vmatpush3.bf16.msra.mxu1 %v9336_v30 }
0x1f09   : > { %9073 = vmatprep.subr.mxu1 %v9518_v1 }
0x1fd6   : > { %v5694_v11 = vpop.f32.mrb[88].mxu1 }
0x1fd7   : > { %v5695_v7 = vadd.f32 %v8375_v10, %v5694_v11  ;;  %v9051_v12 = vpop.f32.mrb[89].mxu1 }
0x1fd8   : > { %v5697_v14 = vpop.f32.mrb[90].mxu1 }
0x1fd9   : > { %v5700_v15 = vmax.f32 %v5695_v7, 0.0  ;;  %v9052_v16 = vpop.f32.mrb[91].mxu1 }
0x1fdb   : > { %v5701_v53 = vpack.c.bf16 %v5700_v15, %v5700_v15 }
0x1fdd   : > { %9062 = vmatmul.mubr.msk.bf16.vlgmr.msra.gmra.mrb[80].mxu0 %vm2359_vm4, %v5701_v53 }
0x1fde   : > { %9080 = vmatprep.mubr.msk.f32.mxu0 %vm9519_vm0, %v9518_v1 }
0x20b0   : > { %v5769_v18 = vpop.f32.mrb[80].mxu0 }
0x20b1   : > { %v5770_v9 = vadd.f32 %v8379_v17, %v5769_v18  ;;  %v9063_v19 = vpop.f32.mrb[81].mxu0 }
0x20b2   : > { %v5772_v20 = vpop.f32.mrb[82].mxu0 }
0x20b3   : > { %v9064_v21 = vpop.f32.mrb[83].mxu0  ;;  %v5775_v22 = vadd.f32 %v5770_v9, %v5623_v4 }
0x20b5   : > { %v5778_v23 = vsel %vm4567_vm9, %v5775_v22, 0.0 }
0x20b6   : > { %5779 = vadd.xlane.f32.xlu0 %v5778_v23 }
0x2143   : > { %v5780_v24 = vpop.xlane.xlu0 %5779 }
0x2144   : > { %v5781_v25 = vmul.f32 0.03125, %v5780_v24 }
0x2146   : > { %v5782_v26 = vsub.f32 %v5775_v22, %v5781_v25 }
0x2148   : > { %v5783_v27 = vmul.f32 %v5782_v26, %v5782_v26 }
0x214a   : > { %v5784_v13 = vsel %vm4567_vm9, %v5783_v27, 0.0 }
0x214b   : > { %5785 = vadd.xlane.f32.xlu1 %v5784_v13 }
0x21d8   : > { %v5786_v31 = vpop.xlane.xlu1 %5785 }
0x21d9   : > { %v5787_v32 = vmul.f32 0.03125, %v5786_v31 }
0x21db   : > { %v5788_v33 = vadd.f32 1e-05, %v5787_v32 }
0x21dd   : > { %9427 = vrsqrt.f32 %v5788_v33 }
0x21e7   : > { %v9428_v34 = vpop.eup %9427 }
0x21e8   : > { %v5790_v36 = vmul.f32 %v9428_v34, %v5782_v26 }
0x21ea   : > { %v5797_v38 = vmul.f32 %v8385_v35, %v5790_v36 }
0x21ec   : > { %v10334_v57 = vadd.f32 %v8386_v37, %v5797_v38 }
0x21ee   : > { %v5819_v40 = vpack.c.bf16 %v10334_v57, %v10334_v57 }
0x21f0   : > { %9070 = vmatmul.mubr.msk.bf16.vlgmr.msra.gmra.mrb[92].mxu1 %vm1304_vm1, %v5819_v40 }
0x21f1   : > { %9075 = vmatprep.mubr.msk.f32.mxu1 %vm9519_vm0, %v9518_v1 }
0x22c3   : > { %v5875_v42 = vpop.f32.mrb[92].mxu1 }
0x22c4   : > { %v10342_v47 = vadd.f32 %v8397_v41, %v5875_v42  ;;  %v9071_v43 = vpop.f32.mrb[93].mxu1 }
0x22c5   : > { %v5878_v44 = vpop.f32.mrb[94].mxu1 }
0x22c6   : > { %6050 = vrot.lane.b32.xlu1 %v10342_v47, %s10733_s12  ;;  %5882 = vrot.lane.b32.xlu0 %v10342_v47, %s10734_s14  ;;  %v9072_v45 = vpop.f32.mrb[95].mxu1 }
0x22ca   : > { %6048 = vrot.lane.b32.xlu1 %v10342_v47, %s10729_s5  ;;  %6218 = vrot.lane.b32.xlu0 %v10342_v47, %s10735_s17 }
0x22ce   : > { %6216 = vrot.lane.b32.xlu1 %v10342_v47, %s10731_s8  ;;  %6386 = vrot.lane.b32.xlu0 %v10342_v47, %s10736_s19 }
0x22d2   : > { %6384 = vrot.lane.b32.xlu1 %v10342_v47, %s10732_s9 }
0x2338   : > { %v6051_v46 = vpop.permute.xlu1 %6050  ;;  %v5883_v49 = vpop.permute.xlu0 %5882 }
0x2339   : > { %9074 = vmatpush3.xpose.msk.msra.mxu1 %vm1351_vm2, %v5883_v49 }
0x233a   : > { %9083 = vmatprep.subr.mxu1 %v9518_v1 }
0x233c   : > { %v6049_v50 = vpop.permute.xlu1 %6048  ;;  %9076 = vmatmul.mubr.msk.f32.vlgmr.msra.gmra.mrb[78].mxu1 %vm1351_vm2, %v10342_v47  ;;  %v6219_v51 = vpop.permute.xlu0 %6218 }
0x233d   : > { %9084 = vmatpush3.xpose.msk.msra.mxu1 %vm1351_vm2, %v6051_v46  ;;  %9085 = vmatprep.mubr.msk.f32.mxu1 %vm9519_vm0, %v9518_v1 }
0x233e   : > { %9093 = vmatprep.subr.mxu1 %v9518_v1 }
0x2340   : > { %9086 = vmatmul.mubr.msk.f32.vlgmr.msra.gmra.mrb[96].mxu1 %vm1351_vm2, %v6049_v50  ;;  %v6217_v52 = vpop.permute.xlu1 %6216  ;;  %v6387_v54 = vpop.permute.xlu0 %6386  ;;  %v8392_v50 = vld [vmem:[%s10720_s28 + $0x10] sm:$0xf] }
0x2341   : > { %9094 = vmatpush3.xpose.msk.msra.mxu1 %vm1351_vm2, %v6219_v51  ;;  %9095 = vmatprep.mubr.msk.f32.mxu1 %vm9519_vm0, %v9518_v1  ;;  %v6604_v51 = vsel %vm2027_vm3, %v8392_v50, 0 }
0x2342   : > { %9103 = vmatprep.subr.mxu1 %v9518_v1 }
0x2344   : > { %9096 = vmatmul.mubr.msk.f32.vlgmr.msra.gmra.mrb[98].mxu1 %vm1351_vm2, %v6217_v52  ;;  %v6385_v55 = vpop.permute.xlu1 %6384  ;;  %v8393_v52 = vld [vmem:[%s10720_s28 + $0x14] sm:$0xf] }
0x2345   : > { %9104 = vmatpush3.xpose.msk.msra.mxu1 %vm1351_vm2, %v6387_v54  ;;  %9105 = vmatprep.mubr.msk.f32.mxu1 %vm9519_vm0, %v9518_v1  ;;  %v6558_v54 = vsel %vm2027_vm3, %v8393_v52, 0 }
0x2346   : > { %9113 = vmatprep.subr.bf16.mxu1 %v9518_v1 }
0x2348   : > { %9106 = vmatmul.mubr.msk.f32.vlgmr.msra.gmra.mrb[100].mxu1 %vm1351_vm2, %v6385_v55  ;;  %v8395_v55 = vld [vmem:[%s10720_s28 + $0x1c] sm:$0xf] }
0x2349   : > { %9115 = vmatprep.mubr.msk.bf16.mxu1 %vm9519_vm0, %v9518_v1  ;;  %9114 = vmatpush3.bf16.msra.mxu1 %v6558_v54 }
0x234a   : > { %9125 = vmatprep.subr.bf16.mxu1 %v9518_v1 }
0x240f   : > { %v5954_v56 = vpop.f32.mrb[78].mxu1 }
0x2410   : > { %v5958_v62 = vmul.f32 0.35355338, %v5954_v56  ;;  %v9077_v58 = vpop.f32.mrb[79].mxu1 }
0x2412   : > { %v5959_v48 = vadd.f32 %v5958_v62, %v10106_v28 }
0x2413   : > { %v6122_v59 = vpop.f32.mrb[96].mxu1 }
0x2414   : > { %v6126_v60 = vmul.f32 0.35355338, %v6122_v59  ;;  %v9087_v61 = vpop.f32.mrb[97].mxu1  ;;  %v5960_v63 = vsel %vm3772_vm6, %v5959_v48, -inf  ;;  %v8394_v59 = vld [vmem:[%s10720_s28 + $0x18] sm:$0xf] }
0x2415   : > { %5961 = vmax.xlane.f32.xlu0 %v5960_v63 }
0x2416   : > { %v6127_v3 = vadd.f32 %v6126_v60, %v10106_v28 }
0x2417   : > { %v6290_v0 = vpop.f32.mrb[98].mxu1 }
0x2418   : > { %v6294_v2 = vmul.f32 0.35355338, %v6290_v0  ;;  %v9097_v4 = vpop.f32.mrb[99].mxu1  ;;  %v6128_v5 = vsel %vm3772_vm6, %v6127_v3, -inf }
0x2419   : > { %6129 = vmax.xlane.f32.xlu1 %v6128_v5  ;;  %v9337_v5 = vld [vmem:[%s10721_s16 + $0x10] sm:$0xff]  }
0x241a   : > { %v6295_v6 = vadd.f32 %v6294_v2, %v10106_v28 }
0x241b   : > { %v6458_v8 = vpop.f32.mrb[100].mxu1 }
0x241c   : > { %v6462_v10 = vmul.f32 0.35355338, %v6458_v8  ;;  %v9107_v11 = vpop.f32.mrb[101].mxu1  ;;  %v6296_v7 = vsel %vm3772_vm6, %v6295_v6, -inf }
0x241d   : > { %6297 = vmax.xlane.f32.xlu0 %v6296_v7  ;;  %v9338_v11 = vld [vmem:[%s10721_s16 + $0x18] sm:$0xff]  }
0x241e   : > { %v6463_v12 = vadd.f32 %v6462_v10, %v10106_v28 }
0x2420   : > { %v6464_v14 = vsel %vm3772_vm6, %v6463_v12, -inf }
0x2421   : > { %6465 = vmax.xlane.f32.xlu0 %v6464_v14 }
0x242a   : > { %5971 = vrot.lane.b32.xlu1 %v10342_v47, %s10717_s15  ;;  %s10749_s15 = smov 56  }
0x24a2   : > { %v5962_v15 = vpop.xlane.xlu0 %5961 }
0x24a3   : > { %v5963_v16 = vsub.f32 %v5959_v48, %v5962_v15  ;;  %v6699_v48 = vsel %vm2027_vm3, %v8395_v55, 0 }
0x24a5   : > { %v5964_v53 = vmul.f32 1.442695, %v5963_v16 }
0x24a6   : > { %v6130_v17 = vpop.xlane.xlu1 %6129 }
0x24a7   : > { %9429 = vpow2.f32 %v5964_v53  ;;  %v6131_v18 = vsub.f32 %v6127_v3, %v6130_v17  ;;  %v6651_v3 = vsel %vm2027_vm3, %v8394_v59, 0 }
0x24a9   : > { %v6132_v9 = vmul.f32 1.442695, %v6131_v18 }
0x24aa   : > { %v5972_v19 = vpop.permute.xlu1 %5971  ;;  %v6298_v20 = vpop.xlane.xlu0 %6297 }
0x24ab   : > { %9431 = vpow2.f32 %v6132_v9  ;;  %v6299_v21 = vsub.f32 %v6295_v6, %v6298_v20  ;;  %9079 = vmatpush3.msk.msra.mxu0 %vm3790_vm7, %v5972_v19 }
0x24ac   : > { %9088 = vmatprep.subr.mxu0 %v9518_v1 }
0x24ad   : > { %v6300_v28 = vmul.f32 1.442695, %v6299_v21 }
0x24ae   : > { %v6466_v22 = vpop.xlane.xlu0 %6465 }
0x24af   : > { %9433 = vpow2.f32 %v6300_v28  ;;  %v6467_v23 = vsub.f32 %v6463_v12, %v6466_v22 }
0x24b1   : > { %v9430_v24 = vpop.eup %9429  ;;  %v6468_v25 = vmul.f32 1.442695, %v6467_v23 }
0x24b2   : > { %v5966_v26 = vsel %vm3772_vm6, %v9430_v24, 0.0 }
0x24b3   : > { %9435 = vpow2.f32 %v6468_v25  ;;  %5967 = vadd.xlane.f32.xlu1 %v5966_v26 }
0x24b5   : > { %v9432_v27 = vpop.eup %9431 }
0x24b6   : > { %v6134_v13 = vsel %vm3772_vm6, %v9432_v27, 0.0 }
0x24b7   : > { %6135 = vadd.xlane.f32.xlu0 %v6134_v13 }
0x24b9   : > { %v9434_v29 = vpop.eup %9433 }
0x24ba   : > { %v6302_v30 = vsel %vm3772_vm6, %v9434_v29, 0.0 }
0x24bb   : > { %6303 = vadd.xlane.f32.xlu1 %v6302_v30 }
0x24bd   : > { %v9436_v31 = vpop.eup %9435 }
0x24be   : > { %v6470_v32 = vsel %vm3772_vm6, %v9436_v31, 0.0 }
0x24bf   : > { %6471 = vadd.xlane.f32.xlu0 %v6470_v32 }
0x24cc   : > { %6307 = vrot.lane.b32.xlu1 %v10342_v47, %s10718_s10 }
0x24d0   : > { %6475 = vrot.lane.b32.xlu1 %v10342_v47, %s10719_s26 }
0x24d5   : > { %6139 = vrot.lane.b32.xlu0 %v10342_v47, %s10749_s15 }
0x2540   : > { %v5968_v33 = vpop.xlane.xlu1 %5967 }
0x2541   : > { %9437 = vrcp.f32 %v5968_v33 }
0x2544   : > { %v6136_v34 = vpop.xlane.xlu0 %6135 }
0x2545   : > { %9439 = vrcp.f32 %v6136_v34 }
0x2548   : > { %v6304_v35 = vpop.xlane.xlu1 %6303 }
0x2549   : > { %9441 = vrcp.f32 %v6304_v35  ;;  %v8445_v35 = vld [vmem:[%s10726_s3 + $0x1] ss:$0 sm:$0xff] }
0x254b   : > { %v9438_v36 = vpop.eup %9437 }
0x254c   : > { %v5970_v37 = vmul.f32 %v9438_v36, %v9430_v24  ;;  %v6472_v38 = vpop.xlane.xlu0 %6471  ;;  %v6308_v42 = vpop.permute.xlu1 %6307 }
0x254d   : > { %9443 = vrcp.f32 %v6472_v38 }
0x254e   : > { %9081 = vmatmul.mubr.msk.f32.vlgmr.msra.gmra.mrb[70].mxu0 %vm3786_vm8, %v5970_v37 }
0x254f   : > { %v9440_v40 = vpop.eup %9439  ;;  %9090 = vmatprep.mubr.msk.f32.mxu0 %vm9519_vm0, %v9518_v1 }
0x2550   : > { %v6138_v41 = vmul.f32 %v9440_v40, %v9432_v27  ;;  %v6140_v43 = vpop.permute.xlu0 %6139  ;;  %v6476_v45 = vpop.permute.xlu1 %6475 }
0x2551   : > { %9089 = vmatpush3.msk.msra.mxu0 %vm3790_vm7, %v6140_v43  ;;  %v9340_v43 = vld [vmem:[%s10725_s22 + $0x18] sm:$0xff]  }
0x2552   : > { %9091 = vmatmul.mubr.msk.f32.vlgmr.msra.gmra.mrb[84].mxu0 %vm3786_vm8, %v6138_v41  ;;  %9098 = vmatprep.subr.mxu0 %v9518_v1 }
0x2553   : > { %v9442_v47 = vpop.eup %9441  ;;  %9099 = vmatpush3.msk.msra.mxu0 %vm3790_vm7, %v6308_v42  ;;  %9100 = vmatprep.mubr.msk.f32.mxu0 %vm9519_vm0, %v9518_v1  ;;  %v9339_v42 = vld [vmem:[%s10725_s22 + $0x10] sm:$0xff]  }
0x2554   : > { %v6306_v44 = vmul.f32 %v9442_v47, %v9434_v29  ;;  %9108 = vmatprep.subr.mxu0 %v9518_v1 }
0x2556   : > { %9101 = vmatmul.mubr.msk.f32.vlgmr.msra.gmra.mrb[86].mxu0 %vm3786_vm8, %v6306_v44 }
0x2557   : > { %v9444_v46 = vpop.eup %9443  ;;  %9109 = vmatpush3.msk.msra.mxu0 %vm3790_vm7, %v6476_v45  ;;  %9110 = vmatprep.mubr.msk.f32.mxu0 %vm9519_vm0, %v9518_v1 }
0x2558   : > { %v6474_v49 = vmul.f32 %v9444_v46, %v9436_v31  ;;  %9119 = vmatprep.subr.bf16.mxu0 %v9518_v1 }
0x255a   : > { %9111 = vmatmul.mubr.msk.f32.vlgmr.msra.gmra.mrb[88].mxu0 %vm3786_vm8, %v6474_v49  ;;  %v8424_v49 = vld [vmem:[%s10727_s1 + $0x1] ss:$0 sm:$0xff] }
0x255b   : > { %9121 = vmatprep.mubr.msk.bf16.mxu0 %vm9519_vm0, %v9518_v1  ;;  %9120 = vmatpush3.bf16.msra.mxu0 %v6604_v51  ;;  %v8425_v51 = vld [vmem:[%s10728_s2 + $0x1] ss:$0 sm:$0xff] }
0x255c   : > { %9131 = vmatprep.subr.bf16.mxu0 %v9518_v1 }
0x2621   : > { %v6044_v56 = vpop.f32.mrb[70].mxu0 }
0x2622   : > { %v6552_v62 = vpack.c.bf16 %v6044_v56, %v6044_v56  ;;  %v9082_v58 = vpop.f32.mrb[71].mxu0  ;;  %v8441_v56 = vld [vmem:[%s10730_s6 + $0x1] ss:$0 sm:$0xff] }
0x2624   : > { %9122 = vmatmul.mubr.msk.bf16.vlgmr.msra.gmra.mrb[92].mxu0 %vm1351_vm2, %v6552_v62 }
0x2625   : > { %v6212_v60 = vpop.f32.mrb[84].mxu0  ;;  %9132 = vmatpush3.bf16.msra.mxu0 %v6699_v48  ;;  %9133 = vmatprep.mubr.msk.bf16.mxu0 %vm9519_vm0, %v9518_v1 }
0x2626   : > { %v6553_v61 = vpack.c.bf16 %v6212_v60, %v6212_v60  ;;  %v9092_v63 = vpop.f32.mrb[85].mxu0  ;;  %9145 = vmatprep.subr.bf16.mxu0 %v9518_v1 }
0x2628   : > { %9116 = vmatmul.mubr.msk.bf16.vlgmr.msra.gmra.mrb[104].mxu1 %vm1351_vm2, %v6553_v61 }
0x2629   : > { %v6380_v0 = vpop.f32.mrb[86].mxu0  ;;  %9126 = vmatpush3.bf16.msra.mxu1 %v6651_v3  ;;  %9127 = vmatprep.mubr.msk.bf16.mxu1 %vm9519_vm0, %v9518_v1 }
0x262a   : > { %v9102_v2 = vpop.f32.mrb[87].mxu0  ;;  %9137 = vmatprep.subr.bf16.mxu1 %v9518_v1  ;;  %v6646_v6 = vpack.c.bf16 %v6380_v0, %v6380_v0 }
0x262d   : > { %v6548_v4 = vpop.f32.mrb[88].mxu0 }
0x262e   : > { %v6694_v8 = vpack.c.bf16 %v6548_v4, %v6548_v4  ;;  %v9112_v10 = vpop.f32.mrb[89].mxu0 }
0x2630   : > { %9128 = vmatmul.mubr.msk.bf16.vlgmr.msra.gmra.mrb[108].mxu1 %vm1351_vm2, %v6646_v6  ;;  %9134 = vmatmul.mubr.msk.bf16.vlgmr.msra.gmra.mrb[96].mxu0 %vm1351_vm2, %v6694_v8 }
0x2631   : > { %9146 = vmatpush3.bf16.msra.mxu0 %v9337_v5  ;;  %9149 = vmatprep.mubr.msk.bf16.mxu0 %vm9519_vm0, %v9518_v1 }
0x2632   : > { %9147 = vmatprep.subr.bf16.mxu0 %v9518_v1  ;;  %9141 = vmatprep.mubr.msk.bf16.mxu1 %vm9519_vm0, %v9518_v1 }
0x2633   : > { %9138 = vmatpush3.bf16.msra.mxu1 %v9339_v42 }
0x2634   : > { %9139 = vmatprep.subr.bf16.mxu1 %v9518_v1 }
0x2635   : > { %9148 = vmatpush3.bf16.msra.mxu0 %v9338_v11 }
0x2636   : > { %9158 = vmatprep.subr.mxu0 %v9518_v1 }
0x2637   : > { %9140 = vmatpush3.bf16.msra.mxu1 %v9340_v43 }
0x2638   : > { %9150 = vmatmul.mubr.msk.bf16.vlgmr.msra.gmra.mrb[100].mxu0 %vm1304_vm1, %v10190_v39  ;;  %v8421_v39 = vld [vmem:[%s10722_s18 + $0x1] ss:$0 sm:$0xff]  ;;  %9153 = vmatprep.subr.mxu1 %v9518_v1 }
0x2639   : > { %9160 = vmatprep.mubr.msk.f32.mxu0 %vm9519_vm0, %v9518_v1 }
0x26f7   : > { %v6640_v7 = vpop.f32.mrb[92].mxu0 }
0x26f8   : > { %v9123_v12 = vpop.f32.mrb[93].mxu0 }
0x26f9   : > { %v6643_v14 = vpop.f32.mrb[94].mxu0 }
0x26fa   : > { %v9124_v15 = vpop.f32.mrb[95].mxu0 }
0x26fb   : > { %v6594_v16 = vpop.f32.mrb[104].mxu1 }
0x26fc   : > { %v6641_v53 = vadd.f32 %v6640_v7, %v6594_v16  ;;  %v9117_v17 = vpop.f32.mrb[105].mxu1 }
0x26fd   : > { %v6597_v18 = vpop.f32.mrb[106].mxu1 }
0x26fe   : > { %v9118_v9 = vpop.f32.mrb[107].mxu1 }
0x2703   : > { %v6687_v19 = vpop.f32.mrb[108].mxu1  ;;  %v6735_v20 = vpop.f32.mrb[96].mxu0 }
0x2704   : > { %v6693_v21 = vadd.f32 %v6687_v19, %v6641_v53  ;;  %v9129_v28 = vpop.f32.mrb[109].mxu1  ;;  %v9135_v22 = vpop.f32.mrb[97].mxu0 }
0x2705   : > { %v6690_v23 = vpop.f32.mrb[110].mxu1  ;;  %v6738_v24 = vpop.f32.mrb[98].mxu0 }
0x2706   : > { %v6741_v25 = vadd.f32 %v6735_v20, %v6693_v21  ;;  %v9130_v26 = vpop.f32.mrb[111].mxu1  ;;  %v9136_v27 = vpop.f32.mrb[99].mxu0 }
0x2708   : > { %v6748_v13 = vadd.f32 %v8421_v39, %v6741_v25 }
0x270a   : > { %v6749_v29 = vadd.f32 %v6748_v13, %v10334_v57 }
0x270b   : > { %v6916_v30 = vpop.f32.mrb[100].mxu0 }
0x270c   : > { %v9151_v31 = vpop.f32.mrb[101].mxu0  ;;  %v6754_v32 = vsel %vm4567_vm9, %v6749_v29, 0.0  ;;  %v10455_v36 = vadd.f32 %v8445_v35, %v6916_v30 }
0x270d   : > { %6755 = vadd.xlane.f32.xlu0 %v6754_v32  ;;  %v6919_v33 = vpop.f32.mrb[102].mxu0 }
0x270e   : > { %v9152_v34 = vpop.f32.mrb[103].mxu0 }
0x2723   : > { %7088 = vrot.lane.b32.xlu0 %v10455_v36, %s10729_s5 }
0x2727   : > { %7254 = vrot.lane.b32.xlu0 %v10455_v36, %s10731_s8 }
0x272b   : > { %7420 = vrot.lane.b32.xlu0 %v10455_v36, %s10732_s9 }
0x279a   : > { %v6756_v57 = vpop.xlane.xlu0 %6755 }
0x279b   : > { %v6757_v37 = vmul.f32 0.03125, %v6756_v57 }
0x279d   : > { %v6758_v38 = vsub.f32 %v6749_v29, %v6757_v37 }
0x279e   : > { %v7089_v60 = vpop.permute.xlu0 %7088 }
0x279f   : > { %v6759_v40 = vmul.f32 %v6758_v38, %v6758_v38 }
0x27a1   : > { %v6760_v41 = vsel %vm4567_vm9, %v6759_v40, 0.0 }
0x27a2   : > { %6761 = vadd.xlane.f32.xlu1 %v6760_v41  ;;  %v7255_v63 = vpop.permute.xlu0 %7254 }
0x27a6   : > { %v7421_v2 = vpop.permute.xlu0 %7420 }
0x282f   : > { %v6762_v47 = vpop.xlane.xlu1 %6761 }
0x2830   : > { %v6763_v44 = vmul.f32 0.03125, %v6762_v47 }
0x2832   : > { %v6764_v45 = vadd.f32 1e-05, %v6763_v44 }
0x2834   : > { %9445 = vrsqrt.f32 %v6764_v45 }
0x283e   : > { %v9446_v46 = vpop.eup %9445 }
0x283f   : > { %v6766_v50 = vmul.f32 %v9446_v46, %v6758_v38 }
0x2841   : > { %v6773_v52 = vmul.f32 %v8424_v49, %v6766_v50 }
0x2843   : > { %v10470_v54 = vadd.f32 %v8425_v51, %v6773_v52 }
0x2845   : > { %v6802_v55 = vpack.c.bf16 %v10470_v54, %v10470_v54 }
0x2847   : > { %9142 = vmatmul.mubr.msk.bf16.vlgmr.msra.gmra.mrb[112].mxu1 %vm1304_vm1, %v6802_v55  ;;  %v8436_v55 = vld [vmem:[%s10737_s21 + $0x10] sm:$0xf] }
0x2848   : > { %9154 = vmatpush3.xpose.msk.msra.mxu1 %vm1351_vm2, %v10455_v36  ;;  %9155 = vmatprep.mubr.msk.f32.mxu1 %vm9519_vm0, %v9518_v1 }
0x2849   : > { %9163 = vmatprep.subr.mxu1 %v9518_v1 }
0x291a   : > { %v6858_v62 = vpop.f32.mrb[112].mxu1 }
0x291b   : > { %v6859_v58 = vadd.f32 %v8441_v56, %v6858_v62  ;;  %v9143_v48 = vpop.f32.mrb[113].mxu1 }
0x291c   : > { %v6861_v59 = vpop.f32.mrb[114].mxu1  ;;  %v7636_v48 = vsel %vm2027_vm3, %v8436_v55, 0 }
0x291d   : > { %7086 = vrot.lane.b32.xlu1 %v6859_v58, %s10729_s5  ;;  %v9144_v61 = vpop.f32.mrb[115].mxu1  ;;  %9156 = vmatmul.mubr.msk.f32.vlgmr.msra.gmra.mrb[102].mxu1 %vm1351_vm2, %v6859_v58  ;;  %v8437_v59 = vld [vmem:[%s10737_s21 + $0x14] sm:$0xf]  ;;  %s10750_s5 = sld [smem:[#allocation41_spill]] }
0x291e   : > { %9164 = vmatpush3.xpose.msk.msra.mxu1 %vm1351_vm2, %v7089_v60  ;;  %9165 = vmatprep.mubr.msk.f32.mxu1 %vm9519_vm0, %v9518_v1  ;;  %v7590_v60 = vsel %vm2027_vm3, %v8437_v59, 0  ;;  %v8439_v61 = vld [vmem:[%s10737_s21 + $0x1c] sm:$0xf] }
0x291f   : > { %9173 = vmatprep.subr.mxu1 %v9518_v1 }
0x2921   : > { %7252 = vrot.lane.b32.xlu1 %v6859_v58, %s10731_s8  ;;  %s10753_s8 = sld [smem:[#allocation42_spill]] }
0x2925   : > { %7418 = vrot.lane.b32.xlu1 %v6859_v58, %s10732_s9  ;;  %s10751_s9 = sld [smem:[#allocation39_spill]] }
0x298f   : > { %v7087_v3 = vpop.permute.xlu1 %7086 }
0x2990   : > { %9166 = vmatmul.mubr.msk.f32.vlgmr.msra.gmra.mrb[116].mxu1 %vm1351_vm2, %v7087_v3 }
0x2991   : > { %9174 = vmatpush3.xpose.msk.msra.mxu1 %vm1351_vm2, %v7255_v63  ;;  %9175 = vmatprep.mubr.msk.f32.mxu1 %vm9519_vm0, %v9518_v1 }
0x2992   : > { %9183 = vmatprep.subr.mxu1 %v9518_v1 }
0x2993   : > { %v7253_v0 = vpop.permute.xlu1 %7252 }
0x2994   : > { %9176 = vmatmul.mubr.msk.f32.vlgmr.msra.gmra.mrb[118].mxu1 %vm1351_vm2, %v7253_v0 }
0x2995   : > { %9184 = vmatpush3.xpose.msk.msra.mxu1 %vm1351_vm2, %v7421_v2  ;;  %9185 = vmatprep.mubr.msk.f32.mxu1 %vm9519_vm0, %v9518_v1  ;;  %v7731_v2 = vsel %vm2027_vm3, %v8439_v61, 0 }
0x2996   : > { %9193 = vmatprep.subr.bf16.mxu1 %v9518_v1 }
0x2997   : > { %v7419_v4 = vpop.permute.xlu1 %7418 }
0x2998   : > { %9186 = vmatmul.mubr.msk.f32.vlgmr.msra.gmra.mrb[120].mxu1 %vm1351_vm2, %v7419_v4  ;;  %v8438_v4 = vld [vmem:[%s10737_s21 + $0x18] sm:$0xf] }
0x2999   : > { %9195 = vmatprep.mubr.msk.bf16.mxu1 %vm9519_vm0, %v9518_v1  ;;  %9194 = vmatpush3.bf16.msra.mxu1 %v7590_v60 }
0x299a   : > { %9205 = vmatprep.subr.bf16.mxu1 %v9518_v1 }
0x29f0   : > { %v6994_v5 = vpop.f32.mrb[102].mxu1 }
0x29f1   : > { %v6998_v6 = vmul.f32 0.35355338, %v6994_v5  ;;  %v9157_v8 = vpop.f32.mrb[103].mxu1 }
0x29f3   : > { %v6999_v10 = vsel %vm4811_vm10, %v6998_v6, -inf }
0x29f4   : > { %7000 = vmax.xlane.f32.xlu0 %v6999_v10  ;;  %v7683_v10 = vsel %vm2027_vm3, %v8438_v4, 0  ;;  %v8488_v4 = vld [vmem:[%s10745_s27 + $0x1] ss:$0 sm:$0xff] }
0x2a63   : > { %v7160_v11 = vpop.f32.mrb[116].mxu1 }
0x2a64   : > { %v7164_v7 = vmul.f32 0.35355338, %v7160_v11  ;;  %v9167_v12 = vpop.f32.mrb[117].mxu1 }
0x2a66   : > { %v7165_v14 = vsel %vm4811_vm10, %v7164_v7, -inf }
0x2a67   : > { %7166 = vmax.xlane.f32.xlu1 %v7165_v14  ;;  %v7326_v15 = vpop.f32.mrb[118].mxu1 }
0x2a68   : > { %v7330_v16 = vmul.f32 0.35355338, %v7326_v15  ;;  %v9177_v53 = vpop.f32.mrb[119].mxu1 }
0x2a6a   : > { %v7331_v17 = vsel %vm4811_vm10, %v7330_v16, -inf }
0x2a6b   : > { %7332 = vmax.xlane.f32.xlu0 %v7331_v17  ;;  %v7492_v18 = vpop.f32.mrb[120].mxu1 }
0x2a6c   : > { %v7496_v9 = vmul.f32 0.35355338, %v7492_v18  ;;  %v9187_v19 = vpop.f32.mrb[121].mxu1 }
0x2a6e   : > { %v7497_v20 = vsel %vm4811_vm10, %v7496_v9, -inf }
0x2a6f   : > { %7498 = vmax.xlane.f32.xlu0 %v7497_v20 }
0x2a78   : > { %7010 = vrot.lane.b32.xlu1 %v10455_v36, %s10734_s14  ;;  %s10754_s14 = sld [smem:[#allocation45_spill]] }
0x2a81   : > { %v7001_v21 = vpop.xlane.xlu0 %7000 }
0x2a82   : > { %v7002_v28 = vsub.f32 %v6998_v6, %v7001_v21 }
0x2a84   : > { %v7003_v22 = vmul.f32 1.442695, %v7002_v28 }
0x2a86   : > { %9447 = vpow2.f32 %v7003_v22 }
0x2a90   : > { %v9448_v39 = vpop.eup %9447 }
0x2a91   : > { %v7005_v23 = vsel %vm4811_vm10, %v9448_v39, 0.0 }
0x2a9c   : > { %7006 = vadd.xlane.f32.xlu1 %v7005_v23 }
0x2af4   : > { %v7167_v24 = vpop.xlane.xlu1 %7166 }
0x2af5   : > { %v7168_v25 = vsub.f32 %v7164_v7, %v7167_v24 }
0x2af7   : > { %v7169_v26 = vmul.f32 1.442695, %v7168_v25 }
0x2af8   : > { %v7011_v27 = vpop.permute.xlu1 %7010  ;;  %v7333_v13 = vpop.xlane.xlu0 %7332 }
0x2af9   : > { %9449 = vpow2.f32 %v7169_v26  ;;  %v7334_v29 = vsub.f32 %v7330_v16, %v7333_v13  ;;  %9159 = vmatpush3.msra.mxu0 %v7011_v27  ;;  %v8465_v27 = vld [vmem:[%s10738_s24 + $0x1] ss:$0 sm:$0xff] }
0x2afa   : > { %9168 = vmatprep.subr.mxu0 %v9518_v1 }
0x2afb   : > { %v7335_v30 = vmul.f32 1.442695, %v7334_v29 }
0x2afc   : > { %v7499_v31 = vpop.xlane.xlu0 %7498 }
0x2afd   : > { %9451 = vpow2.f32 %v7335_v30  ;;  %v7500_v32 = vsub.f32 %v7496_v9, %v7499_v31 }
0x2aff   : > { %v7501_v33 = vmul.f32 1.442695, %v7500_v32 }
0x2b01   : > { %9453 = vpow2.f32 %v7501_v33 }
0x2b03   : > { %v9450_v34 = vpop.eup %9449 }
0x2b04   : > { %v7171_v35 = vsel %vm4811_vm10, %v9450_v34, 0.0 }
0x2b05   : > { %7172 = vadd.xlane.f32.xlu0 %v7171_v35 }
0x2b07   : > { %v9452_v57 = vpop.eup %9451 }
0x2b08   : > { %v7337_v37 = vsel %vm4811_vm10, %v9452_v57, 0.0 }
0x2b09   : > { %7338 = vadd.xlane.f32.xlu1 %v7337_v37 }
0x2b0b   : > { %v9454_v38 = vpop.eup %9453 }
0x2b0c   : > { %v7503_v40 = vsel %vm4811_vm10, %v9454_v38, 0.0 }
0x2b0d   : > { %7504 = vadd.xlane.f32.xlu0 %v7503_v40 }
0x2b1a   : > { %7342 = vrot.lane.b32.xlu1 %v10455_v36, %s10735_s17  ;;  %s10752_s17 = sld [smem:[#allocation40_spill]] }
0x2b1e   : > { %7508 = vrot.lane.b32.xlu1 %v10455_v36, %s10736_s19  ;;  %s10755_s19 = sld [smem:[#allocation43_spill]] }
0x2b23   : > { %7176 = vrot.lane.b32.xlu0 %v10455_v36, %s10733_s12 }
0x2b24   : > { %s1264_s12 = scalar_lea.vmem %s10755_s19, %s10754_s14 }
0x2b29   : > { %v7007_v41 = vpop.xlane.xlu1 %7006 }
0x2b2a   : > { %9455 = vrcp.f32 %v7007_v41 }
0x2b34   : > { %v9456_v42 = vpop.eup %9455 }
0x2b35   : > { %v7009_v43 = vmul.f32 %v9456_v42, %v9448_v39  ;;  %v9341_v42 = vld [vmem:[%s10739_s25 + $0x10] sm:$0xff]  }
0x2b37   : > { %9161 = vmatmul.mubr.msk.f32.vlgmr.msra.gmra.mrb[90].mxu0 %vm1351_vm2, %v7009_v43  ;;  %v9342_v43 = vld [vmem:[%s10739_s25 + $0x18] sm:$0xff]  }
0x2b38   : > { %9170 = vmatprep.mubr.msk.f32.mxu0 %vm9519_vm0, %v9518_v1 }
0x2b92   : > { %v7173_v47 = vpop.xlane.xlu0 %7172 }
0x2b93   : > { %9457 = vrcp.f32 %v7173_v47  ;;  %v9344_v47 = vld [vmem:[%s10740_s29 + $0x28] sm:$0xff]  }
0x2b96   : > { %v7339_v44 = vpop.xlane.xlu1 %7338 }
0x2b97   : > { %9459 = vrcp.f32 %v7339_v44 }
0x2b9a   : > { %v7505_v45 = vpop.xlane.xlu0 %7504  ;;  %v7343_v50 = vpop.permute.xlu1 %7342 }
0x2b9b   : > { %9461 = vrcp.f32 %v7505_v45 }
0x2b9d   : > { %v9458_v46 = vpop.eup %9457 }
0x2b9e   : > { %v7175_v49 = vmul.f32 %v9458_v46, %v9450_v34  ;;  %v7177_v36 = vpop.permute.xlu0 %7176  ;;  %v7509_v56 = vpop.permute.xlu1 %7508 }
0x2b9f   : > { %9169 = vmatpush3.msra.mxu0 %v7177_v36 }
0x2ba0   : > { %9171 = vmatmul.mubr.msk.f32.vlgmr.msra.gmra.mrb[104].mxu0 %vm1351_vm2, %v7175_v49  ;;  %9178 = vmatprep.subr.mxu0 %v9518_v1 }
0x2ba1   : > { %v9460_v51 = vpop.eup %9459  ;;  %9179 = vmatpush3.msra.mxu0 %v7343_v50  ;;  %9180 = vmatprep.mubr.msk.f32.mxu0 %vm9519_vm0, %v9518_v1  ;;  %v8468_v50 = vld [vmem:[%s10741_s30 + $0x1] ss:$0 sm:$0xff] }
0x2ba2   : > { %v7341_v52 = vmul.f32 %v9460_v51, %v9452_v57  ;;  %9188 = vmatprep.subr.mxu0 %v9518_v1  ;;  %v8469_v51 = vld [vmem:[%s10743_s4 + $0x1] ss:$0 sm:$0xff] }
0x2ba4   : > { %9181 = vmatmul.mubr.msk.f32.vlgmr.msra.gmra.mrb[106].mxu0 %vm1351_vm2, %v7341_v52 }
0x2ba5   : > { %v9462_v62 = vpop.eup %9461  ;;  %9189 = vmatpush3.msra.mxu0 %v7509_v56  ;;  %9190 = vmatprep.mubr.msk.f32.mxu0 %vm9519_vm0, %v9518_v1 }
0x2ba6   : > { %v7507_v58 = vmul.f32 %v9462_v62, %v9454_v38  ;;  %9199 = vmatprep.subr.bf16.mxu0 %v9518_v1  ;;  %v9345_v62 = vld [vmem:[%s10740_s29 + $0x30] sm:$0xff]  }
0x2ba8   : > { %9191 = vmatmul.mubr.msk.f32.vlgmr.msra.gmra.mrb[108].mxu0 %vm1351_vm2, %v7507_v58  ;;  %v9346_v58 = vld [vmem:[%s10740_s29 + $0x38] sm:$0xff]  }
0x2ba9   : > { %9200 = vmatpush3.bf16.msra.mxu0 %v7636_v48  ;;  %9201 = vmatprep.mubr.msk.bf16.mxu0 %vm9519_vm0, %v9518_v1  ;;  %v8484_v48 = vld [vmem:[%s10744_s0 + $0x1] ss:$0 sm:$0xff] }
0x2baa   : > { %9211 = vmatprep.subr.bf16.mxu0 %v9518_v1 }
0x2c0a   : > { %v7082_v63 = vpop.f32.mrb[90].mxu0 }
0x2c0b   : > { %v7584_v3 = vpack.c.bf16 %v7082_v63, %v7082_v63  ;;  %v9162_v0 = vpop.f32.mrb[91].mxu0 }
0x2c0d   : > { %9202 = vmatmul.mubr.msk.bf16.vlgmr.msra.gmra.mrb[112].mxu0 %vm1351_vm2, %v7584_v3 }
0x2c0e   : > { %9212 = vmatpush3.bf16.msra.mxu0 %v7731_v2  ;;  %9213 = vmatprep.mubr.msk.bf16.mxu0 %vm9519_vm0, %v9518_v1 }
0x2c0f   : > { %9225 = vmatprep.subr.bf16.mxu0 %v9518_v1 }
0x2c73   : > { %v7248_v5 = vpop.f32.mrb[104].mxu0 }
0x2c74   : > { %v7585_v6 = vpack.c.bf16 %v7248_v5, %v7248_v5  ;;  %v9172_v8 = vpop.f32.mrb[105].mxu0 }
0x2c76   : > { %9196 = vmatmul.mubr.msk.bf16.vlgmr.msra.gmra.mrb[124].mxu1 %vm1351_vm2, %v7585_v6 }
0x2c77   : > { %v7414_v11 = vpop.f32.mrb[106].mxu0  ;;  %9206 = vmatpush3.bf16.msra.mxu1 %v7683_v10  ;;  %9207 = vmatprep.mubr.msk.bf16.mxu1 %vm9519_vm0, %v9518_v1 }
0x2c78   : > { %v9182_v7 = vpop.f32.mrb[107].mxu0  ;;  %9217 = vmatprep.subr.bf16.mxu1 %v9518_v1  ;;  %v7678_v14 = vpack.c.bf16 %v7414_v11, %v7414_v11 }
0x2c7b   : > { %v7580_v12 = vpop.f32.mrb[108].mxu0 }
0x2c7c   : > { %v7726_v15 = vpack.c.bf16 %v7580_v12, %v7580_v12  ;;  %v9192_v16 = vpop.f32.mrb[109].mxu0 }
0x2c7e   : > { %9208 = vmatmul.mubr.msk.bf16.vlgmr.msra.gmra.mrb[128].mxu1 %vm1351_vm2, %v7678_v14  ;;  %9214 = vmatmul.mubr.msk.bf16.vlgmr.msra.gmra.mrb[116].mxu0 %vm1351_vm2, %v7726_v15 }
0x2c7f   : > { %9221 = vmatprep.mubr.msk.bf16.mxu1 %vm9519_vm0, %v9518_v1  ;;  %9233 = vmatprep.mubr.msk.bf16.mxu0 %vm9519_vm0, %v9518_v1 }
0x2c80   : > { %9218 = vmatpush3.bf16.msra.mxu1 %v9341_v42 }
0x2c81   : > { %9219 = vmatprep.subr.bf16.mxu1 %v9518_v1 }
0x2c84   : > { %9220 = vmatpush3.bf16.msra.mxu1 %v9342_v43  ;;  %v8500_v43 = vld [vmem:[%s10753_s8] ss:$0 sm:$0xff] }
0x2c85   : > { %9237 = vmatprep.subr.bf16.mxu1 %v9518_v1 }
0x2ce0   : > { %v7672_v53 = vpop.f32.mrb[112].mxu0 }
0x2ce1   : > { %v9203_v17 = vpop.f32.mrb[113].mxu0 }
0x2ce2   : > { %v7675_v18 = vpop.f32.mrb[114].mxu0 }
0x2ce3   : > { %v9204_v9 = vpop.f32.mrb[115].mxu0 }
0x2d49   : > { %v7626_v19 = vpop.f32.mrb[124].mxu1 }
0x2d4a   : > { %v7673_v20 = vadd.f32 %v7672_v53, %v7626_v19  ;;  %v9197_v21 = vpop.f32.mrb[125].mxu1 }
0x2d4b   : > { %v7629_v28 = vpop.f32.mrb[126].mxu1  ;;  %v8496_v21 = vld [vmem:[%s10747_s13 + $0x1] ss:$0 sm:$0xff] }
0x2d4c   : > { %v9198_v22 = vpop.f32.mrb[127].mxu1 }
0x2d4d   : > { %v8497_v22 = vld [vmem:[%s10748_s20 + $0x1] ss:$0 sm:$0xff] }
0x2d51   : > { %v7719_v39 = vpop.f32.mrb[128].mxu1  ;;  %v7767_v23 = vpop.f32.mrb[116].mxu0 }
0x2d52   : > { %v7725_v24 = vadd.f32 %v7719_v39, %v7673_v20  ;;  %v9209_v25 = vpop.f32.mrb[129].mxu1  ;;  %v9215_v26 = vpop.f32.mrb[117].mxu0 }
0x2d53   : > { %v7722_v13 = vpop.f32.mrb[130].mxu1  ;;  %v7770_v29 = vpop.f32.mrb[118].mxu0 }
0x2d54   : > { %v7773_v30 = vadd.f32 %v7767_v23, %v7725_v24  ;;  %v9210_v31 = vpop.f32.mrb[131].mxu1  ;;  %v9216_v32 = vpop.f32.mrb[119].mxu0 }
0x2d55   : > { %v9348_v31 = vld [vmem:[%s10750_s5 + $0x8] sm:$0xff]  }
0x2d56   : > { %v7780_v33 = vadd.f32 %v8465_v27, %v7773_v30  ;;  %v9347_v30 = vld [vmem:[%s10750_s5] sm:$0xff]  }
0x2d58   : > { %v7781_v34 = vadd.f32 %v7780_v33, %v10470_v54  ;;  %v9343_v54 = vld [vmem:[%s10740_s29 + $0x20] sm:$0xff]  }
0x2d59   : > { %9226 = vmatpush3.bf16.msra.mxu0 %v9343_v54 }
0x2d5a   : > { %v7786_v35 = vsel %vm4567_vm9, %v7781_v34, 0.0  ;;  %9227 = vmatprep.subr.bf16.mxu0 %v9518_v1 }
0x2d5b   : > { %7787 = vadd.xlane.f32.xlu0 %v7786_v35 }
0x2d5d   : > { %9228 = vmatpush3.bf16.msra.mxu0 %v9344_v47 }
0x2d5e   : > { %9229 = vmatprep.subr.bf16.mxu0 %v9518_v1 }
0x2d61   : > { %9230 = vmatpush3.bf16.msra.mxu0 %v9345_v62 }
0x2d62   : > { %9231 = vmatprep.subr.bf16.mxu0 %v9518_v1 }
0x2d65   : > { %9232 = vmatpush3.bf16.msra.mxu0 %v9346_v58 }
0x2de8   : > { %v7788_v57 = vpop.xlane.xlu0 %7787 }
0x2de9   : > { %v7789_v37 = vmul.f32 0.03125, %v7788_v57  ;;  %v8498_v57 = vld [vmem:[%s10751_s9] ss:$0 sm:$0xff] }
0x2deb   : > { %v7790_v38 = vsub.f32 %v7781_v34, %v7789_v37 }
0x2ded   : > { %v7791_v40 = vmul.f32 %v7790_v38, %v7790_v38 }
0x2def   : > { %v7792_v41 = vsel %vm4567_vm9, %v7791_v40, 0.0 }
0x2df0   : > { %7793 = vadd.xlane.f32.xlu1 %v7792_v41 }
0x2e7d   : > { %v7794_v44 = vpop.xlane.xlu1 %7793 }
0x2e7e   : > { %v7795_v45 = vmul.f32 0.03125, %v7794_v44 }
0x2e80   : > { %v7796_v46 = vadd.f32 1e-05, %v7795_v45 }
0x2e82   : > { %9463 = vrsqrt.f32 %v7796_v46 }
0x2e8c   : > { %v9464_v49 = vpop.eup %9463 }
0x2e8d   : > { %v7798_v36 = vmul.f32 %v9464_v49, %v7790_v38  ;;  %v8499_v38 = vld [vmem:[%s10752_s17] ss:$0 sm:$0xff] }
0x2e8f   : > { %v7805_v52 = vmul.f32 %v8468_v50, %v7798_v36 }
0x2e91   : > { %v7812_v55 = vadd.f32 %v8469_v51, %v7805_v52 }
0x2e93   : > { %v7831_v56 = vpack.c.bf16 %v7812_v55, %v7812_v55 }
0x2e95   : > { %9222 = vmatmul.mubr.msk.bf16.vlgmr.msra.gmra.mrb[132].mxu1 %vm1304_vm1, %v7831_v56 }
0x2e96   : > { %9241 = vmatprep.mubr.msk.bf16.mxu1 %vm9519_vm0, %v9518_v1  ;;  %9238 = vmatpush3.bf16.msra.mxu1 %v9347_v30 }
0x2e97   : > { %9239 = vmatprep.subr.bf16.mxu1 %v9518_v1 }
0x2e9a   : > { %9240 = vmatpush3.bf16.msra.mxu1 %v9348_v31 }
0x2f68   : > { %v7887_v59 = vpop.f32.mrb[132].mxu1 }
0x2f69   : > { %v7888_v60 = vadd.f32 %v8484_v48, %v7887_v59  ;;  %v9223_v61 = vpop.f32.mrb[133].mxu1 }
0x2f6a   : > { %v7890_v63 = vpop.f32.mrb[134].mxu1 }
0x2f6b   : > { %v7893_v3 = vmax.f32 %v7888_v60, 0.0  ;;  %v9224_v0 = vpop.f32.mrb[135].mxu1 }
0x2f6d   : > { %v7894_v2 = vpack.c.bf16 %v7893_v3, %v7893_v3 }
0x2f6f   : > { %9234 = vmatmul.mubr.msk.bf16.vlgmr.msra.gmra.mrb[120].mxu0 %vm2359_vm4, %v7894_v2 }
0x3042   : > { %v7962_v5 = vpop.f32.mrb[120].mxu0 }
0x3043   : > { %v7963_v6 = vadd.f32 %v8488_v4, %v7962_v5  ;;  %v9235_v8 = vpop.f32.mrb[121].mxu0 }
0x3044   : > { %v7965_v10 = vpop.f32.mrb[122].mxu0 }
0x3045   : > { %v7968_v11 = vadd.f32 %v7963_v6, %v7812_v55  ;;  %v9236_v7 = vpop.f32.mrb[123].mxu0 }
0x3047   : > { %v7973_v12 = vsel %vm4567_vm9, %v7968_v11, 0.0 }
0x3048   : > { %7974 = vadd.xlane.f32.xlu0 %v7973_v12 }
0x30d5   : > { %v7975_v14 = vpop.xlane.xlu0 %7974 }
0x30d6   : > { %v7976_v15 = vmul.f32 0.03125, %v7975_v14 }
0x30d8   : > { %v7977_v16 = vsub.f32 %v7968_v11, %v7976_v15 }
0x30da   : > { %v7978_v53 = vmul.f32 %v7977_v16, %v7977_v16 }
0x30dc   : > { %v7979_v17 = vsel %vm4567_vm9, %v7978_v53, 0.0 }
0x30dd   : > { %7980 = vadd.xlane.f32.xlu0 %v7979_v17 }
0x316a   : > { %v7981_v18 = vpop.xlane.xlu0 %7980 }
0x316b   : > { %v7982_v9 = vmul.f32 0.03125, %v7981_v18 }
0x316d   : > { %v7983_v19 = vadd.f32 1e-05, %v7982_v9 }
0x316f   : > { %9465 = vrsqrt.f32 %v7983_v19 }
0x3179   : > { %v9466_v20 = vpop.eup %9465 }
0x317a   : > { %v7985_v28 = vmul.f32 %v9466_v20, %v7977_v16 }
0x317c   : > { %v7992_v39 = vmul.f32 %v8496_v21, %v7985_v28 }
0x317e   : > { %v7999_v23 = vadd.f32 %v8497_v22, %v7992_v39 }
0x3180   : > { %v8002_v24 = vsel %vm4567_vm9, %v7999_v23, 0.0 }
0x3181   : > { %8003 = vadd.xlane.f32.xlu1 %v8002_v24 }
0x320e   : > { %v8004_v25 = vpop.xlane.xlu1 %8003 }
0x320f   : > { %v8005_v26 = vmul.f32 0.03125, %v8004_v25 }
0x3211   : > { %v8006_v27 = vsub.f32 %v7999_v23, %v8005_v26 }
0x3213   : > { %v8007_v13 = vmul.f32 %v8006_v27, %v8006_v27 }
0x3215   : > { %v8008_v29 = vsel %vm4567_vm9, %v8007_v13, 0.0 }
0x3216   : > { %8009 = vadd.xlane.f32.xlu0 %v8008_v29 }
0x32a3   : > { %v8010_v32 = vpop.xlane.xlu0 %8009 }
0x32a4   : > { %v8011_v33 = vmul.f32 0.03125, %v8010_v32 }
0x32a6   : > { %v8012_v34 = vadd.f32 1e-05, %v8011_v33 }
0x32a8   : > { %9467 = vrsqrt.f32 %v8012_v34 }
0x32b2   : > { %v9468_v35 = vpop.eup %9467 }
0x32b3   : > { %v8014_v37 = vmul.f32 %v9468_v35, %v8006_v27 }
0x32b5   : > { %v8021_v40 = vmul.f32 %v8498_v57, %v8014_v37 }
0x32b7   : > { %v8028_v41 = vadd.f32 %v8499_v38, %v8021_v40 }
0x32b9   : > { %v8033_v42 = vpack.c.bf16 %v8028_v41, %v8028_v41 }
0x32bb   : > { %9242 = vmatmul.mubr.msk.bf16.vlgmr.msra.gmra.mrb[136].mxu1 %vm1304_vm1, %v8033_v42 }
0x338e   : > { %v8090_v54 = vpop.f32.mrb[136].mxu1 }
0x338f   : > { %v8091_v47 = vadd.f32 %v8500_v43, %v8090_v54  ;;  %v9243_v44 = vpop.f32.mrb[137].mxu1 }
0x3390   : > { %v8093_v1 = vpop.f32.mrb[138].mxu1 }
0x3391   : > { %8096 = vst [vmem:[%s1264_s12] sm:$0x3f] %v8091_v47  ;;  %v9244_v45 = vpop.f32.mrb[139].mxu1 }
0x3392 PF: > { %s10756_s26 = sld [smem:[#allocation44_spill]] }
0x3398   : > { %s93_s7 = sadd.s32 1, %s10756_s26  }
0x3399   : > { %p90_p4 = scmp.ge.s32.totalorder %s93_s7, 4  }
0x339b   :  { %92 = sbr.rel (!%p90_p4) target bundleno = 97 (0x61), region = 293 }

</bundles_post_ra>
